<compile_context>
chip_gen: v7x
topology: tpu7x:2x2x1
jax: 0.10.0
libtpu: 0.0.40
codegen_flags: <defaults>
</compile_context>

<pallas_src>
import math
from functools import partial

import jax
import jax.numpy as jnp
from jax.experimental import pallas as pl
from jax.experimental.pallas import tpu as pltpu

PARAM_ORDER = (
    'in_proj_w', 'in_proj_b', 'out_proj_w', 'out_proj_b',
    'lin1_w', 'lin1_b', 'lin2_w', 'lin2_b',
    'ln1_g', 'ln1_b', 'ln2_g', 'ln2_b',
    'mlp_w1', 'mlp_b1', 'mlp_w2', 'mlp_b2', 'mlp_w3', 'mlp_b3',
)
# Large weight matrices stored bf16 (halves the dominant HBM->VMEM DMA); everything else f32.
WEIGHT_KEYS = frozenset(
    ('in_proj_w', 'out_proj_w', 'lin1_w', 'lin2_w', 'mlp_w1', 'mlp_w2', 'mlp_w3'))

LN_EPS = 1e-5  # PyTorch LayerNorm default


def _layernorm(x, g, b):
    mean = jnp.mean(x, axis=-1, keepdims=True)
    xc = x - mean
    var = jnp.mean(xc * xc, axis=-1, keepdims=True)
    return xc * jax.lax.rsqrt(var + LN_EPS) * g + b


def _encoder_kernel(*refs, H):
    # refs = (x_ref, news_ref, *param_refs[18], o_ref, act_ref)
    x_ref, news_ref = refs[0], refs[1]
    n_par = len(PARAM_ORDER)
    p = dict(zip(PARAM_ORDER, refs[2:2 + n_par]))
    o_ref = refs[2 + n_par]
    act_ref = refs[3 + n_par]

    layer = pl.program_id(0)
    n_layers = pl.num_programs(0)

    B, S, D = act_ref.shape
    M = B * S
    Dh = D // H
    bf16 = jnp.bfloat16
    f32 = jnp.float32

    @pl.when(layer == 0)
    def _():
        act_ref[...] = x_ref[...]

    def w(name):      # bf16 (r, c) weight of the current layer
        return p[name][0]

    def vec(name):    # f32 (1, c) bias / LayerNorm param of the current layer
        return p[name][0]

    x3 = act_ref[...]                       # (B, S, D) f32 activation carried across layers
    x2 = x3.reshape(M, D)                   # leading-dim merge: layout-free
    news = news_ref[...]                    # (B, news_in_dim) f32

    # ---------------- self-attention: packed qkv projection (Q scale pre-folded) -----------
    qkv = jnp.dot(x2.astype(bf16), w('in_proj_w'),
                  preferred_element_type=f32) + vec('in_proj_b')            # (M, 3D) f32

    # Heads: static unroll; each head accumulates directly through its out_proj row-slice,
    # which removes the concat of 8-lane-wide per-head outputs.
    wo = w('out_proj_w')                                                    # (D, D) bf16
    attn2 = jnp.zeros((M, D), f32)
    for h in range(H):
        qh = qkv[:, h * Dh:(h + 1) * Dh].reshape(B, S, Dh)
        kh = qkv[:, D + h * Dh:D + (h + 1) * Dh].reshape(B, S, Dh)
        vh = qkv[:, 2 * D + h * Dh:2 * D + (h + 1) * Dh].reshape(B, S, Dh)
        s = jnp.einsum('bqd,bkd->bqk', qh, kh, preferred_element_type=f32)  # (B, S, S)
        s = s - jnp.max(s, axis=-1, keepdims=True)
        e = jnp.exp(s)
        pr = e / jnp.sum(e, axis=-1, keepdims=True)                         # exact softmax
        oh = jnp.einsum('bqk,bkd->bqd', pr, vh, preferred_element_type=f32)  # (B, S, Dh)
        attn2 = attn2 + jnp.dot(oh.reshape(M, Dh).astype(bf16),
                                wo[h * Dh:(h + 1) * Dh, :],
                                preferred_element_type=f32)
    attn3 = (attn2 + vec('out_proj_b')).reshape(B, S, D)

    # ---------------- news MLP (per batch row); broadcast over sequence as (B, 1, D) -------
    m = jnp.dot(news.astype(bf16), w('mlp_w1'), preferred_element_type=f32) + vec('mlp_b1')
    m = jnp.maximum(m, 0.0)
    m = jnp.dot(m.astype(bf16), w('mlp_w2'), preferred_element_type=f32) + vec('mlp_b2')
    m = jnp.maximum(m, 0.0)
    m = jnp.dot(m.astype(bf16), w('mlp_w3'), preferred_element_type=f32) + vec('mlp_b3')  # (B, D)
    mlp3 = m[:, None, :]                                                    # (B, 1, D)

    # ---------------- residual 1 + norm1 (news-MLP output injected here AND before norm2, as
    # in the reference module) ---------------------------------------------------------------
    x1 = _layernorm(mlp3 + attn3 + x3, vec('ln1_g'), vec('ln1_b'))

    # ---------------- feed-forward (activation='relu') --------------------------------------
    hdd = jnp.maximum(
        jnp.dot(x1.reshape(M, D).astype(bf16), w('lin1_w'),
                preferred_element_type=f32) + vec('lin1_b'), 0.0)
    ff = (jnp.dot(hdd.astype(bf16), w('lin2_w'),
                  preferred_element_type=f32) + vec('lin2_b')).reshape(B, S, D)

    # ---------------- residual 2 + norm2 -----------------------------------------------------
    out = _layernorm(ff + mlp3 + x1, vec('ln2_g'), vec('ln2_b'))
    act_ref[...] = out

    @pl.when(layer == n_layers - 1)
    def _():
        o_ref[...] = out.astype(o_ref.dtype)


# ---------------------------------------------------------------------------
# Parameter construction (deterministic, synthetic) and host-side preprocessing
# ---------------------------------------------------------------------------
def make_layer_params(key, d_model, dim_ff, news_in_dim):
    def rnd(k, shape, scale=0.05):
        return jax.random.normal(k, shape, jnp.float32) * scale

    ks = jax.random.split(key, 16)
    return {
        # MultiheadAttention: packed qkv projection + output projection ((in, out) layout)
        'in_proj_w': rnd(ks[0], (d_model, 3 * d_model)),
        'in_proj_b': rnd(ks[1], (1, 3 * d_model), 0.01),
        'out_proj_w': rnd(ks[2], (d_model, d_model)),
        'out_proj_b': rnd(ks[3], (1, d_model), 0.01),
        # Feed-forward
        'lin1_w': rnd(ks[4], (d_model, dim_ff)),
        'lin1_b': rnd(ks[5], (1, dim_ff), 0.01),
        'lin2_w': rnd(ks[6], (dim_ff, d_model)),
        'lin2_b': rnd(ks[7], (1, d_model), 0.01),
        # LayerNorms
        'ln1_g': jnp.ones((1, d_model), jnp.float32),
        'ln1_b': jnp.zeros((1, d_model), jnp.float32),
        'ln2_g': jnp.ones((1, d_model), jnp.float32),
        'ln2_b': jnp.zeros((1, d_model), jnp.float32),
        # News MLP: news_in_dim -> 768 -> 384 -> d_model (hidden sizes fixed in the module)
        'mlp_w1': rnd(ks[8], (news_in_dim, 768), 0.02),
        'mlp_b1': rnd(ks[9], (1, 768), 0.01),
        'mlp_w2': rnd(ks[10], (768, 384), 0.02),
        'mlp_b2': rnd(ks[11], (1, 384), 0.01),
        'mlp_w3': rnd(ks[12], (384, d_model), 0.02),
        'mlp_b3': rnd(ks[13], (1, d_model), 0.01),
    }


def stack_and_fold(layer_params_list, d_model, nhead):
    """Fold 1/sqrt(Dh) into the Q projection, stack layers on a leading axis, cast weights bf16."""
    scale = 1.0 / math.sqrt(d_model // nhead)

    def fold(prm):
        wq = prm['in_proj_w'].at[:, :d_model].multiply(scale)
        bq = prm['in_proj_b'].at[:, :d_model].multiply(scale)
        return dict(prm, in_proj_w=wq, in_proj_b=bq)

    folded = [fold(prm) for prm in layer_params_list]
    stacked = {}
    for k in PARAM_ORDER:
        arr = jnp.stack([prm[k] for prm in folded], axis=0)
        if k in WEIGHT_KEYS:
            arr = arr.astype(jnp.bfloat16)
        stacked[k] = arr
    return stacked


# ---------------------------------------------------------------------------
# Forward pass: one pallas_call, grid over layers (weights streamed per layer)
# ---------------------------------------------------------------------------
@partial(jax.jit, static_argnames=('nhead',))
def encoder_forward(stacked_params, x_nonnews, x_news, *, nhead):
    B, S, D = x_nonnews.shape
    L = stacked_params['in_proj_w'].shape[0]

    args = [x_nonnews, x_news] + [stacked_params[k] for k in PARAM_ORDER]

    in_specs = [
        pl.BlockSpec((B, S, D), lambda l: (0, 0, 0)),          # x (read at layer 0 only)
        pl.BlockSpec(tuple(x_news.shape), lambda l: (0, 0)),   # news (reused every layer)
    ]
    in_specs += [
        pl.BlockSpec((1,) + tuple(stacked_params[k].shape[1:]), lambda l: (l, 0, 0))
        for k in PARAM_ORDER                                   # per-layer streamed weights
    ]

    out = pl.pallas_call(
        partial(_encoder_kernel, H=nhead),
        grid=(L,),
        out_shape=jax.ShapeDtypeStruct((B, S, D), x_nonnews.dtype),
        in_specs=in_specs,
        out_specs=pl.BlockSpec((B, S, D), lambda l: (0, 0, 0)),
        scratch_shapes=[pltpu.VMEM((B, S, D), jnp.float32)],   # activation carried across layers
        compiler_params=pltpu.CompilerParams(
            dimension_semantics=("arbitrary",),                # layer axis carries a dependency
            vmem_limit_bytes=32 * 1024 * 1024),
    )(*args)
    # self.norm is None in this configuration -> no final LayerNorm
    return out


# ---------------------------------------------------------------------------
# Main
# ---------------------------------------------------------------------------
if __name__ == "__main__":
    # Small config consistent with the module defaults
    B, S = 2, 8
    d_model = 32
    nhead = 4
    dim_feedforward = 64
    news_in_dim = 640
    num_layers = 2

    key = jax.random.PRNGKey(0)
    kx, kn, kp = jax.random.split(key, 3)
    X_nonnews = jax.random.normal(kx, (B, S, d_model), jnp.float32)
    X_news = jax.random.normal(kn, (B, news_in_dim), jnp.float32)

    layer_keys = jax.random.split(kp, num_layers)
    layer_params = [make_layer_params(k, d_model, dim_feedforward, news_in_dim)
                    for k in layer_keys]
    stacked = stack_and_fold(layer_params, d_model, nhead)

    out = encoder_forward(stacked, X_nonnews, X_news, nhead=nhead)
    out = jax.block_until_ready(out)
    assert out.shape == (B, S, d_model)
    assert bool(jnp.all(jnp.isfinite(out)))
    print("KERNEL_OK")
</pallas_src>

<mosaic_0001>
module attributes {stable_mosaic.version = 11 : i64} {
  func.func @_encoder_kernel(%arg0: i32, %arg1: memref<2x8x32xf32, #tpu.memory_space<vmem>>, %arg2: memref<2x640xf32, #tpu.memory_space<vmem>>, %arg3: memref<1x32x96xbf16, #tpu.memory_space<vmem>>, %arg4: memref<1x1x96xf32, #tpu.memory_space<vmem>>, %arg5: memref<1x32x32xbf16, #tpu.memory_space<vmem>>, %arg6: memref<1x1x32xf32, #tpu.memory_space<vmem>>, %arg7: memref<1x32x64xbf16, #tpu.memory_space<vmem>>, %arg8: memref<1x1x64xf32, #tpu.memory_space<vmem>>, %arg9: memref<1x64x32xbf16, #tpu.memory_space<vmem>>, %arg10: memref<1x1x32xf32, #tpu.memory_space<vmem>>, %arg11: memref<1x1x32xf32, #tpu.memory_space<vmem>>, %arg12: memref<1x1x32xf32, #tpu.memory_space<vmem>>, %arg13: memref<1x1x32xf32, #tpu.memory_space<vmem>>, %arg14: memref<1x1x32xf32, #tpu.memory_space<vmem>>, %arg15: memref<1x640x768xbf16, #tpu.memory_space<vmem>>, %arg16: memref<1x1x768xf32, #tpu.memory_space<vmem>>, %arg17: memref<1x768x384xbf16, #tpu.memory_space<vmem>>, %arg18: memref<1x1x384xf32, #tpu.memory_space<vmem>>, %arg19: memref<1x384x32xbf16, #tpu.memory_space<vmem>>, %arg20: memref<1x1x32xf32, #tpu.memory_space<vmem>>, %arg21: memref<2x8x32xf32, #tpu.memory_space<vmem>>, %arg22: memref<2x8x32xf32, #tpu.memory_space<vmem>>) attributes {dimension_semantics = [#tpu.dimension_semantics<arbitrary>], iteration_bounds = array<i64: 2>, scalar_prefetch = 0 : i64, scratch_operands = 1 : i64, tpu.core_type = #tpu.core_type<tc>, window_params = [{pipeline_mode = #tpu.pipeline_mode<synchronous>, transform_indices = @transform_0, window_bounds = array<i64: 2, 8, 32>}, {pipeline_mode = #tpu.pipeline_mode<synchronous>, transform_indices = @transform_1, window_bounds = array<i64: 2, 640>}, {transform_indices = @transform_2, window_bounds = array<i64: 1, 32, 96>}, {transform_indices = @transform_3, window_bounds = array<i64: 1, 1, 96>}, {transform_indices = @transform_4, window_bounds = array<i64: 1, 32, 32>}, {transform_indices = @transform_5, window_bounds = array<i64: 1, 1, 32>}, {transform_indices = @transform_6, window_bounds = array<i64: 1, 32, 64>}, {transform_indices = @transform_7, window_bounds = array<i64: 1, 1, 64>}, {transform_indices = @transform_8, window_bounds = array<i64: 1, 64, 32>}, {transform_indices = @transform_9, window_bounds = array<i64: 1, 1, 32>}, {transform_indices = @transform_10, window_bounds = array<i64: 1, 1, 32>}, {transform_indices = @transform_11, window_bounds = array<i64: 1, 1, 32>}, {transform_indices = @transform_12, window_bounds = array<i64: 1, 1, 32>}, {transform_indices = @transform_13, window_bounds = array<i64: 1, 1, 32>}, {transform_indices = @transform_14, window_bounds = array<i64: 1, 640, 768>}, {transform_indices = @transform_15, window_bounds = array<i64: 1, 1, 768>}, {transform_indices = @transform_16, window_bounds = array<i64: 1, 768, 384>}, {transform_indices = @transform_17, window_bounds = array<i64: 1, 1, 384>}, {transform_indices = @transform_18, window_bounds = array<i64: 1, 384, 32>}, {transform_indices = @transform_19, window_bounds = array<i64: 1, 1, 32>}, {pipeline_mode = #tpu.pipeline_mode<synchronous>, transform_indices = @transform_20, window_bounds = array<i64: 2, 8, 32>}]} {
    %c0_i32 = arith.constant 0 : i32
    %0 = arith.cmpi eq, %arg0, %c0_i32 : i32
    %1 = arith.extui %0 : i1 to i32
    %c0_i32_0 = arith.constant 0 : i32
    %2 = arith.cmpi ne, %1, %c0_i32_0 : i32
    scf.if %2 {
      %c0_102 = arith.constant 0 : index
      %c0_103 = arith.constant 0 : index
      %c0_104 = arith.constant 0 : index
      %221 = vector.load %arg1[%c0_102, %c0_103, %c0_104] : memref<2x8x32xf32, #tpu.memory_space<vmem>>, vector<2x8x32xf32>
      %c0_105 = arith.constant 0 : index
      %c0_106 = arith.constant 0 : index
      %c0_107 = arith.constant 0 : index
      %222 = vector.load %arg22[%c0_105, %c0_106, %c0_107] : memref<2x8x32xf32, #tpu.memory_space<vmem>>, vector<2x8x32xf32>
      tpu.vector_store %arg22[%c0_105, %c0_106, %c0_107], %221 {strides = array<i32>} : memref<2x8x32xf32, #tpu.memory_space<vmem>>, vector<2x8x32xf32>,
    } else {
    }
    %c0 = arith.constant 0 : index
    %c0_1 = arith.constant 0 : index
    %c0_2 = arith.constant 0 : index
    %3 = vector.load %arg22[%c0, %c0_1, %c0_2] : memref<2x8x32xf32, #tpu.memory_space<vmem>>, vector<2x8x32xf32>
    %4 = vector.shape_cast %3 : vector<2x8x32xf32> to vector<16x32xf32>
    %c0_3 = arith.constant 0 : index
    %c0_4 = arith.constant 0 : index
    %5 = vector.load %arg2[%c0_3, %c0_4] : memref<2x640xf32, #tpu.memory_space<vmem>>, vector<2x640xf32>
    %6 = arith.truncf %4 : vector<16x32xf32> to vector<16x32xbf16>
    %c0_5 = arith.constant 0 : index
    %c0_6 = arith.constant 0 : index
    %c0_7 = arith.constant 0 : index
    %7 = vector.load %arg3[%c0_5, %c0_6, %c0_7] : memref<1x32x96xbf16, #tpu.memory_space<vmem>>, vector<1x32x96xbf16>
    %8 = vector.shape_cast %7 : vector<1x32x96xbf16> to vector<32x96xbf16>
    %cst = arith.constant dense<0.000000e+00> : vector<16x96xf32>
    %9 = tpu.matmul %6, %8, %cst {dimension_numbers = #tpu.dot_dimension_numbers<[1], [0], [0], [1], [0, 0, 1, 1], [], []>} : vector<16x32xbf16>, vector<32x96xbf16>, vector<16x96xf32> -> vector<16x96xf32>
    %c0_8 = arith.constant 0 : index
    %c0_9 = arith.constant 0 : index
    %c0_10 = arith.constant 0 : index
    %10 = vector.load %arg4[%c0_8, %c0_9, %c0_10] : memref<1x1x96xf32, #tpu.memory_space<vmem>>, vector<1x1x96xf32>
    %11 = vector.shape_cast %10 : vector<1x1x96xf32> to vector<1x96xf32>
    %12 = vector.broadcast %11 : vector<1x96xf32> to vector<16x96xf32>
    %13 = arith.addf %9, %12 : vector<16x96xf32>
    %c0_11 = arith.constant 0 : index
    %c0_12 = arith.constant 0 : index
    %c0_13 = arith.constant 0 : index
    %14 = vector.load %arg5[%c0_11, %c0_12, %c0_13] : memref<1x32x32xbf16, #tpu.memory_space<vmem>>, vector<1x32x32xbf16>
    %15 = vector.shape_cast %14 : vector<1x32x32xbf16> to vector<32x32xbf16>
    %cst_14 = arith.constant 0.000000e+00 : f32
    %16 = vector.broadcast %cst_14 : f32 to vector<16x32xf32>
    %17 = vector.extract_strided_slice %13 {offsets = [0, 0], sizes = [16, 8], strides = [1, 1]} : vector<16x96xf32> to vector<16x8xf32>
    %18 = vector.shape_cast %17 : vector<16x8xf32> to vector<2x8x8xf32>
    %19 = vector.extract_strided_slice %13 {offsets = [0, 32], sizes = [16, 8], strides = [1, 1]} : vector<16x96xf32> to vector<16x8xf32>
    %20 = vector.shape_cast %19 : vector<16x8xf32> to vector<2x8x8xf32>
    %21 = vector.extract_strided_slice %13 {offsets = [0, 64], sizes = [16, 8], strides = [1, 1]} : vector<16x96xf32> to vector<16x8xf32>
    %22 = vector.shape_cast %21 : vector<16x8xf32> to vector<2x8x8xf32>
    "tpu.trace_start"() <{level = 10 : i32, message = "bqd,bkd->bqk"}> : () -> ()
    %cst_15 = arith.constant dense<0.000000e+00> : vector<2x8x8xf32>
    %23 = tpu.matmul %18, %20, %cst_15 {dimension_numbers = #tpu.dot_dimension_numbers<[2], [2], [1], [1], [0, 0, 0, 1, 1, 1], [0], [0]>} : vector<2x8x8xf32>, vector<2x8x8xf32>, vector<2x8x8xf32> -> vector<2x8x8xf32>
    "tpu.trace_stop"() : () -> ()
    %cst_16 = arith.constant dense<0xFF800000> : vector<2x8xf32>
    %24 = vector.multi_reduction <maximumf>, %23, %cst_16 [2] : vector<2x8x8xf32> to vector<2x8xf32>
    %25 = vector.shape_cast %24 : vector<2x8xf32> to vector<2x8x1xf32>
    %26 = vector.broadcast %25 : vector<2x8x1xf32> to vector<2x8x8xf32>
    %27 = arith.subf %23, %26 : vector<2x8x8xf32>
    %28 = math.exp %27 : vector<2x8x8xf32>
    %cst_17 = arith.constant dense<0.000000e+00> : vector<2x8xf32>
    %29 = vector.multi_reduction <add>, %28, %cst_17 [2] : vector<2x8x8xf32> to vector<2x8xf32>
    %30 = vector.shape_cast %29 : vector<2x8xf32> to vector<2x8x1xf32>
    %31 = vector.broadcast %30 : vector<2x8x1xf32> to vector<2x8x8xf32>
    %32 = arith.divf %28, %31 : vector<2x8x8xf32>
    "tpu.trace_start"() <{level = 10 : i32, message = "bqk,bkd->bqd"}> : () -> ()
    %cst_18 = arith.constant dense<0.000000e+00> : vector<2x8x8xf32>
    %33 = tpu.matmul %32, %22, %cst_18 {dimension_numbers = #tpu.dot_dimension_numbers<[2], [1], [1], [2], [0, 0, 0, 1, 1, 2], [0], [0]>} : vector<2x8x8xf32>, vector<2x8x8xf32>, vector<2x8x8xf32> -> vector<2x8x8xf32>
    "tpu.trace_stop"() : () -> ()
    %34 = vector.shape_cast %33 : vector<2x8x8xf32> to vector<16x8xf32>
    %35 = arith.truncf %34 : vector<16x8xf32> to vector<16x8xbf16>
    %36 = vector.extract_strided_slice %15 {offsets = [0, 0], sizes = [8, 32], strides = [1, 1]} : vector<32x32xbf16> to vector<8x32xbf16>
    %cst_19 = arith.constant dense<0.000000e+00> : vector<16x32xf32>
    %37 = tpu.matmul %35, %36, %cst_19 {dimension_numbers = #tpu.dot_dimension_numbers<[1], [0], [0], [1], [0, 0, 1, 1], [], []>} : vector<16x8xbf16>, vector<8x32xbf16>, vector<16x32xf32> -> vector<16x32xf32>
    %38 = arith.addf %16, %37 : vector<16x32xf32>
    %39 = vector.extract_strided_slice %13 {offsets = [0, 8], sizes = [16, 8], strides = [1, 1]} : vector<16x96xf32> to vector<16x8xf32>
    %40 = vector.shape_cast %39 : vector<16x8xf32> to vector<2x8x8xf32>
    %41 = vector.extract_strided_slice %13 {offsets = [0, 40], sizes = [16, 8], strides = [1, 1]} : vector<16x96xf32> to vector<16x8xf32>
    %42 = vector.shape_cast %41 : vector<16x8xf32> to vector<2x8x8xf32>
    %43 = vector.extract_strided_slice %13 {offsets = [0, 72], sizes = [16, 8], strides = [1, 1]} : vector<16x96xf32> to vector<16x8xf32>
    %44 = vector.shape_cast %43 : vector<16x8xf32> to vector<2x8x8xf32>
    "tpu.trace_start"() <{level = 10 : i32, message = "bqd,bkd->bqk"}> : () -> ()
    %cst_20 = arith.constant dense<0.000000e+00> : vector<2x8x8xf32>
    %45 = tpu.matmul %40, %42, %cst_20 {dimension_numbers = #tpu.dot_dimension_numbers<[2], [2], [1], [1], [0, 0, 0, 1, 1, 1], [0], [0]>} : vector<2x8x8xf32>, vector<2x8x8xf32>, vector<2x8x8xf32> -> vector<2x8x8xf32>
    "tpu.trace_stop"() : () -> ()
    %cst_21 = arith.constant dense<0xFF800000> : vector<2x8xf32>
    %46 = vector.multi_reduction <maximumf>, %45, %cst_21 [2] : vector<2x8x8xf32> to vector<2x8xf32>
    %47 = vector.shape_cast %46 : vector<2x8xf32> to vector<2x8x1xf32>
    %48 = vector.broadcast %47 : vector<2x8x1xf32> to vector<2x8x8xf32>
    %49 = arith.subf %45, %48 : vector<2x8x8xf32>
    %50 = math.exp %49 : vector<2x8x8xf32>
    %cst_22 = arith.constant dense<0.000000e+00> : vector<2x8xf32>
    %51 = vector.multi_reduction <add>, %50, %cst_22 [2] : vector<2x8x8xf32> to vector<2x8xf32>
    %52 = vector.shape_cast %51 : vector<2x8xf32> to vector<2x8x1xf32>
    %53 = vector.broadcast %52 : vector<2x8x1xf32> to vector<2x8x8xf32>
    %54 = arith.divf %50, %53 : vector<2x8x8xf32>
    "tpu.trace_start"() <{level = 10 : i32, message = "bqk,bkd->bqd"}> : () -> ()
    %cst_23 = arith.constant dense<0.000000e+00> : vector<2x8x8xf32>
    %55 = tpu.matmul %54, %44, %cst_23 {dimension_numbers = #tpu.dot_dimension_numbers<[2], [1], [1], [2], [0, 0, 0, 1, 1, 2], [0], [0]>} : vector<2x8x8xf32>, vector<2x8x8xf32>, vector<2x8x8xf32> -> vector<2x8x8xf32>
    "tpu.trace_stop"() : () -> ()
    %56 = vector.shape_cast %55 : vector<2x8x8xf32> to vector<16x8xf32>
    %57 = arith.truncf %56 : vector<16x8xf32> to vector<16x8xbf16>
    %58 = vector.extract_strided_slice %15 {offsets = [8, 0], sizes = [8, 32], strides = [1, 1]} : vector<32x32xbf16> to vector<8x32xbf16>
    %cst_24 = arith.constant dense<0.000000e+00> : vector<16x32xf32>
    %59 = tpu.matmul %57, %58, %cst_24 {dimension_numbers = #tpu.dot_dimension_numbers<[1], [0], [0], [1], [0, 0, 1, 1], [], []>} : vector<16x8xbf16>, vector<8x32xbf16>, vector<16x32xf32> -> vector<16x32xf32>
    %60 = arith.addf %38, %59 : vector<16x32xf32>
    %61 = vector.extract_strided_slice %13 {offsets = [0, 16], sizes = [16, 8], strides = [1, 1]} : vector<16x96xf32> to vector<16x8xf32>
    %62 = vector.shape_cast %61 : vector<16x8xf32> to vector<2x8x8xf32>
    %63 = vector.extract_strided_slice %13 {offsets = [0, 48], sizes = [16, 8], strides = [1, 1]} : vector<16x96xf32> to vector<16x8xf32>
    %64 = vector.shape_cast %63 : vector<16x8xf32> to vector<2x8x8xf32>
    %65 = vector.extract_strided_slice %13 {offsets = [0, 80], sizes = [16, 8], strides = [1, 1]} : vector<16x96xf32> to vector<16x8xf32>
    %66 = vector.shape_cast %65 : vector<16x8xf32> to vector<2x8x8xf32>
    "tpu.trace_start"() <{level = 10 : i32, message = "bqd,bkd->bqk"}> : () -> ()
    %cst_25 = arith.constant dense<0.000000e+00> : vector<2x8x8xf32>
    %67 = tpu.matmul %62, %64, %cst_25 {dimension_numbers = #tpu.dot_dimension_numbers<[2], [2], [1], [1], [0, 0, 0, 1, 1, 1], [0], [0]>} : vector<2x8x8xf32>, vector<2x8x8xf32>, vector<2x8x8xf32> -> vector<2x8x8xf32>
    "tpu.trace_stop"() : () -> ()
    %cst_26 = arith.constant dense<0xFF800000> : vector<2x8xf32>
    %68 = vector.multi_reduction <maximumf>, %67, %cst_26 [2] : vector<2x8x8xf32> to vector<2x8xf32>
    %69 = vector.shape_cast %68 : vector<2x8xf32> to vector<2x8x1xf32>
    %70 = vector.broadcast %69 : vector<2x8x1xf32> to vector<2x8x8xf32>
    %71 = arith.subf %67, %70 : vector<2x8x8xf32>
    %72 = math.exp %71 : vector<2x8x8xf32>
    %cst_27 = arith.constant dense<0.000000e+00> : vector<2x8xf32>
    %73 = vector.multi_reduction <add>, %72, %cst_27 [2] : vector<2x8x8xf32> to vector<2x8xf32>
    %74 = vector.shape_cast %73 : vector<2x8xf32> to vector<2x8x1xf32>
    %75 = vector.broadcast %74 : vector<2x8x1xf32> to vector<2x8x8xf32>
    %76 = arith.divf %72, %75 : vector<2x8x8xf32>
    "tpu.trace_start"() <{level = 10 : i32, message = "bqk,bkd->bqd"}> : () -> ()
    %cst_28 = arith.constant dense<0.000000e+00> : vector<2x8x8xf32>
    %77 = tpu.matmul %76, %66, %cst_28 {dimension_numbers = #tpu.dot_dimension_numbers<[2], [1], [1], [2], [0, 0, 0, 1, 1, 2], [0], [0]>} : vector<2x8x8xf32>, vector<2x8x8xf32>, vector<2x8x8xf32> -> vector<2x8x8xf32>
    "tpu.trace_stop"() : () -> ()
    %78 = vector.shape_cast %77 : vector<2x8x8xf32> to vector<16x8xf32>
    %79 = arith.truncf %78 : vector<16x8xf32> to vector<16x8xbf16>
    %80 = vector.extract_strided_slice %15 {offsets = [16, 0], sizes = [8, 32], strides = [1, 1]} : vector<32x32xbf16> to vector<8x32xbf16>
    %cst_29 = arith.constant dense<0.000000e+00> : vector<16x32xf32>
    %81 = tpu.matmul %79, %80, %cst_29 {dimension_numbers = #tpu.dot_dimension_numbers<[1], [0], [0], [1], [0, 0, 1, 1], [], []>} : vector<16x8xbf16>, vector<8x32xbf16>, vector<16x32xf32> -> vector<16x32xf32>
    %82 = arith.addf %60, %81 : vector<16x32xf32>
    %83 = vector.extract_strided_slice %13 {offsets = [0, 24], sizes = [16, 8], strides = [1, 1]} : vector<16x96xf32> to vector<16x8xf32>
    %84 = vector.shape_cast %83 : vector<16x8xf32> to vector<2x8x8xf32>
    %85 = vector.extract_strided_slice %13 {offsets = [0, 56], sizes = [16, 8], strides = [1, 1]} : vector<16x96xf32> to vector<16x8xf32>
    %86 = vector.shape_cast %85 : vector<16x8xf32> to vector<2x8x8xf32>
    %87 = vector.extract_strided_slice %13 {offsets = [0, 88], sizes = [16, 8], strides = [1, 1]} : vector<16x96xf32> to vector<16x8xf32>
    %88 = vector.shape_cast %87 : vector<16x8xf32> to vector<2x8x8xf32>
    "tpu.trace_start"() <{level = 10 : i32, message = "bqd,bkd->bqk"}> : () -> ()
    %cst_30 = arith.constant dense<0.000000e+00> : vector<2x8x8xf32>
    %89 = tpu.matmul %84, %86, %cst_30 {dimension_numbers = #tpu.dot_dimension_numbers<[2], [2], [1], [1], [0, 0, 0, 1, 1, 1], [0], [0]>} : vector<2x8x8xf32>, vector<2x8x8xf32>, vector<2x8x8xf32> -> vector<2x8x8xf32>
    "tpu.trace_stop"() : () -> ()
    %cst_31 = arith.constant dense<0xFF800000> : vector<2x8xf32>
    %90 = vector.multi_reduction <maximumf>, %89, %cst_31 [2] : vector<2x8x8xf32> to vector<2x8xf32>
    %91 = vector.shape_cast %90 : vector<2x8xf32> to vector<2x8x1xf32>
    %92 = vector.broadcast %91 : vector<2x8x1xf32> to vector<2x8x8xf32>
    %93 = arith.subf %89, %92 : vector<2x8x8xf32>
    %94 = math.exp %93 : vector<2x8x8xf32>
    %cst_32 = arith.constant dense<0.000000e+00> : vector<2x8xf32>
    %95 = vector.multi_reduction <add>, %94, %cst_32 [2] : vector<2x8x8xf32> to vector<2x8xf32>
    %96 = vector.shape_cast %95 : vector<2x8xf32> to vector<2x8x1xf32>
    %97 = vector.broadcast %96 : vector<2x8x1xf32> to vector<2x8x8xf32>
    %98 = arith.divf %94, %97 : vector<2x8x8xf32>
    "tpu.trace_start"() <{level = 10 : i32, message = "bqk,bkd->bqd"}> : () -> ()
    %cst_33 = arith.constant dense<0.000000e+00> : vector<2x8x8xf32>
    %99 = tpu.matmul %98, %88, %cst_33 {dimension_numbers = #tpu.dot_dimension_numbers<[2], [1], [1], [2], [0, 0, 0, 1, 1, 2], [0], [0]>} : vector<2x8x8xf32>, vector<2x8x8xf32>, vector<2x8x8xf32> -> vector<2x8x8xf32>
    "tpu.trace_stop"() : () -> ()
    %100 = vector.shape_cast %99 : vector<2x8x8xf32> to vector<16x8xf32>
    %101 = arith.truncf %100 : vector<16x8xf32> to vector<16x8xbf16>
    %102 = vector.extract_strided_slice %15 {offsets = [24, 0], sizes = [8, 32], strides = [1, 1]} : vector<32x32xbf16> to vector<8x32xbf16>
    %cst_34 = arith.constant dense<0.000000e+00> : vector<16x32xf32>
    %103 = tpu.matmul %101, %102, %cst_34 {dimension_numbers = #tpu.dot_dimension_numbers<[1], [0], [0], [1], [0, 0, 1, 1], [], []>} : vector<16x8xbf16>, vector<8x32xbf16>, vector<16x32xf32> -> vector<16x32xf32>
    %104 = arith.addf %82, %103 : vector<16x32xf32>
    %c0_35 = arith.constant 0 : index
    %c0_36 = arith.constant 0 : index
    %c0_37 = arith.constant 0 : index
    %105 = vector.load %arg6[%c0_35, %c0_36, %c0_37] : memref<1x1x32xf32, #tpu.memory_space<vmem>>, vector<1x1x32xf32>
    %106 = vector.shape_cast %105 : vector<1x1x32xf32> to vector<1x32xf32>
    %107 = vector.broadcast %106 : vector<1x32xf32> to vector<16x32xf32>
    %108 = arith.addf %104, %107 : vector<16x32xf32>
    %109 = vector.shape_cast %108 : vector<16x32xf32> to vector<2x8x32xf32>
    %110 = arith.truncf %5 : vector<2x640xf32> to vector<2x640xbf16>
    %c0_38 = arith.constant 0 : index
    %c0_39 = arith.constant 0 : index
    %c0_40 = arith.constant 0 : index
    %111 = vector.load %arg15[%c0_38, %c0_39, %c0_40] : memref<1x640x768xbf16, #tpu.memory_space<vmem>>, vector<1x640x768xbf16>
    %112 = vector.shape_cast %111 : vector<1x640x768xbf16> to vector<640x768xbf16>
    %cst_41 = arith.constant dense<0.000000e+00> : vector<2x768xf32>
    %113 = tpu.matmul %110, %112, %cst_41 {dimension_numbers = #tpu.dot_dimension_numbers<[1], [0], [0], [1], [0, 0, 1, 1], [], []>} : vector<2x640xbf16>, vector<640x768xbf16>, vector<2x768xf32> -> vector<2x768xf32>
    %c0_42 = arith.constant 0 : index
    %c0_43 = arith.constant 0 : index
    %c0_44 = arith.constant 0 : index
    %114 = vector.load %arg16[%c0_42, %c0_43, %c0_44] : memref<1x1x768xf32, #tpu.memory_space<vmem>>, vector<1x1x768xf32>
    %115 = vector.shape_cast %114 : vector<1x1x768xf32> to vector<1x768xf32>
    %116 = vector.broadcast %115 : vector<1x768xf32> to vector<2x768xf32>
    %117 = arith.addf %113, %116 : vector<2x768xf32>
    %cst_45 = arith.constant 0.000000e+00 : f32
    %118 = vector.broadcast %cst_45 : f32 to vector<2x768xf32>
    %119 = arith.maximumf %117, %118 : vector<2x768xf32>
    %120 = arith.truncf %119 : vector<2x768xf32> to vector<2x768xbf16>
    %c0_46 = arith.constant 0 : index
    %c0_47 = arith.constant 0 : index
    %c0_48 = arith.constant 0 : index
    %121 = vector.load %arg17[%c0_46, %c0_47, %c0_48] : memref<1x768x384xbf16, #tpu.memory_space<vmem>>, vector<1x768x384xbf16>
    %122 = vector.shape_cast %121 : vector<1x768x384xbf16> to vector<768x384xbf16>
    %cst_49 = arith.constant dense<0.000000e+00> : vector<2x384xf32>
    %123 = tpu.matmul %120, %122, %cst_49 {dimension_numbers = #tpu.dot_dimension_numbers<[1], [0], [0], [1], [0, 0, 1, 1], [], []>} : vector<2x768xbf16>, vector<768x384xbf16>, vector<2x384xf32> -> vector<2x384xf32>
    %c0_50 = arith.constant 0 : index
    %c0_51 = arith.constant 0 : index
    %c0_52 = arith.constant 0 : index
    %124 = vector.load %arg18[%c0_50, %c0_51, %c0_52] : memref<1x1x384xf32, #tpu.memory_space<vmem>>, vector<1x1x384xf32>
    %125 = vector.shape_cast %124 : vector<1x1x384xf32> to vector<1x384xf32>
    %126 = vector.broadcast %125 : vector<1x384xf32> to vector<2x384xf32>
    %127 = arith.addf %123, %126 : vector<2x384xf32>
    %cst_53 = arith.constant 0.000000e+00 : f32
    %128 = vector.broadcast %cst_53 : f32 to vector<2x384xf32>
    %129 = arith.maximumf %127, %128 : vector<2x384xf32>
    %130 = arith.truncf %129 : vector<2x384xf32> to vector<2x384xbf16>
    %c0_54 = arith.constant 0 : index
    %c0_55 = arith.constant 0 : index
    %c0_56 = arith.constant 0 : index
    %131 = vector.load %arg19[%c0_54, %c0_55, %c0_56] : memref<1x384x32xbf16, #tpu.memory_space<vmem>>, vector<1x384x32xbf16>
    %132 = vector.shape_cast %131 : vector<1x384x32xbf16> to vector<384x32xbf16>
    %cst_57 = arith.constant dense<0.000000e+00> : vector<2x32xf32>
    %133 = tpu.matmul %130, %132, %cst_57 {dimension_numbers = #tpu.dot_dimension_numbers<[1], [0], [0], [1], [0, 0, 1, 1], [], []>} : vector<2x384xbf16>, vector<384x32xbf16>, vector<2x32xf32> -> vector<2x32xf32>
    %c0_58 = arith.constant 0 : index
    %c0_59 = arith.constant 0 : index
    %c0_60 = arith.constant 0 : index
    %134 = vector.load %arg20[%c0_58, %c0_59, %c0_60] : memref<1x1x32xf32, #tpu.memory_space<vmem>>, vector<1x1x32xf32>
    %135 = vector.shape_cast %134 : vector<1x1x32xf32> to vector<1x32xf32>
    %136 = vector.broadcast %135 : vector<1x32xf32> to vector<2x32xf32>
    %137 = arith.addf %133, %136 : vector<2x32xf32>
    %138 = vector.shape_cast %137 : vector<2x32xf32> to vector<2x1x32xf32>
    %139 = vector.broadcast %138 : vector<2x1x32xf32> to vector<2x8x32xf32>
    %140 = arith.addf %139, %109 : vector<2x8x32xf32>
    %141 = arith.addf %140, %3 : vector<2x8x32xf32>
    %c0_61 = arith.constant 0 : index
    %c0_62 = arith.constant 0 : index
    %c0_63 = arith.constant 0 : index
    %142 = vector.load %arg11[%c0_61, %c0_62, %c0_63] : memref<1x1x32xf32, #tpu.memory_space<vmem>>, vector<1x1x32xf32>
    %143 = vector.shape_cast %142 : vector<1x1x32xf32> to vector<1x32xf32>
    %c0_64 = arith.constant 0 : index
    %c0_65 = arith.constant 0 : index
    %c0_66 = arith.constant 0 : index
    %144 = vector.load %arg12[%c0_64, %c0_65, %c0_66] : memref<1x1x32xf32, #tpu.memory_space<vmem>>, vector<1x1x32xf32>
    %145 = vector.shape_cast %144 : vector<1x1x32xf32> to vector<1x32xf32>
    %cst_67 = arith.constant dense<0.000000e+00> : vector<2x8xf32>
    %146 = vector.multi_reduction <add>, %141, %cst_67 [2] : vector<2x8x32xf32> to vector<2x8xf32>
    %147 = vector.shape_cast %146 : vector<2x8xf32> to vector<2x8x1xf32>
    %cst_68 = arith.constant 3.200000e+01 : f32
    %148 = vector.broadcast %cst_68 : f32 to vector<2x8x1xf32>
    %149 = arith.divf %147, %148 : vector<2x8x1xf32>
    %150 = vector.broadcast %149 : vector<2x8x1xf32> to vector<2x8x32xf32>
    %151 = arith.subf %141, %150 : vector<2x8x32xf32>
    %152 = arith.mulf %151, %151 : vector<2x8x32xf32>
    %cst_69 = arith.constant dense<0.000000e+00> : vector<2x8xf32>
    %153 = vector.multi_reduction <add>, %152, %cst_69 [2] : vector<2x8x32xf32> to vector<2x8xf32>
    %154 = vector.shape_cast %153 : vector<2x8xf32> to vector<2x8x1xf32>
    %cst_70 = arith.constant 3.200000e+01 : f32
    %155 = vector.broadcast %cst_70 : f32 to vector<2x8x1xf32>
    %156 = arith.divf %154, %155 : vector<2x8x1xf32>
    %cst_71 = arith.constant 9.99999974E-6 : f32
    %157 = vector.broadcast %cst_71 : f32 to vector<2x8x1xf32>
    %158 = arith.addf %156, %157 : vector<2x8x1xf32>
    %159 = math.rsqrt %158 : vector<2x8x1xf32>
    %160 = vector.broadcast %159 : vector<2x8x1xf32> to vector<2x8x32xf32>
    %161 = arith.mulf %151, %160 : vector<2x8x32xf32>
    %162 = vector.shape_cast %143 : vector<1x32xf32> to vector<1x1x32xf32>
    %163 = vector.broadcast %162 : vector<1x1x32xf32> to vector<2x8x32xf32>
    %164 = arith.mulf %161, %163 : vector<2x8x32xf32>
    %165 = vector.shape_cast %145 : vector<1x32xf32> to vector<1x1x32xf32>
    %166 = vector.broadcast %165 : vector<1x1x32xf32> to vector<2x8x32xf32>
    %167 = arith.addf %164, %166 : vector<2x8x32xf32>
    %168 = vector.shape_cast %167 : vector<2x8x32xf32> to vector<16x32xf32>
    %169 = arith.truncf %168 : vector<16x32xf32> to vector<16x32xbf16>
    %c0_72 = arith.constant 0 : index
    %c0_73 = arith.constant 0 : index
    %c0_74 = arith.constant 0 : index
    %170 = vector.load %arg7[%c0_72, %c0_73, %c0_74] : memref<1x32x64xbf16, #tpu.memory_space<vmem>>, vector<1x32x64xbf16>
    %171 = vector.shape_cast %170 : vector<1x32x64xbf16> to vector<32x64xbf16>
    %cst_75 = arith.constant dense<0.000000e+00> : vector<16x64xf32>
    %172 = tpu.matmul %169, %171, %cst_75 {dimension_numbers = #tpu.dot_dimension_numbers<[1], [0], [0], [1], [0, 0, 1, 1], [], []>} : vector<16x32xbf16>, vector<32x64xbf16>, vector<16x64xf32> -> vector<16x64xf32>
    %c0_76 = arith.constant 0 : index
    %c0_77 = arith.constant 0 : index
    %c0_78 = arith.constant 0 : index
    %173 = vector.load %arg8[%c0_76, %c0_77, %c0_78] : memref<1x1x64xf32, #tpu.memory_space<vmem>>, vector<1x1x64xf32>
    %174 = vector.shape_cast %173 : vector<1x1x64xf32> to vector<1x64xf32>
    %175 = vector.broadcast %174 : vector<1x64xf32> to vector<16x64xf32>
    %176 = arith.addf %172, %175 : vector<16x64xf32>
    %cst_79 = arith.constant 0.000000e+00 : f32
    %177 = vector.broadcast %cst_79 : f32 to vector<16x64xf32>
    %178 = arith.maximumf %176, %177 : vector<16x64xf32>
    %179 = arith.truncf %178 : vector<16x64xf32> to vector<16x64xbf16>
    %c0_80 = arith.constant 0 : index
    %c0_81 = arith.constant 0 : index
    %c0_82 = arith.constant 0 : index
    %180 = vector.load %arg9[%c0_80, %c0_81, %c0_82] : memref<1x64x32xbf16, #tpu.memory_space<vmem>>, vector<1x64x32xbf16>
    %181 = vector.shape_cast %180 : vector<1x64x32xbf16> to vector<64x32xbf16>
    %cst_83 = arith.constant dense<0.000000e+00> : vector<16x32xf32>
    %182 = tpu.matmul %179, %181, %cst_83 {dimension_numbers = #tpu.dot_dimension_numbers<[1], [0], [0], [1], [0, 0, 1, 1], [], []>} : vector<16x64xbf16>, vector<64x32xbf16>, vector<16x32xf32> -> vector<16x32xf32>
    %c0_84 = arith.constant 0 : index
    %c0_85 = arith.constant 0 : index
    %c0_86 = arith.constant 0 : index
    %183 = vector.load %arg10[%c0_84, %c0_85, %c0_86] : memref<1x1x32xf32, #tpu.memory_space<vmem>>, vector<1x1x32xf32>
    %184 = vector.shape_cast %183 : vector<1x1x32xf32> to vector<1x32xf32>
    %185 = vector.broadcast %184 : vector<1x32xf32> to vector<16x32xf32>
    %186 = arith.addf %182, %185 : vector<16x32xf32>
    %187 = vector.shape_cast %186 : vector<16x32xf32> to vector<2x8x32xf32>
    %188 = vector.broadcast %138 : vector<2x1x32xf32> to vector<2x8x32xf32>
    %189 = arith.addf %187, %188 : vector<2x8x32xf32>
    %190 = arith.addf %189, %167 : vector<2x8x32xf32>
    %c0_87 = arith.constant 0 : index
    %c0_88 = arith.constant 0 : index
    %c0_89 = arith.constant 0 : index
    %191 = vector.load %arg13[%c0_87, %c0_88, %c0_89] : memref<1x1x32xf32, #tpu.memory_space<vmem>>, vector<1x1x32xf32>
    %192 = vector.shape_cast %191 : vector<1x1x32xf32> to vector<1x32xf32>
    %c0_90 = arith.constant 0 : index
    %c0_91 = arith.constant 0 : index
    %c0_92 = arith.constant 0 : index
    %193 = vector.load %arg14[%c0_90, %c0_91, %c0_92] : memref<1x1x32xf32, #tpu.memory_space<vmem>>, vector<1x1x32xf32>
    %194 = vector.shape_cast %193 : vector<1x1x32xf32> to vector<1x32xf32>
    %cst_93 = arith.constant dense<0.000000e+00> : vector<2x8xf32>
    %195 = vector.multi_reduction <add>, %190, %cst_93 [2] : vector<2x8x32xf32> to vector<2x8xf32>
    %196 = vector.shape_cast %195 : vector<2x8xf32> to vector<2x8x1xf32>
    %cst_94 = arith.constant 3.200000e+01 : f32
    %197 = vector.broadcast %cst_94 : f32 to vector<2x8x1xf32>
    %198 = arith.divf %196, %197 : vector<2x8x1xf32>
    %199 = vector.broadcast %198 : vector<2x8x1xf32> to vector<2x8x32xf32>
    %200 = arith.subf %190, %199 : vector<2x8x32xf32>
    %201 = arith.mulf %200, %200 : vector<2x8x32xf32>
    %cst_95 = arith.constant dense<0.000000e+00> : vector<2x8xf32>
    %202 = vector.multi_reduction <add>, %201, %cst_95 [2] : vector<2x8x32xf32> to vector<2x8xf32>
    %203 = vector.shape_cast %202 : vector<2x8xf32> to vector<2x8x1xf32>
    %cst_96 = arith.constant 3.200000e+01 : f32
    %204 = vector.broadcast %cst_96 : f32 to vector<2x8x1xf32>
    %205 = arith.divf %203, %204 : vector<2x8x1xf32>
    %cst_97 = arith.constant 9.99999974E-6 : f32
    %206 = vector.broadcast %cst_97 : f32 to vector<2x8x1xf32>
    %207 = arith.addf %205, %206 : vector<2x8x1xf32>
    %208 = math.rsqrt %207 : vector<2x8x1xf32>
    %209 = vector.broadcast %208 : vector<2x8x1xf32> to vector<2x8x32xf32>
    %210 = arith.mulf %200, %209 : vector<2x8x32xf32>
    %211 = vector.shape_cast %192 : vector<1x32xf32> to vector<1x1x32xf32>
    %212 = vector.broadcast %211 : vector<1x1x32xf32> to vector<2x8x32xf32>
    %213 = arith.mulf %210, %212 : vector<2x8x32xf32>
    %214 = vector.shape_cast %194 : vector<1x32xf32> to vector<1x1x32xf32>
    %215 = vector.broadcast %214 : vector<1x1x32xf32> to vector<2x8x32xf32>
    %216 = arith.addf %213, %215 : vector<2x8x32xf32>
    %c0_98 = arith.constant 0 : index
    %c0_99 = arith.constant 0 : index
    %c0_100 = arith.constant 0 : index
    %217 = vector.load %arg22[%c0_98, %c0_99, %c0_100] : memref<2x8x32xf32, #tpu.memory_space<vmem>>, vector<2x8x32xf32>
    tpu.vector_store %arg22[%c0_98, %c0_99, %c0_100], %216 {strides = array<i32>} : memref<2x8x32xf32, #tpu.memory_space<vmem>>, vector<2x8x32xf32>,
    %c1_i32 = arith.constant 1 : i32
    %218 = arith.cmpi eq, %arg0, %c1_i32 : i32
    %219 = arith.extui %218 : i1 to i32
    %c0_i32_101 = arith.constant 0 : i32
    %220 = arith.cmpi ne, %219, %c0_i32_101 : i32
    scf.if %220 {
      %c0_102 = arith.constant 0 : index
      %c0_103 = arith.constant 0 : index
      %c0_104 = arith.constant 0 : index
      %221 = vector.load %arg21[%c0_102, %c0_103, %c0_104] : memref<2x8x32xf32, #tpu.memory_space<vmem>>, vector<2x8x32xf32>
      tpu.vector_store %arg21[%c0_102, %c0_103, %c0_104], %216 {strides = array<i32>} : memref<2x8x32xf32, #tpu.memory_space<vmem>>, vector<2x8x32xf32>,
    } else {
    }
    return
  }
  func.func @transform_0(%arg0: i32) -> (i32, i32, i32) {
    %c0_i32 = arith.constant 0 : i32
    %c0_i32_0 = arith.constant 0 : i32
    %c0_i32_1 = arith.constant 0 : i32
    %c0_i32_2 = arith.constant 0 : i32
    return %c0_i32, %c0_i32_0, %c0_i32_1 : i32, i32, i32
  }
  func.func @transform_1(%arg0: i32) -> (i32, i32) {
    %c0_i32 = arith.constant 0 : i32
    %c0_i32_0 = arith.constant 0 : i32
    %c0_i32_1 = arith.constant 0 : i32
    return %c0_i32, %c0_i32_0 : i32, i32
  }
  func.func @transform_2(%arg0: i32) -> (i32, i32, i32) {
    %c0_i32 = arith.constant 0 : i32
    %c0_i32_0 = arith.constant 0 : i32
    %c0_i32_1 = arith.constant 0 : i32
    return %arg0, %c0_i32, %c0_i32_0 : i32, i32, i32
  }
  func.func @transform_3(%arg0: i32) -> (i32, i32, i32) {
    %c0_i32 = arith.constant 0 : i32
    %c0_i32_0 = arith.constant 0 : i32
    %c0_i32_1 = arith.constant 0 : i32
    return %arg0, %c0_i32, %c0_i32_0 : i32, i32, i32
  }
  func.func @transform_4(%arg0: i32) -> (i32, i32, i32) {
    %c0_i32 = arith.constant 0 : i32
    %c0_i32_0 = arith.constant 0 : i32
    %c0_i32_1 = arith.constant 0 : i32
    return %arg0, %c0_i32, %c0_i32_0 : i32, i32, i32
  }
  func.func @transform_5(%arg0: i32) -> (i32, i32, i32) {
    %c0_i32 = arith.constant 0 : i32
    %c0_i32_0 = arith.constant 0 : i32
    %c0_i32_1 = arith.constant 0 : i32
    return %arg0, %c0_i32, %c0_i32_0 : i32, i32, i32
  }
  func.func @transform_6(%arg0: i32) -> (i32, i32, i32) {
    %c0_i32 = arith.constant 0 : i32
    %c0_i32_0 = arith.constant 0 : i32
    %c0_i32_1 = arith.constant 0 : i32
    return %arg0, %c0_i32, %c0_i32_0 : i32, i32, i32
  }
  func.func @transform_7(%arg0: i32) -> (i32, i32, i32) {
    %c0_i32 = arith.constant 0 : i32
    %c0_i32_0 = arith.constant 0 : i32
    %c0_i32_1 = arith.constant 0 : i32
    return %arg0, %c0_i32, %c0_i32_0 : i32, i32, i32
  }
  func.func @transform_8(%arg0: i32) -> (i32, i32, i32) {
    %c0_i32 = arith.constant 0 : i32
    %c0_i32_0 = arith.constant 0 : i32
    %c0_i32_1 = arith.constant 0 : i32
    return %arg0, %c0_i32, %c0_i32_0 : i32, i32, i32
  }
  func.func @transform_9(%arg0: i32) -> (i32, i32, i32) {
    %c0_i32 = arith.constant 0 : i32
    %c0_i32_0 = arith.constant 0 : i32
    %c0_i32_1 = arith.constant 0 : i32
    return %arg0, %c0_i32, %c0_i32_0 : i32, i32, i32
  }
  func.func @transform_10(%arg0: i32) -> (i32, i32, i32) {
    %c0_i32 = arith.constant 0 : i32
    %c0_i32_0 = arith.constant 0 : i32
    %c0_i32_1 = arith.constant 0 : i32
    return %arg0, %c0_i32, %c0_i32_0 : i32, i32, i32
  }
  func.func @transform_11(%arg0: i32) -> (i32, i32, i32) {
    %c0_i32 = arith.constant 0 : i32
    %c0_i32_0 = arith.constant 0 : i32
    %c0_i32_1 = arith.constant 0 : i32
    return %arg0, %c0_i32, %c0_i32_0 : i32, i32, i32
  }
  func.func @transform_12(%arg0: i32) -> (i32, i32, i32) {
    %c0_i32 = arith.constant 0 : i32
    %c0_i32_0 = arith.constant 0 : i32
    %c0_i32_1 = arith.constant 0 : i32
    return %arg0, %c0_i32, %c0_i32_0 : i32, i32, i32
  }
  func.func @transform_13(%arg0: i32) -> (i32, i32, i32) {
    %c0_i32 = arith.constant 0 : i32
    %c0_i32_0 = arith.constant 0 : i32
    %c0_i32_1 = arith.constant 0 : i32
    return %arg0, %c0_i32, %c0_i32_0 : i32, i32, i32
  }
  func.func @transform_14(%arg0: i32) -> (i32, i32, i32) {
    %c0_i32 = arith.constant 0 : i32
    %c0_i32_0 = arith.constant 0 : i32
    %c0_i32_1 = arith.constant 0 : i32
    return %arg0, %c0_i32, %c0_i32_0 : i32, i32, i32
  }
  func.func @transform_15(%arg0: i32) -> (i32, i32, i32) {
    %c0_i32 = arith.constant 0 : i32
    %c0_i32_0 = arith.constant 0 : i32
    %c0_i32_1 = arith.constant 0 : i32
    return %arg0, %c0_i32, %c0_i32_0 : i32, i32, i32
  }
  func.func @transform_16(%arg0: i32) -> (i32, i32, i32) {
    %c0_i32 = arith.constant 0 : i32
    %c0_i32_0 = arith.constant 0 : i32
    %c0_i32_1 = arith.constant 0 : i32
    return %arg0, %c0_i32, %c0_i32_0 : i32, i32, i32
  }
  func.func @transform_17(%arg0: i32) -> (i32, i32, i32) {
    %c0_i32 = arith.constant 0 : i32
    %c0_i32_0 = arith.constant 0 : i32
    %c0_i32_1 = arith.constant 0 : i32
    return %arg0, %c0_i32, %c0_i32_0 : i32, i32, i32
  }
  func.func @transform_18(%arg0: i32) -> (i32, i32, i32) {
    %c0_i32 = arith.constant 0 : i32
    %c0_i32_0 = arith.constant 0 : i32
    %c0_i32_1 = arith.constant 0 : i32
    return %arg0, %c0_i32, %c0_i32_0 : i32, i32, i32
  }
  func.func @transform_19(%arg0: i32) -> (i32, i32, i32) {
    %c0_i32 = arith.constant 0 : i32
    %c0_i32_0 = arith.constant 0 : i32
    %c0_i32_1 = arith.constant 0 : i32
    return %arg0, %c0_i32, %c0_i32_0 : i32, i32, i32
  }
  func.func @transform_20(%arg0: i32) -> (i32, i32, i32) {
    %c0_i32 = arith.constant 0 : i32
    %c0_i32_0 = arith.constant 0 : i32
    %c0_i32_1 = arith.constant 0 : i32
    %c0_i32_2 = arith.constant 0 : i32
    return %c0_i32, %c0_i32_0, %c0_i32_1 : i32, i32, i32
  }
}

</mosaic_0001>

<bundles_post_ra>
// kernel: encoder_forward.1
= control target key start
LH: loop header
LB: loop body
LE: loop exit
PB: predicated region body
PF: predicated region fallthrough
CT: control target
= control target key end

     0   :  { %s10615_s0 = inlined_call_operand.hbm [shape: f32[2,8,32], index: 0, kind: input, shape index: {}]   ;;  %s10616_s1 = inlined_call_operand.hbm [shape: f32[2,640], index: 1, kind: input, shape index: {}]   ;;  %s10617_s2 = inlined_call_operand.hbm [shape: bf16[2,32,96], index: 2, kind: input, shape index: {}]   ;;  %s10618_s3 = inlined_call_operand.hbm [shape: f32[2,1,96], index: 3, kind: input, shape index: {}]   ;;  %s10619_s4 = inlined_call_operand.hbm [shape: bf16[2,32,32], index: 4, kind: input, shape index: {}]   ;;  %s10620_s5 = inlined_call_operand.hbm [shape: f32[2,1,32], index: 5, kind: input, shape index: {}]   ;;  %s10621_s6 = inlined_call_operand.hbm [shape: bf16[2,32,64], index: 6, kind: input, shape index: {}]   ;;  %s10622_s7 = inlined_call_operand.hbm [shape: f32[2,1,64], index: 7, kind: input, shape index: {}]   ;;  %s10623_s8 = inlined_call_operand.vmem [shape: bf16[2,64,32], index: 8, kind: input, shape index: {}]   ;;  %s10624_s9 = inlined_call_operand.hbm [shape: f32[2,1,32], index: 9, kind: input, shape index: {}]   ;;  %s10625_s10 = inlined_call_operand.hbm [shape: f32[2,1,32], index: 10, kind: input, shape index: {}]   ;;  %s10626_s11 = inlined_call_operand.hbm [shape: f32[2,1,32], index: 11, kind: input, shape index: {}]   ;;  %s10627_s12 = inlined_call_operand.hbm [shape: f32[2,1,32], index: 12, kind: input, shape index: {}]   ;;  %s10628_s13 = inlined_call_operand.hbm [shape: f32[2,1,32], index: 13, kind: input, shape index: {}]   ;;  %s10629_s14 = inlined_call_operand.hbm [shape: bf16[2,640,768], index: 14, kind: input, shape index: {}]   ;;  %s10630_s15 = inlined_call_operand.hbm [shape: f32[2,1,768], index: 15, kind: input, shape index: {}]   ;;  %s10631_s16 = inlined_call_operand.hbm [shape: bf16[2,768,384], index: 16, kind: input, shape index: {}]   ;;  %s10632_s17 = inlined_call_operand.hbm [shape: f32[2,1,384], index: 17, kind: input, shape index: {}]   ;;  %s10633_s18 = inlined_call_operand.vmem [shape: bf16[2,384,32], index: 18, kind: input, shape index: {}]   ;;  %s10634_s19 = inlined_call_operand.hbm [shape: f32[2,1,32], index: 19, kind: input, shape index: {}]   ;;  %s10635_s20 = inlined_call_operand.hbm [shape: f32[2,8,32], index: 20, kind: output, shape index: {}]  }
   0x1   :  { %10671 = sst [smem:[#allocation36_spill]] %s10615_s0 }
   0x2   :  { %10672 = sst [smem:[#allocation37_spill]] %s10616_s1 }
   0x3   :  { %10673 = sst [smem:[#allocation38_spill]] %s10617_s2 }
   0x4   :  { %10674 = sst [smem:[#allocation39_spill]] %s10618_s3 }
   0x5   :  { %10675 = sst [smem:[#allocation40_spill]] %s10619_s4 }
   0x6   :  { %10676 = sst [smem:[#allocation41_spill]] %s10620_s5 }
   0x7   :  { %10677 = sst [smem:[#allocation42_spill]] %s10621_s6 }
   0x8   :  { %10678 = sst [smem:[#allocation43_spill]] %s10622_s7 }
   0x9   :  { %10679 = sst [smem:[#allocation44_spill]] %s10623_s8 }
   0xa   :  { %10680 = sst [smem:[#allocation45_spill]] %s10624_s9 }
   0xb   :  { %10681 = sst [smem:[#allocation46_spill]] %s10625_s10 }
   0xc   :  { %10682 = sst [smem:[#allocation47_spill]] %s10626_s11 }
   0xd   :  { %10683 = sst [smem:[#allocation48_spill]] %s10627_s12 }
   0xe   :  { %10684 = sst [smem:[#allocation49_spill]] %s10628_s13 }
   0xf   :  { %10685 = sst [smem:[#allocation50_spill]] %s10629_s14 }
  0x10   :  { %10686 = sst [smem:[#allocation51_spill]] %s10630_s15 }
  0x11   :  { %10687 = sst [smem:[#allocation52_spill]] %s10631_s16 }
  0x12   :  { %10688 = sst [smem:[#allocation53_spill]] %s10632_s17 }
  0x13   :  { %10689 = sst [smem:[#allocation54_spill]] %s10633_s18 }
  0x14   :  { %10690 = sst [smem:[#allocation55_spill]] %s10634_s19 }
  0x15   :  { %10691 = sst [smem:[#allocation56_spill]] %s10635_s20 }
  0x16   :  { %25 = vsyncpa [#allocation4], 0 }
  0x17   :  { %26 = vsyncpa [#allocation7], 0 }
  0x18   :  { %27 = vsyncpa [#allocation5], 0  ;;  %s9201_s1 = smov 0   ;;  %s9203_s22 = smov 0  }
  0x19   :  { %s9205_s23 = smov 0   ;;  %s9207_s24 = smov 0  }
  0x1a LB: > { %10692 = sst [smem:[#allocation29_spill]] %s9041_s22  ;;  %s9220_s2 = sadd.s32 4294967295, %s9049_s24   ;;  %s9049_s24 = sphi %s9207_s24, %s10742_s24   ;;  %s9045_s23 = sphi %s9205_s23, %s10745_s23   ;;  %s9041_s22 = sphi %s9203_s22, %s10744_s22   ;;  %s9037_s1 = sphi %s9201_s1, %s10743_s1  }
  0x1b   : > { %10693 = sst [smem:[#allocation30_spill]] %s9045_s23  ;;  %s9223_s25 = sadd.s32 1, %s9049_s24  }
  0x1c   : > { %10694 = sst [smem:[#allocation31_spill]] %s9220_s2  ;;  %s79_s3 = ssub.s32 %s9049_s24, %s9223_s25 }
  0x1d   : > { %10695 = sst [smem:[#allocation32_spill]] %s9223_s25  ;;  %s82_s26 = sadd.s32 1, %s9045_s23 }
  0x1e   : > { %p80_p0 = scmp.eq.s32.totalorder %s79_s3, 0  ;;  %p89_p1 = scmp.ne.s32.totalorder %s9045_s23, %s9041_s22 }
  0x1f   : > { %p90_p2 = scmp.eq.s32.totalorder %s9049_s24, 0  ;;  %p95_p3 = scmp.ne.s32.totalorder %s9041_s22, %s9037_s1 }
  0x20   : > { %s9233_s27 = scalar_select %p80_p0, %s9045_s23, %s82_s26  }
  0x21   : > { %p9235_p4 = por %p90_p2, %p89_p1  ;;  %p10646_p5 = scmp.eq.s32.totalorder %s9220_s2, 0 }
  0x22   : > { %10696 = sst [smem:[#allocation33_spill]] %s9233_s27  ;;  %p6873_p6 = scmp.ge.s32.totalorder %s9049_s24, 1 }
  0x23   : > { %s10697_s28 = scalar_select %p9235_p4, 1, 0 }
  0x24   : > { %p569_p7 = scmp.lt.s32.totalorder %s9049_s24, 3  ;;  %p9244_p8 = por %p10646_p5, %p95_p3 }
  0x25   : > { %s9051_s30 = smov [#allocation3]   ;;  %s9052_s1 = smov [#allocation6]  }
  0x26   : > { %s10698_s4 = scalar_select %p9244_p8, 1, 0 }
  0x27   : > { %p9249_p10 = pnand %p6873_p6, %p569_p7  ;;  %s581_s0 = sshll.u32 %s9051_s30, 4  ;;  %s582_s0 = int_to_ptr.vmem [resolvable:$true] %s581_s0 }
  0x28   : > { %10699 = sst [smem:[#allocation34_spill]] %s10698_s4  ;;  %s595_s3 = sshll.u32 %s9052_s1, 4  ;;  %s9261_s3 = int_to_ptr.vmem [resolvable:$true] %s595_s3 }
  0x29   : > { %s10700_s29 = scalar_select %p9249_p10, 1, 0 }
  0x2a   : > { %p7772_p11 = pneg %p9249_p10  ;;  %s10703_s25 = sld [smem:[#allocation36_spill]] }
  0x2b   : > { %10701 = sst [smem:[#allocation35_spill]] %s10700_s29 }
  0x2c   : > { %p9257_p12 = pnand %p7772_p11, %p10646_p5 }
  0x2e   : > { %p8475_p0 = pneg %p9257_p12 }
  0x30   : > { %s8473_s20 = scalar_lea.hbm %s10703_s25, 256 }
  0x31   : > { %p8474_p13 = scmp.ne.s32.totalorder %s10703_s25, %s8473_s20  ;;  %p8480_p3 = scmp.lt.u32.totalorder %s8473_s20, %s10703_s25 }
  0x33   : > { %p8476_p1 = pnand %p8475_p0, %p8474_p13 }
  0x35   : > { %p8477_p2 = pneg %p8476_p1 }
  0x37   : > { %p8482_p6 = pnand %p8480_p3, %p8477_p2 }
  0x39   : > { %8485 = shalt.err (!%p8482_p6)
}
  0x3a   : > { %s8486_s1 = scalar_lea.vmem %s582_s0, 256  ;;  %p8494_p5 = scmp.lt.s32.totalorder %s582_s0, %s582_s0 }
  0x3b   : > { %p8487_p7 = scmp.ne.s32.totalorder %s582_s0, %s8486_s1  ;;  %p8495_p8 = scmp.lt.s32.totalorder %s8486_s1, %s8486_s1 }
  0x3d   : > { %p8489_p11 = pnand %p8487_p7, %p8475_p0  ;;  %p8496_p10 = por %p8495_p8, %p8494_p5 }
  0x3f   : > { %p8490_p9 = pneg %p8489_p11 }
  0x41   : > { %p8497_p4 = pnand %p8496_p10, %p8490_p9 }
  0x43   : > { %8500 = shalt.err (!%p8497_p4)
}
  0x44   : > { %s9053_s18 = smov 128   ;;  %s9054_s27 = smov 8  }
  0x45   : > { %7775 = dma.hbm_to_vmem [thread:$0]  (!%p9257_p12), %s10703_s25, 256, %s582_s0, [#allocation4], %s9053_s18, %s9053_s18, %s9054_s27  }
  0x46   : > { %s10704_s30 = sld [smem:[#allocation37_spill]] }
  0x4c   : > { %s8501_s22 = scalar_lea.hbm %s10704_s30, 160 }
  0x4d   : > { %p8502_p13 = scmp.ne.s32.totalorder %s10704_s30, %s8501_s22  ;;  %p8508_p8 = scmp.lt.u32.totalorder %s8501_s22, %s10704_s30 }
  0x4f   : > { %p8504_p4 = pnand %p8502_p13, %p8475_p0 }
  0x51   : > { %p8505_p5 = pneg %p8504_p4 }
  0x53   : > { %p8510_p9 = pnand %p8508_p8, %p8505_p5 }
  0x55   : > { %8513 = shalt.err (!%p8510_p9)
}
  0x56   : > { %s8514_s0 = scalar_lea.vmem %s9261_s3, 160  ;;  %p8522_p3 = scmp.lt.s32.totalorder %s9261_s3, %s9261_s3 }
  0x57   : > { %p8515_p10 = scmp.ne.s32.totalorder %s9261_s3, %s8514_s0  ;;  %p8523_p6 = scmp.lt.s32.totalorder %s8514_s0, %s8514_s0 }
  0x59   : > { %p8517_p1 = pnand %p8515_p10, %p8475_p0  ;;  %p8524_p7 = por %p8523_p6, %p8522_p3 }
  0x5b   : > { %p8518_p2 = pneg %p8517_p1 }
  0x5d   : > { %p8525_p11 = pnand %p8524_p7, %p8518_p2 }
  0x5f   : > { %8528 = shalt.err (!%p8525_p11)
}
  0x60   : > { %7778 = dma.hbm_to_vmem [thread:$0]  (!%p9257_p12), %s10704_s30, 160, %s9261_s3, [#allocation7]  }
  0x61   : > { %p6876_p13 = scmp.ge.s32.totalorder %s9049_s24, 2 }
  0x62   : > { %s606_s2 = sand.u32 (!%p6876_p13), 1, %s9049_s24   ;;  %s9313_s29 = sand.u32 (!%p6876_p13), 1, %s9045_s23  }
  0x63   : > { %602 = sbr.rel (%p6876_p13) target bundleno = 513 (0x201), region = 24  ;;  %s9316_s18 = sshll.u32 (!%p6876_p13), %s9313_s29, 4 }
  0x64   : > { %s9319_s21 = sshll.u32 (!%p6876_p13), %s9049_s24, 8  ;;  %s10705_s3 = sld [smem:[#allocation38_spill]] (!%p6876_p13) }
  0x65   : > { %s610_s4 = scalar_lea.vmem (!%p6876_p13), [#allocation8], %s9316_s18  ;;  %s9330_s1 = scalar_lea.sflag (!%p6876_p13), [#allocation4], %s606_s2 }
  0x66   : > { %s617_s26 = sshll.u32 (!%p6876_p13), %s610_s4, 4  ;;  %p10706_p0 = scmp.ne.s32.totalorder (!%p6876_p13), %s10697_s28, 0  ;;  %s9328_s26 = int_to_ptr.vmem [resolvable:$true] %s617_s26 }
  0x6a   : > { %s9325_s20 = scalar_lea.hbm %s10705_s3, %s9319_s21  ;;  %s8533_s27 = scalar_lea.hbm %s10705_s3, 512 }
  0x6b   : > { %s8529_s0 = scalar_lea.hbm %s9325_s20, 256  ;;  %p8534_p8 = scmp.lt.u32.totalorder %s9325_s20, %s10705_s3 }
  0x6c   : > { %p8530_p12 = scmp.ne.s32.totalorder %s9325_s20, %s8529_s0  ;;  %p8535_p9 = scmp.lt.u32.totalorder %s8533_s27, %s8529_s0 }
  0x6d   : > { %p8537_p1 = scmp.lt.u32.totalorder %s8529_s0, %s9325_s20 }
  0x6e   : > { %p8531_p4 = pnand %p8530_p12, %p10706_p0  ;;  %p8536_p10 = por %p8535_p9, %p8534_p8 }
  0x70   : > { %p8532_p5 = pneg %p8531_p4  ;;  %p8538_p2 = por %p8537_p1, %p8536_p10 }
  0x72   : > { %p8539_p3 = pnand %p8538_p2, %p8532_p5 }
  0x74   : > { %8542 = shalt.err (!%p8539_p3)
}
  0x75   : > { %s8543_s2 = scalar_lea.vmem %s9328_s26, 256  ;;  %s9055_s4 = smov [#allocation8]  }
  0x76   : > { %p8544_p6 = scmp.ne.s32.totalorder %s9328_s26, %s8543_s2  ;;  %s8547_s19 = sshll.u32 %s9055_s4, 4  ;;  %s8548_s19 = int_to_ptr.vmem [resolvable:$false] %s8547_s19 }
  0x77   : > { %s8549_s25 = scalar_lea.vmem %s8548_s19, 512  ;;  %p8550_p13 = scmp.lt.s32.totalorder %s9328_s26, %s8548_s19 }
  0x78   : > { %p8545_p7 = pnand %p8544_p6, %p10706_p0  ;;  %p8551_p12 = scmp.lt.s32.totalorder %s8549_s25, %s8543_s2 }
  0x7a   : > { %p8546_p11 = pneg %p8545_p7  ;;  %p8552_p4 = por %p8551_p12, %p8550_p13 }
  0x7c   : > { %p8553_p8 = pnand %p8552_p4, %p8546_p11 }
  0x7e   : > { %8556 = shalt.err (!%p8553_p8)
}
  0x7f   : > { %s10662_s0 = smov 64   ;;  %s10664_s22 = smov 4  }
  0x80   : > { %7732 = dma.hbm_to_vmem [thread:$0]  (%p10706_p0), %s9325_s20, 256, %s9328_s26, %s9330_s1, %s10662_s0, %s10662_s0, %s10664_s22  }
  0x81   : > { %s9358_s27 = sshll.u32 %s9049_s24, 4  ;;  %s630_s8 = scalar_lea.vmem [#allocation9], %s9313_s29 }
  0x82   : > { %s637_s2 = sshll.u32 %s630_s8, 4  ;;  %s10707_s25 = sld [smem:[#allocation39_spill]]  ;;  %s638_s2 = int_to_ptr.vmem [resolvable:$true] %s637_s2 }
  0x88   : > { %s635_s3 = scalar_lea.hbm %s10707_s25, %s9358_s27  ;;  %s8561_s16 = scalar_lea.hbm %s10707_s25, 32 }
  0x89   : > { %s8557_s30 = scalar_lea.hbm %s635_s3, 16  ;;  %p8562_p1 = scmp.lt.u32.totalorder %s635_s3, %s10707_s25 }
  0x8a   : > { %p8558_p5 = scmp.ne.s32.totalorder %s635_s3, %s8557_s30  ;;  %p8563_p2 = scmp.lt.u32.totalorder %s8561_s16, %s8557_s30 }
  0x8b   : > { %p8565_p6 = scmp.lt.u32.totalorder %s8557_s30, %s635_s3 }
  0x8c   : > { %p8559_p9 = pnand %p8558_p5, %p10706_p0  ;;  %p8564_p3 = por %p8563_p2, %p8562_p1 }
  0x8e   : > { %p8560_p10 = pneg %p8559_p9  ;;  %p8566_p7 = por %p8565_p6, %p8564_p3 }
  0x90   : > { %p8567_p11 = pnand %p8566_p7, %p8560_p10 }
  0x92   : > { %8570 = shalt.err (!%p8567_p11)
}
  0x93   : > { %s8571_s8 = scalar_lea.vmem %s638_s2, 16  ;;  %s9058_s4 = smov [#allocation9]  }
  0x94   : > { %p8572_p13 = scmp.ne.s32.totalorder %s638_s2, %s8571_s8  ;;  %s8575_s19 = sshll.u32 %s9058_s4, 4  ;;  %s8576_s19 = int_to_ptr.vmem [resolvable:$false] %s8575_s19 }
  0x95   : > { %s8577_s17 = scalar_lea.vmem %s8576_s19, 32  ;;  %p8578_p8 = scmp.lt.s32.totalorder %s638_s2, %s8576_s19 }
  0x96   : > { %p8573_p12 = pnand %p8572_p13, %p10706_p0  ;;  %p8579_p5 = scmp.lt.s32.totalorder %s8577_s17, %s8571_s8 }
  0x98   : > { %p8574_p4 = pneg %p8573_p12  ;;  %p8580_p9 = por %p8579_p5, %p8578_p8 }
  0x9a   : > { %p8581_p1 = pnand %p8580_p9, %p8574_p4 }
  0x9c   : > { %8584 = shalt.err (!%p8581_p1)
}
  0x9d   : > { %7733 = dma.hbm_to_vmem [thread:$0]  (%p10706_p0), %s635_s3, 16, %s638_s2, %s9330_s1  }
  0x9e   : > { %s10708_s30 = sld [smem:[#allocation40_spill]]  ;;  %s648_s26 = scalar_lea.vmem [#allocation10], %s9316_s18 }
  0x9f   : > { %s655_s8 = sshll.u32 %s648_s26, 4  ;;  %s10709_s5 = sld [smem:[#allocation41_spill]]  ;;  %s9385_s8 = int_to_ptr.vmem [resolvable:$true] %s655_s8 }
  0xa4   : > { %s9382_s20 = scalar_lea.hbm %s10708_s30, %s9319_s21  ;;  %s8589_s16 = scalar_lea.hbm %s10708_s30, 512 }
  0xa5   : > { %s9391_s17 = scalar_lea.hbm %s10709_s5, %s9358_s27  ;;  %s8585_s0 = scalar_lea.hbm %s9382_s20, 256 }
  0xa6   : > { %p8586_p10 = scmp.ne.s32.totalorder %s9382_s20, %s8585_s0  ;;  %p8590_p6 = scmp.lt.u32.totalorder %s9382_s20, %s10708_s30 }
  0xa7   : > { %p8591_p7 = scmp.lt.u32.totalorder %s8589_s16, %s8585_s0  ;;  %p8593_p13 = scmp.lt.u32.totalorder %s8585_s0, %s9382_s20 }
  0xa8   : > { %p8587_p2 = pnand %p8586_p10, %p10706_p0 }
  0xa9   : > { %p8592_p11 = por %p8591_p7, %p8590_p6 }
  0xaa   : > { %p8588_p3 = pneg %p8587_p2 }
  0xab   : > { %p8594_p12 = por %p8593_p13, %p8592_p11 }
  0xad   : > { %p8595_p4 = pnand %p8594_p12, %p8588_p3 }
  0xaf   : > { %8598 = shalt.err (!%p8595_p4)
}
  0xb0   : > { %s8599_s26 = scalar_lea.vmem %s9385_s8, 256  ;;  %s9059_s4 = smov [#allocation10]  }
  0xb1   : > { %p8600_p8 = scmp.ne.s32.totalorder %s9385_s8, %s8599_s26  ;;  %s8603_s19 = sshll.u32 %s9059_s4, 4  ;;  %s8604_s19 = int_to_ptr.vmem [resolvable:$false] %s8603_s19 }
  0xb2   : > { %s8605_s22 = scalar_lea.vmem %s8604_s19, 512  ;;  %p8606_p1 = scmp.lt.s32.totalorder %s9385_s8, %s8604_s19 }
  0xb3   : > { %p8601_p5 = pnand %p8600_p8, %p10706_p0  ;;  %p8607_p10 = scmp.lt.s32.totalorder %s8605_s22, %s8599_s26 }
  0xb5   : > { %p8602_p9 = pneg %p8601_p5  ;;  %p8608_p2 = por %p8607_p10, %p8606_p1 }
  0xb7   : > { %p8609_p6 = pnand %p8608_p2, %p8602_p9 }
  0xb9   : > { %8612 = shalt.err (!%p8609_p6)
}
  0xba   : > { %s10710_s0 = smov 4   ;;  %s10711_s3 = smov 64  }
  0xbb   : > { %7734 = dma.hbm_to_vmem [thread:$0]  (%p10706_p0), %s9382_s20, 256, %s9385_s8, %s9330_s1, %s10711_s3, %s10711_s3, %s10710_s0  }
  0xbc   : > { %s668_s2 = scalar_lea.vmem [#allocation11], %s9313_s29  ;;  %s10712_s6 = sld [smem:[#allocation42_spill]] }
  0xbd   : > { %s675_s16 = sshll.u32 %s668_s2, 4  ;;  %s8613_s19 = scalar_lea.hbm %s9391_s17, 16  ;;  %s676_s16 = int_to_ptr.vmem [resolvable:$true] %s675_s16 }
  0xbe   : > { %p8614_p3 = scmp.ne.s32.totalorder %s9391_s17, %s8613_s19  ;;  %s8617_s30 = scalar_lea.hbm %s10709_s5, 32 }
  0xbf   : > { %p8618_p13 = scmp.lt.u32.totalorder %s9391_s17, %s10709_s5  ;;  %p8619_p12 = scmp.lt.u32.totalorder %s8617_s30, %s8613_s19 }
  0xc0   : > { %p8615_p7 = pnand %p8614_p3, %p10706_p0  ;;  %p8621_p8 = scmp.lt.u32.totalorder %s8613_s19, %s9391_s17 }
  0xc1   : > { %p8620_p4 = por %p8619_p12, %p8618_p13 }
  0xc2   : > { %s9423_s4 = scalar_lea.hbm %s10712_s6, %s9319_s21  ;;  %p8616_p11 = pneg %p8615_p7 }
  0xc3   : > { %p8622_p5 = por %p8621_p8, %p8620_p4 }
  0xc5   : > { %p8623_p9 = pnand %p8622_p5, %p8616_p11 }
  0xc7   : > { %8626 = shalt.err (!%p8623_p9)
}
  0xc8   : > { %s8627_s21 = scalar_lea.vmem %s676_s16, 16  ;;  %s9060_s20 = smov [#allocation11]  }
  0xc9   : > { %p8628_p1 = scmp.ne.s32.totalorder %s676_s16, %s8627_s21  ;;  %s8631_s8 = sshll.u32 %s9060_s20, 4  ;;  %s8632_s8 = int_to_ptr.vmem [resolvable:$false] %s8631_s8 }
  0xca   : > { %s8633_s25 = scalar_lea.vmem %s8632_s8, 32  ;;  %p8634_p6 = scmp.lt.s32.totalorder %s676_s16, %s8632_s8 }
  0xcb   : > { %p8629_p10 = pnand %p8628_p1, %p10706_p0  ;;  %p8635_p3 = scmp.lt.s32.totalorder %s8633_s25, %s8627_s21 }
  0xcd   : > { %p8630_p2 = pneg %p8629_p10  ;;  %p8636_p7 = por %p8635_p3, %p8634_p6 }
  0xcf   : > { %p8637_p12 = pnand %p8636_p7, %p8630_p2 }
  0xd1   : > { %8640 = shalt.err (!%p8637_p12)
}
  0xd2   : > { %7735 = dma.hbm_to_vmem [thread:$0]  (%p10706_p0), %s9391_s17, 16, %s676_s16, %s9330_s1  }
  0xd3   : > { %s686_s14 = scalar_lea.vmem [#allocation12], %s9316_s18  ;;  %s10713_s7 = sld [smem:[#allocation43_spill]] }
  0xd4   : > { %s693_s15 = sshll.u32 %s686_s14, 4  ;;  %s8641_s26 = scalar_lea.hbm %s9423_s4, 256  ;;  %s9444_s15 = int_to_ptr.vmem [resolvable:$true] %s693_s15 }
  0xd5   : > { %p8642_p11 = scmp.ne.s32.totalorder %s9423_s4, %s8641_s26  ;;  %s8645_s21 = scalar_lea.hbm %s10712_s6, 512 }
  0xd6   : > { %p8646_p8 = scmp.lt.u32.totalorder %s9423_s4, %s10712_s6  ;;  %p8647_p5 = scmp.lt.u32.totalorder %s8645_s21, %s8641_s26 }
  0xd7   : > { %p8643_p13 = pnand %p8642_p11, %p10706_p0  ;;  %p8649_p1 = scmp.lt.u32.totalorder %s8641_s26, %s9423_s4 }
  0xd8   : > { %p8648_p9 = por %p8647_p5, %p8646_p8 }
  0xd9   : > { %s9450_s23 = scalar_lea.hbm %s10713_s7, %s9358_s27  ;;  %p8644_p4 = pneg %p8643_p13 }
  0xda   : > { %p8650_p10 = por %p8649_p1, %p8648_p9 }
  0xdc   : > { %p8651_p2 = pnand %p8650_p10, %p8644_p4 }
  0xde   : > { %8654 = shalt.err (!%p8651_p2)
}
  0xdf   : > { %s8655_s18 = scalar_lea.vmem %s9444_s15, 256  ;;  %s9061_s16 = smov [#allocation12]  }
  0xe0   : > { %p8656_p6 = scmp.ne.s32.totalorder %s9444_s15, %s8655_s18  ;;  %s8659_s8 = sshll.u32 %s9061_s16, 4  ;;  %s8660_s8 = int_to_ptr.vmem [resolvable:$false] %s8659_s8 }
  0xe1   : > { %s8661_s25 = scalar_lea.vmem %s8660_s8, 512  ;;  %p8662_p12 = scmp.lt.s32.totalorder %s9444_s15, %s8660_s8 }
  0xe2   : > { %p8657_p3 = pnand %p8656_p6, %p10706_p0  ;;  %p8663_p11 = scmp.lt.s32.totalorder %s8661_s25, %s8655_s18 }
  0xe4   : > { %p8658_p7 = pneg %p8657_p3  ;;  %p8664_p13 = por %p8663_p11, %p8662_p12 }
  0xe6   : > { %p8665_p8 = pnand %p8664_p13, %p8658_p7 }
  0xe8   : > { %8668 = shalt.err (!%p8665_p8)
}
  0xe9   : > { %7736 = dma.hbm_to_vmem [thread:$0]  (%p10706_p0), %s9423_s4, 256, %s9444_s15, %s9330_s1, %s10711_s3, %s10711_s3, %s10710_s0  }
  0xea   : > { %s706_s14 = scalar_lea.vmem [#allocation13], %s9313_s29  ;;  %s10714_s9 = sld [smem:[#allocation45_spill]] }
  0xeb   : > { %s713_s30 = sshll.u32 %s706_s14, 4  ;;  %s8669_s22 = scalar_lea.hbm %s9450_s23, 16  ;;  %s714_s30 = int_to_ptr.vmem [resolvable:$true] %s713_s30 }
  0xec   : > { %p8670_p4 = scmp.ne.s32.totalorder %s9450_s23, %s8669_s22  ;;  %s8673_s17 = scalar_lea.hbm %s10713_s7, 32 }
  0xed   : > { %p8674_p1 = scmp.lt.u32.totalorder %s9450_s23, %s10713_s7  ;;  %p8675_p10 = scmp.lt.u32.totalorder %s8673_s17, %s8669_s22 }
  0xee   : > { %p8671_p5 = pnand %p8670_p4, %p10706_p0  ;;  %p8677_p6 = scmp.lt.u32.totalorder %s8669_s22, %s9450_s23 }
  0xef   : > { %p8676_p2 = por %p8675_p10, %p8674_p1 }
  0xf0   : > { %s9482_s19 = scalar_lea.hbm %s10714_s9, %s9358_s27  ;;  %p8672_p9 = pneg %p8671_p5 }
  0xf1   : > { %p8678_p3 = por %p8677_p6, %p8676_p2 }
  0xf3   : > { %p8679_p7 = pnand %p8678_p3, %p8672_p9 }
  0xf5   : > { %8682 = shalt.err (!%p8679_p7)
}
  0xf6   : > { %s8683_s0 = scalar_lea.vmem %s714_s30, 16  ;;  %s9062_s3 = smov [#allocation13]  }
  0xf7   : > { %p8684_p12 = scmp.ne.s32.totalorder %s714_s30, %s8683_s0  ;;  %s8687_s4 = sshll.u32 %s9062_s3, 4  ;;  %s8688_s4 = int_to_ptr.vmem [resolvable:$false] %s8687_s4 }
  0xf8   : > { %s8689_s15 = scalar_lea.vmem %s8688_s4, 32  ;;  %p8690_p8 = scmp.lt.s32.totalorder %s714_s30, %s8688_s4 }
  0xf9   : > { %p8685_p11 = pnand %p8684_p12, %p10706_p0  ;;  %p8691_p4 = scmp.lt.s32.totalorder %s8689_s15, %s8683_s0 }
  0xfb   : > { %p8686_p13 = pneg %p8685_p11  ;;  %p8692_p5 = por %p8691_p4, %p8690_p8 }
  0xfd   : > { %p8693_p1 = pnand %p8692_p5, %p8686_p13 }
  0xff   : > { %8696 = shalt.err (!%p8693_p1)
}
 0x100   : > { %7737 = dma.hbm_to_vmem [thread:$0]  (%p10706_p0), %s9450_s23, 16, %s714_s30, %s9330_s1  }
 0x101   : > { %s731_s8 = scalar_lea.vmem [#allocation14], %s9313_s29  ;;  %s10715_s10 = sld [smem:[#allocation46_spill]] }
 0x102   : > { %s738_s25 = sshll.u32 %s731_s8, 4  ;;  %s8697_s22 = scalar_lea.hbm %s9482_s19, 16  ;;  %s739_s25 = int_to_ptr.vmem [resolvable:$true] %s738_s25 }
 0x103   : > { %p8698_p9 = scmp.ne.s32.totalorder %s9482_s19, %s8697_s22  ;;  %s8701_s17 = scalar_lea.hbm %s10714_s9, 32 }
 0x104   : > { %p8702_p6 = scmp.lt.u32.totalorder %s9482_s19, %s10714_s9  ;;  %p8703_p3 = scmp.lt.u32.totalorder %s8701_s17, %s8697_s22 }
 0x105   : > { %p8699_p10 = pnand %p8698_p9, %p10706_p0  ;;  %p8705_p12 = scmp.lt.u32.totalorder %s8697_s22, %s9482_s19 }
 0x106   : > { %p8704_p7 = por %p8703_p3, %p8702_p6 }
 0x107   : > { %s9507_s26 = scalar_lea.hbm %s10715_s10, %s9358_s27  ;;  %p8700_p2 = pneg %p8699_p10 }
 0x108   : > { %p8706_p11 = por %p8705_p12, %p8704_p7 }
 0x10a   : > { %p8707_p13 = pnand %p8706_p11, %p8700_p2 }
 0x10c   : > { %8710 = shalt.err (!%p8707_p13)
}
 0x10d   : > { %s8711_s23 = scalar_lea.vmem %s739_s25, 16  ;;  %s9063_s30 = smov [#allocation14]  }
 0x10e   : > { %p8712_p8 = scmp.ne.s32.totalorder %s739_s25, %s8711_s23  ;;  %s8715_s0 = sshll.u32 %s9063_s30, 4  ;;  %s8716_s0 = int_to_ptr.vmem [resolvable:$false] %s8715_s0 }
 0x10f   : > { %s8717_s3 = scalar_lea.vmem %s8716_s0, 32  ;;  %p8718_p1 = scmp.lt.s32.totalorder %s739_s25, %s8716_s0 }
 0x110   : > { %p8713_p4 = pnand %p8712_p8, %p10706_p0  ;;  %p8719_p9 = scmp.lt.s32.totalorder %s8717_s3, %s8711_s23 }
 0x112   : > { %p8714_p5 = pneg %p8713_p4  ;;  %p8720_p10 = por %p8719_p9, %p8718_p1 }
 0x114   : > { %p8721_p3 = pnand %p8720_p10, %p8714_p5 }
 0x116   : > { %8724 = shalt.err (!%p8721_p3)
}
 0x117   : > { %7738 = dma.hbm_to_vmem [thread:$0]  (%p10706_p0), %s9482_s19, 16, %s739_s25, %s9330_s1  }
 0x118   : > { %s748_s4 = scalar_lea.vmem [#allocation15], %s9313_s29  ;;  %s10716_s11 = sld [smem:[#allocation47_spill]] }
 0x119   : > { %s755_s15 = sshll.u32 %s748_s4, 4  ;;  %s8725_s22 = scalar_lea.hbm %s9507_s26, 16  ;;  %s756_s15 = int_to_ptr.vmem [resolvable:$true] %s755_s15 }
 0x11a   : > { %p8726_p2 = scmp.ne.s32.totalorder %s9507_s26, %s8725_s22  ;;  %s8729_s17 = scalar_lea.hbm %s10715_s10, 32 }
 0x11b   : > { %p8730_p12 = scmp.lt.u32.totalorder %s9507_s26, %s10715_s10  ;;  %p8731_p11 = scmp.lt.u32.totalorder %s8729_s17, %s8725_s22 }
 0x11c   : > { %p8727_p6 = pnand %p8726_p2, %p10706_p0  ;;  %p8733_p8 = scmp.lt.u32.totalorder %s8725_s22, %s9507_s26 }
 0x11d   : > { %p8732_p13 = por %p8731_p11, %p8730_p12 }
 0x11e   : > { %s9532_s2 = scalar_lea.hbm %s10716_s11, %s9358_s27  ;;  %p8728_p7 = pneg %p8727_p6 }
 0x11f   : > { %p8734_p4 = por %p8733_p8, %p8732_p13 }
 0x121   : > { %p8735_p5 = pnand %p8734_p4, %p8728_p7 }
 0x123   : > { %8738 = shalt.err (!%p8735_p5)
}
 0x124   : > { %s8739_s19 = scalar_lea.vmem %s756_s15, 16  ;;  %s9064_s25 = smov [#allocation15]  }
 0x125   : > { %p8740_p1 = scmp.ne.s32.totalorder %s756_s15, %s8739_s19  ;;  %s8743_s23 = sshll.u32 %s9064_s25, 4  ;;  %s8744_s23 = int_to_ptr.vmem [resolvable:$false] %s8743_s23 }
 0x126   : > { %s8745_s30 = scalar_lea.vmem %s8744_s23, 32  ;;  %p8746_p3 = scmp.lt.s32.totalorder %s756_s15, %s8744_s23 }
 0x127   : > { %p8741_p9 = pnand %p8740_p1, %p10706_p0  ;;  %p8747_p2 = scmp.lt.s32.totalorder %s8745_s30, %s8739_s19 }
 0x129   : > { %p8742_p10 = pneg %p8741_p9  ;;  %p8748_p6 = por %p8747_p2, %p8746_p3 }
 0x12b   : > { %p8749_p11 = pnand %p8748_p6, %p8742_p10 }
 0x12d   : > { %8752 = shalt.err (!%p8749_p11)
}
 0x12e   : > { %7739 = dma.hbm_to_vmem [thread:$0]  (%p10706_p0), %s9507_s26, 16, %s756_s15, %s9330_s1  }
 0x12f   : > { %s765_s0 = scalar_lea.vmem [#allocation16], %s9313_s29  ;;  %s10717_s12 = sld [smem:[#allocation48_spill]] }
 0x130   : > { %s772_s3 = sshll.u32 %s765_s0, 4  ;;  %s8753_s22 = scalar_lea.hbm %s9532_s2, 16  ;;  %s773_s3 = int_to_ptr.vmem [resolvable:$true] %s772_s3 }
 0x131   : > { %p8754_p7 = scmp.ne.s32.totalorder %s9532_s2, %s8753_s22  ;;  %s8757_s17 = scalar_lea.hbm %s10716_s11, 32 }
 0x132   : > { %p8758_p8 = scmp.lt.u32.totalorder %s9532_s2, %s10716_s11  ;;  %p8759_p4 = scmp.lt.u32.totalorder %s8757_s17, %s8753_s22 }
 0x133   : > { %p8755_p12 = pnand %p8754_p7, %p10706_p0  ;;  %p8761_p1 = scmp.lt.u32.totalorder %s8753_s22, %s9532_s2 }
 0x134   : > { %p8760_p5 = por %p8759_p4, %p8758_p8 }
 0x135   : > { %s9557_s14 = scalar_lea.hbm %s10717_s12, %s9358_s27  ;;  %p8756_p13 = pneg %p8755_p12 }
 0x136   : > { %p8762_p9 = por %p8761_p1, %p8760_p5 }
 0x138   : > { %p8763_p10 = pnand %p8762_p9, %p8756_p13 }
 0x13a   : > { %8766 = shalt.err (!%p8763_p10)
}
 0x13b   : > { %s8767_s26 = scalar_lea.vmem %s773_s3, 16  ;;  %s9065_s15 = smov [#allocation16]  }
 0x13c   : > { %p8768_p3 = scmp.ne.s32.totalorder %s773_s3, %s8767_s26  ;;  %s8771_s19 = sshll.u32 %s9065_s15, 4  ;;  %s8772_s19 = int_to_ptr.vmem [resolvable:$false] %s8771_s19 }
 0x13d   : > { %s8773_s25 = scalar_lea.vmem %s8772_s19, 32  ;;  %p8774_p11 = scmp.lt.s32.totalorder %s773_s3, %s8772_s19 }
 0x13e   : > { %p8769_p2 = pnand %p8768_p3, %p10706_p0  ;;  %p8775_p7 = scmp.lt.s32.totalorder %s8773_s25, %s8767_s26 }
 0x140   : > { %p8770_p6 = pneg %p8769_p2  ;;  %p8776_p12 = por %p8775_p7, %p8774_p11 }
 0x142   : > { %p8777_p4 = pnand %p8776_p12, %p8770_p6 }
 0x144   : > { %8780 = shalt.err (!%p8777_p4)
}
 0x145   : > { %7740 = dma.hbm_to_vmem [thread:$0]  (%p10706_p0), %s9532_s2, 16, %s773_s3, %s9330_s1  }
 0x146   : > { %s782_s23 = scalar_lea.vmem [#allocation17], %s9313_s29  ;;  %s10718_s13 = sld [smem:[#allocation49_spill]] }
 0x147   : > { %s789_s30 = sshll.u32 %s782_s23, 4  ;;  %s8781_s22 = scalar_lea.hbm %s9557_s14, 16  ;;  %s790_s30 = int_to_ptr.vmem [resolvable:$true] %s789_s30 }
 0x148   : > { %p8782_p13 = scmp.ne.s32.totalorder %s9557_s14, %s8781_s22  ;;  %s8785_s17 = scalar_lea.hbm %s10717_s12, 32 }
 0x149   : > { %p8786_p1 = scmp.lt.u32.totalorder %s9557_s14, %s10717_s12  ;;  %p8787_p9 = scmp.lt.u32.totalorder %s8785_s17, %s8781_s22 }
 0x14a   : > { %p8783_p8 = pnand %p8782_p13, %p10706_p0  ;;  %p8789_p3 = scmp.lt.u32.totalorder %s8781_s22, %s9557_s14 }
 0x14b   : > { %p8788_p10 = por %p8787_p9, %p8786_p1 }
 0x14c   : > { %s9582_s8 = scalar_lea.hbm %s10718_s13, %s9358_s27  ;;  %p8784_p5 = pneg %p8783_p8 }
 0x14d   : > { %p8790_p2 = por %p8789_p3, %p8788_p10 }
 0x14f   : > { %p8791_p6 = pnand %p8790_p2, %p8784_p5 }
 0x151   : > { %8794 = shalt.err (!%p8791_p6)
}
 0x152   : > { %s8795_s2 = scalar_lea.vmem %s790_s30, 16  ;;  %s9066_s3 = smov [#allocation17]  }
 0x153   : > { %p8796_p11 = scmp.ne.s32.totalorder %s790_s30, %s8795_s2  ;;  %s8799_s26 = sshll.u32 %s9066_s3, 4  ;;  %s8800_s26 = int_to_ptr.vmem [resolvable:$false] %s8799_s26 }
 0x154   : > { %s8801_s15 = scalar_lea.vmem %s8800_s26, 32  ;;  %p8802_p4 = scmp.lt.s32.totalorder %s790_s30, %s8800_s26 }
 0x155   : > { %p8797_p7 = pnand %p8796_p11, %p10706_p0  ;;  %p8803_p13 = scmp.lt.s32.totalorder %s8801_s15, %s8795_s2 }
 0x157   : > { %p8798_p12 = pneg %p8797_p7  ;;  %p8804_p8 = por %p8803_p13, %p8802_p4 }
 0x159   : > { %p8805_p1 = pnand %p8804_p8, %p8798_p12 }
 0x15b   : > { %8808 = shalt.err (!%p8805_p1)
}
 0x15c   : > { %7741 = dma.hbm_to_vmem [thread:$0]  (%p10706_p0), %s9557_s14, 16, %s790_s30, %s9330_s1  }
 0x15d   : > { %s799_s19 = scalar_lea.vmem [#allocation18], %s9313_s29  ;;  %s7715_s23 = smul.u32 1920, %s9313_s29 }
 0x15e   : > { %s806_s25 = sshll.u32 %s799_s19, 4  ;;  %s7716_s0 = smul.u32 30720, %s9049_s24  ;;  %s807_s25 = int_to_ptr.vmem [resolvable:$true] %s806_s25 }
 0x15f   : > { %s8809_s4 = scalar_lea.hbm %s9582_s8, 16  ;;  %s8813_s20 = scalar_lea.hbm %s10718_s13, 32 }
 0x160   : > { %p8810_p5 = scmp.ne.s32.totalorder %s9582_s8, %s8809_s4  ;;  %p8814_p3 = scmp.lt.u32.totalorder %s9582_s8, %s10718_s13 }
 0x161   : > { %p8815_p2 = scmp.lt.u32.totalorder %s8813_s20, %s8809_s4  ;;  %p8817_p11 = scmp.lt.u32.totalorder %s8809_s4, %s9582_s8 }
 0x162   : > { %p8811_p9 = pnand %p8810_p5, %p10706_p0 }
 0x163   : > { %p8816_p6 = por %p8815_p2, %p8814_p3 }
 0x164   : > { %p8812_p10 = pneg %p8811_p9 }
 0x165   : > { %p8818_p7 = por %p8817_p11, %p8816_p6 }
 0x167   : > { %p8819_p12 = pnand %p8818_p7, %p8812_p10 }
 0x169   : > { %8822 = shalt.err (!%p8819_p12)
}
 0x16a   : > { %s8823_s14 = scalar_lea.vmem %s807_s25, 16  ;;  %s9067_s30 = smov [#allocation18]  }
 0x16b   : > { %p8824_p4 = scmp.ne.s32.totalorder %s807_s25, %s8823_s14  ;;  %s8827_s16 = sshll.u32 %s9067_s30, 4  ;;  %s8828_s16 = int_to_ptr.vmem [resolvable:$false] %s8827_s16 }
 0x16c   : > { %s8829_s2 = scalar_lea.vmem %s8828_s16, 32  ;;  %p8830_p1 = scmp.lt.s32.totalorder %s807_s25, %s8828_s16 }
 0x16d   : > { %p8825_p13 = pnand %p8824_p4, %p10706_p0  ;;  %p8831_p5 = scmp.lt.s32.totalorder %s8829_s2, %s8823_s14 }
 0x16f   : > { %p8826_p8 = pneg %p8825_p13  ;;  %p8832_p9 = por %p8831_p5, %p8830_p1 }
 0x171   : > { %p8833_p2 = pnand %p8832_p9, %p8826_p8 }
 0x173   : > { %8836 = shalt.err (!%p8833_p2)
}
 0x174   : > { %7742 = dma.hbm_to_vmem [thread:$0]  (%p10706_p0), %s9582_s8, 16, %s807_s25, %s9330_s1  }
 0x175   : > { %s10719_s15 = sld [smem:[#allocation50_spill]]  ;;  %s817_s4 = scalar_lea.vmem [#allocation19], %s7715_s23 }
 0x176   : > { %s824_s22 = sshll.u32 %s817_s4, 4  ;;  %s9630_s22 = int_to_ptr.vmem [resolvable:$true] %s824_s22 }
 0x17b   : > { %s9626_s19 = scalar_lea.hbm %s10719_s15, %s7716_s0  ;;  %s8841_s20 = scalar_lea.hbm %s10719_s15, 61440 }
 0x17c   : > { %s8837_s21 = scalar_lea.hbm %s9626_s19, 30720  ;;  %p8842_p11 = scmp.lt.u32.totalorder %s9626_s19, %s10719_s15 }
 0x17d   : > { %p8838_p10 = scmp.ne.s32.totalorder %s9626_s19, %s8837_s21  ;;  %p8843_p7 = scmp.lt.u32.totalorder %s8841_s20, %s8837_s21 }
 0x17e   : > { %p8845_p4 = scmp.lt.u32.totalorder %s8837_s21, %s9626_s19 }
 0x17f   : > { %p8839_p3 = pnand %p8838_p10, %p10706_p0  ;;  %p8844_p12 = por %p8843_p7, %p8842_p11 }
 0x181   : > { %p8840_p6 = pneg %p8839_p3  ;;  %p8846_p13 = por %p8845_p4, %p8844_p12 }
 0x183   : > { %p8847_p8 = pnand %p8846_p13, %p8840_p6 }
 0x185   : > { %8850 = shalt.err (!%p8847_p8)
}
 0x186   : > { %s8851_s23 = scalar_lea.vmem %s9630_s22, 30720  ;;  %s9068_s18 = smov [#allocation19]  }
 0x187   : > { %p8852_p1 = scmp.ne.s32.totalorder %s9630_s22, %s8851_s23  ;;  %s8855_s14 = sshll.u32 %s9068_s18, 4  ;;  %s8856_s14 = int_to_ptr.vmem [resolvable:$false] %s8855_s14 }
 0x188   : > { %s8857_s30 = scalar_lea.vmem %s8856_s14, 61440  ;;  %p8858_p2 = scmp.lt.s32.totalorder %s9630_s22, %s8856_s14 }
 0x189   : > { %p8853_p5 = pnand %p8852_p1, %p10706_p0  ;;  %p8859_p10 = scmp.lt.s32.totalorder %s8857_s30, %s8851_s23 }
 0x18b   : > { %p8854_p9 = pneg %p8853_p5  ;;  %p8860_p3 = por %p8859_p10, %p8858_p2 }
 0x18d   : > { %p8861_p11 = pnand %p8860_p3, %p8854_p9 }
 0x18f   : > { %8864 = shalt.err (!%p8861_p11)
}
 0x190   : > { %s9069_s16 = smov 384   ;;  %s9070_s2 = smov 24  }
 0x191   : > { %7743 = dma.hbm_to_vmem [thread:$0]  (%p10706_p0), %s9626_s19, 30720, %s9630_s22, %s9330_s1, %s9069_s16, %s9069_s16, %s9070_s2  }
 0x192   : > { %s7717_s3 = smul.u32 6, %s9313_s29  ;;  %s10720_s25 = sld [smem:[#allocation51_spill]] }
 0x193   : > { %s7718_s26 = smul.u32 96, %s9049_s24 }
 0x194   : > { %s7719_s4 = smul.u32 1152, %s9313_s29  ;;  %s838_s0 = scalar_lea.vmem [#allocation20], %s7717_s3 }
 0x195   : > { %s846_s17 = sshll.u32 %s838_s0, 4  ;;  %s847_s17 = int_to_ptr.vmem [resolvable:$true] %s846_s17 }
 0x198   : > { %s9660_s20 = scalar_lea.hbm %s10720_s25, %s7718_s26  ;;  %s8869_s18 = scalar_lea.hbm %s10720_s25, 192 }
 0x199   : > { %s8865_s23 = scalar_lea.hbm %s9660_s20, 96  ;;  %p8870_p4 = scmp.lt.u32.totalorder %s9660_s20, %s10720_s25 }
 0x19a   : > { %p8866_p6 = scmp.ne.s32.totalorder %s9660_s20, %s8865_s23  ;;  %p8871_p13 = scmp.lt.u32.totalorder %s8869_s18, %s8865_s23 }
 0x19b   : > { %p8873_p1 = scmp.lt.u32.totalorder %s8865_s23, %s9660_s20 }
 0x19c   : > { %p8867_p7 = pnand %p8866_p6, %p10706_p0  ;;  %p8872_p8 = por %p8871_p13, %p8870_p4 }
 0x19e   : > { %p8868_p12 = pneg %p8867_p7  ;;  %p8874_p5 = por %p8873_p1, %p8872_p8 }
 0x1a0   : > { %p8875_p9 = pnand %p8874_p5, %p8868_p12 }
 0x1a2   : > { %8878 = shalt.err (!%p8875_p9)
}
 0x1a3   : > { %s8879_s16 = scalar_lea.vmem %s847_s17, 96  ;;  %s9071_s2 = smov [#allocation20]  }
 0x1a4   : > { %p8880_p2 = scmp.ne.s32.totalorder %s847_s17, %s8879_s16  ;;  %s8883_s3 = sshll.u32 %s9071_s2, 4  ;;  %s8884_s3 = int_to_ptr.vmem [resolvable:$false] %s8883_s3 }
 0x1a5   : > { %s8885_s26 = scalar_lea.vmem %s8884_s3, 192  ;;  %p8886_p11 = scmp.lt.s32.totalorder %s847_s17, %s8884_s3 }
 0x1a6   : > { %p8881_p10 = pnand %p8880_p2, %p10706_p0  ;;  %p8887_p6 = scmp.lt.s32.totalorder %s8885_s26, %s8879_s16 }
 0x1a8   : > { %p8882_p3 = pneg %p8881_p10  ;;  %p8888_p7 = por %p8887_p6, %p8886_p11 }
 0x1aa   : > { %p8889_p4 = pnand %p8888_p7, %p8882_p3 }
 0x1ac   : > { %8892 = shalt.err (!%p8889_p4)
}
 0x1ad   : > { %7744 = dma.hbm_to_vmem [thread:$0]  (%p10706_p0), %s9660_s20, 96, %s847_s17, %s9330_s1  }
 0x1ae   : > { %s7720_s21 = smul.u32 18432, %s9049_s24  ;;  %s857_s8 = scalar_lea.vmem [#allocation21], %s7719_s4 }
 0x1af   : > { %s864_s0 = sshll.u32 %s857_s8, 4  ;;  %s7721_s23 = smul.u32 3, %s9313_s29  ;;  %s9683_s0 = int_to_ptr.vmem [resolvable:$true] %s864_s0 }
 0x1b0   : > { %s10721_s18 = sld [smem:[#allocation52_spill]]  ;;  %s7722_s30 = smul.u32 48, %s9049_s24 }
 0x1b6   : > { %s9689_s14 = scalar_lea.hbm %s10721_s18, %s7720_s21  ;;  %s8897_s17 = scalar_lea.hbm %s10721_s18, 36864 }
 0x1b7   : > { %s8893_s16 = scalar_lea.hbm %s9689_s14, 18432  ;;  %p8898_p1 = scmp.lt.u32.totalorder %s9689_s14, %s10721_s18 }
 0x1b8   : > { %p8894_p12 = scmp.ne.s32.totalorder %s9689_s14, %s8893_s16  ;;  %p8899_p5 = scmp.lt.u32.totalorder %s8897_s17, %s8893_s16 }
 0x1b9   : > { %p8901_p2 = scmp.lt.u32.totalorder %s8893_s16, %s9689_s14 }
 0x1ba   : > { %p8895_p13 = pnand %p8894_p12, %p10706_p0  ;;  %p8900_p9 = por %p8899_p5, %p8898_p1 }
 0x1bc   : > { %p8896_p8 = pneg %p8895_p13  ;;  %p8902_p10 = por %p8901_p2, %p8900_p9 }
 0x1be   : > { %p8903_p3 = pnand %p8902_p10, %p8896_p8 }
 0x1c0   : > { %8906 = shalt.err (!%p8903_p3)
}
 0x1c1   : > { %s8907_s26 = scalar_lea.vmem %s9683_s0, 18432  ;;  %s9072_s21 = smov [#allocation21]  }
 0x1c2   : > { %p8908_p11 = scmp.ne.s32.totalorder %s9683_s0, %s8907_s26  ;;  %s8911_s8 = sshll.u32 %s9072_s21, 4  ;;  %s8912_s8 = int_to_ptr.vmem [resolvable:$false] %s8911_s8 }
 0x1c3   : > { %s8913_s19 = scalar_lea.vmem %s8912_s8, 36864  ;;  %p8914_p4 = scmp.lt.s32.totalorder %s9683_s0, %s8912_s8 }
 0x1c4   : > { %p8909_p6 = pnand %p8908_p11, %p10706_p0  ;;  %p8915_p12 = scmp.lt.s32.totalorder %s8913_s19, %s8907_s26 }
 0x1c6   : > { %p8910_p7 = pneg %p8909_p6  ;;  %p8916_p13 = por %p8915_p12, %p8914_p4 }
 0x1c8   : > { %p8917_p1 = pnand %p8916_p13, %p8910_p7 }
 0x1ca   : > { %8920 = shalt.err (!%p8917_p1)
}
 0x1cb   : > { %s9073_s22 = smov 192   ;;  %s9074_s16 = smov 12  }
 0x1cc   : > { %7745 = dma.hbm_to_vmem [thread:$0]  (%p10706_p0), %s9689_s14, 18432, %s9683_s0, %s9330_s1, %s9073_s22, %s9073_s22, %s9074_s16  }
 0x1cd   : > { %s10722_s17 = sld [smem:[#allocation53_spill]]  ;;  %s878_s3 = scalar_lea.vmem [#allocation22], %s7721_s23 }
 0x1ce   : > { %s886_s26 = sshll.u32 %s878_s3, 4  ;;  %s10723_s19 = sld [smem:[#allocation55_spill]]  ;;  %s887_s26 = int_to_ptr.vmem [resolvable:$true] %s886_s26 }
 0x1d3   : > { %s9719_s2 = scalar_lea.hbm %s10722_s17, %s7722_s30  ;;  %s8925_s30 = scalar_lea.hbm %s10722_s17, 96 }
 0x1d4   : > { %s9727_s5 = scalar_lea.hbm %s10723_s19, %s9358_s27  ;;  %s8921_s0 = scalar_lea.hbm %s9719_s2, 48 }
 0x1d5   : > { %p8922_p8 = scmp.ne.s32.totalorder %s9719_s2, %s8921_s0  ;;  %p8926_p2 = scmp.lt.u32.totalorder %s9719_s2, %s10722_s17 }
 0x1d6   : > { %p8927_p10 = scmp.lt.u32.totalorder %s8925_s30, %s8921_s0  ;;  %p8929_p11 = scmp.lt.u32.totalorder %s8921_s0, %s9719_s2 }
 0x1d7   : > { %p8923_p5 = pnand %p8922_p8, %p10706_p0 }
 0x1d8   : > { %p8928_p3 = por %p8927_p10, %p8926_p2 }
 0x1d9   : > { %p8924_p9 = pneg %p8923_p5 }
 0x1da   : > { %p8930_p6 = por %p8929_p11, %p8928_p3 }
 0x1dc   : > { %p8931_p7 = pnand %p8930_p6, %p8924_p9 }
 0x1de   : > { %8934 = shalt.err (!%p8931_p7)
}
 0x1df   : > { %s8935_s27 = scalar_lea.vmem %s887_s26, 48  ;;  %s9075_s23 = smov [#allocation22]  }
 0x1e0   : > { %p8936_p4 = scmp.ne.s32.totalorder %s887_s26, %s8935_s27  ;;  %s8939_s4 = sshll.u32 %s9075_s23, 4  ;;  %s8940_s4 = int_to_ptr.vmem [resolvable:$false] %s8939_s4 }
 0x1e1   : > { %s8941_s20 = scalar_lea.vmem %s8940_s4, 96  ;;  %p8942_p1 = scmp.lt.s32.totalorder %s887_s26, %s8940_s4 }
 0x1e2   : > { %p8937_p12 = pnand %p8936_p4, %p10706_p0  ;;  %p8943_p8 = scmp.lt.s32.totalorder %s8941_s20, %s8935_s27 }
 0x1e4   : > { %p8938_p13 = pneg %p8937_p12  ;;  %p8944_p5 = por %p8943_p8, %p8942_p1 }
 0x1e6   : > { %p8945_p2 = pnand %p8944_p5, %p8938_p13 }
 0x1e8   : > { %8948 = shalt.err (!%p8945_p2)
}
 0x1e9   : > { %7746 = dma.hbm_to_vmem [thread:$0]  (%p10706_p0), %s9719_s2, 48, %s887_s26, %s9330_s1  }
 0x1ea   : > { %s904_s3 = scalar_lea.vmem [#allocation23], %s9313_s29  ;;  %s8949_s8 = scalar_lea.hbm %s9727_s5, 16 }
 0x1eb   : > { %s911_s21 = sshll.u32 %s904_s3, 4  ;;  %p8950_p9 = scmp.ne.s32.totalorder %s9727_s5, %s8949_s8  ;;  %s912_s21 = int_to_ptr.vmem [resolvable:$true] %s911_s21 }
 0x1ec   : > { %s8953_s14 = scalar_lea.hbm %s10723_s19, 32  ;;  %p8954_p11 = scmp.lt.u32.totalorder %s9727_s5, %s10723_s19 }
 0x1ed   : > { %p8951_p10 = pnand %p8950_p9, %p10706_p0  ;;  %p8955_p6 = scmp.lt.u32.totalorder %s8953_s14, %s8949_s8 }
 0x1ee   : > { %p8957_p4 = scmp.lt.u32.totalorder %s8949_s8, %s9727_s5 }
 0x1ef   : > { %p8952_p3 = pneg %p8951_p10  ;;  %p8956_p7 = por %p8955_p6, %p8954_p11 }
 0x1f1   : > { %p8958_p12 = por %p8957_p4, %p8956_p7 }
 0x1f3   : > { %p8959_p13 = pnand %p8958_p12, %p8952_p3 }
 0x1f5   : > { %8962 = shalt.err (!%p8959_p13)
}
 0x1f6   : > { %s8963_s29 = scalar_lea.vmem %s912_s21, 16  ;;  %s9076_s2 = smov [#allocation23]  }
 0x1f7   : > { %p8964_p1 = scmp.ne.s32.totalorder %s912_s21, %s8963_s29  ;;  %s8967_s26 = sshll.u32 %s9076_s2, 4  ;;  %s8968_s26 = int_to_ptr.vmem [resolvable:$false] %s8967_s26 }
 0x1f8   : > { %s8969_s16 = scalar_lea.vmem %s8968_s26, 32  ;;  %p8970_p2 = scmp.lt.s32.totalorder %s912_s21, %s8968_s26 }
 0x1f9   : > { %p8965_p8 = pnand %p8964_p1, %p10706_p0  ;;  %p8971_p9 = scmp.lt.s32.totalorder %s8969_s16, %s8963_s29 }
 0x1fb   : > { %p8966_p5 = pneg %p8965_p8  ;;  %p8972_p10 = por %p8971_p9, %p8970_p2 }
 0x1fd   : > { %p8973_p6 = pnand %p8972_p10, %p8966_p5 }
 0x1ff   : > { %8976 = shalt.err (!%p8973_p6)
}
 0x200   : > { %7747 = dma.hbm_to_vmem [thread:$0]  (%p10706_p0), %s9727_s5, 16, %s912_s21, %s9330_s1  }
 0x201 PF: > { %s10724_s27 = sld [smem:[#allocation35_spill]] }
 0x207   : > { %p10725_p3 = scmp.ne.s32.totalorder %s10724_s27, 0 }
 0x208   : > { %s10726_s23 = sld [smem:[#allocation31_spill]] (!%p10725_p3) }
 0x209   : > { %920 = sbr.rel (%p10725_p3) target bundleno = 5284 (0x14a4), region = 100 }
 0x20e   : > { %p10727_p11 = scmp.eq.s32.totalorder (!%p10725_p3), %s10726_s23, 0 }
 0x210   : > { %9020 = dma.done.wait (%p10727_p11), [#allocation4], 256   ;;  %p10728_p7 = pmov %p10727_p11 }
 0x212   : > { %9022 = vsyncadd (%p10728_p7), [#allocation4], 4294967040  ;;  %p10729_p4 = pmov %p10728_p7 }
 0x214   : > { %9024 = dma.done.wait (%p10729_p4), [#allocation7], 160   ;;  %p10730_p12 = pmov %p10729_p4 }
 0x215   : > { %s10731_s28 = sld [smem:[#allocation29_spill]]  ;;  %s10732_s4 = sld [smem:[#allocation34_spill]] }
 0x216   : > { %9026 = vsyncadd (%p10730_p12), [#allocation7], 4294967136  ;;  %s930_s5 = sand.u32 1, %s10726_s23  }
 0x217   : > { %s931_s3 = scalar_lea.sflag [#allocation4], %s930_s5 }
 0x21b   : > { %s9778_s1 = sand.u32 1, %s10731_s28   ;;  %p10733_p0 = scmp.ne.s32.totalorder %s10732_s4, 0 }
 0x21c   : > { %s9781_s20 = sshll.u32 %s9778_s1, 4 }
 0x21d   : > { %9028 = dma.done.wait (%p10733_p0), %s931_s3, 50208  }
 0x21e   : > { %9030 = vsyncadd (%p10733_p0), %s931_s3, 4294917088  ;;  %s7723_s8 = smul.u32 1920, %s9778_s1  ;;  %p1188_p13 = scmp.lt.s32.totalorder %s10726_s23, 1 }
 0x21f   : > { %s7724_s0 = smul.u32 6, %s9778_s1  ;;  %s10734_s16 = sld [smem:[#allocation44_spill]] }
 0x220   : > { %s7725_s24 = smul.u32 1152, %s9778_s1  ;;  %s10735_s5 = sld [smem:[#allocation54_spill]] }
 0x221   : > { %s7726_s14 = smul.u32 3, %s9778_s1  ;;  %s942_s21 = scalar_lea.vmem [#allocation9], %s9778_s1 }
 0x222   : > { %s1189_s30 = scalar_select %p1188_p13, %s10726_s23, 1 }
 0x223   : > { %s9806_s6 = scalar_lea.vmem [#allocation10], %s9781_s20  ;;  %s959_s7 = scalar_lea.vmem [#allocation11], %s9778_s1 }
 0x224   : > { %s7374_s22 = sshll.u32 %s1189_s30, 5  ;;  %s7727_s29 = smul.u32 192, %s1189_s30 }
 0x225   : > { %s9797_s27 = scalar_lea.vmem %s10734_s16, %s7374_s22  ;;  %s968_s9 = scalar_lea.vmem [#allocation12], %s9781_s20 }
 0x226   : > { %s9802_s3 = scalar_lea.vmem %s10735_s5, %s7727_s29  ;;  %s976_s10 = scalar_lea.vmem [#allocation13], %s9778_s1 }
 0x227   : > { %s984_s11 = scalar_lea.vmem [#allocation14], %s9778_s1  ;;  %s992_s12 = scalar_lea.vmem [#allocation15], %s9778_s1 }
 0x228   : > { %s1000_s30 = scalar_lea.vmem [#allocation16], %s9778_s1  ;;  %s1008_s13 = scalar_lea.vmem [#allocation17], %s9778_s1 }
 0x229   : > { %s1016_s15 = scalar_lea.vmem [#allocation18], %s9778_s1  ;;  %s9816_s2 = scalar_lea.vmem [#allocation19], %s7723_s8 }
 0x22a   : > { %s9818_s22 = scalar_lea.vmem [#allocation20], %s7724_s0  ;;  %s9820_s26 = scalar_lea.vmem [#allocation21], %s7725_s24 }
 0x22b   : > { %s9822_s16 = scalar_lea.vmem [#allocation22], %s7726_s14  ;;  %s1060_s29 = scalar_lea.vmem [#allocation23], %s9778_s1 }
 0x22c   : > { %p10736_p1 = scmp.ne.s32.totalorder %s10726_s23, 0 }
 0x22d   : > { %v1203_v0 = vld [vmem:[#allocation3] sm:$0xff] (!%p10736_p1)  ;;  %vm1205_vm0 = vcmask (!%p10736_p1), 261120   ;;  %v1204_v1 = vld [vmem:[#allocation3 + $0x8] sm:$0xff] (!%p10736_p1) }
 0x22e   : > { %1202 = sbr.rel (%p10736_p1) target bundleno = 565 (0x235), region = 176  ;;  %1206 = vst.msk [vmem:[#allocation2] sm:$0xff] (!%p10736_p1), %vm1205_vm0, %v1203_v0  ;;  %1207 = vst.msk [vmem:[#allocation2 + $0x8] sm:$0xff] (!%p10736_p1), %vm1205_vm0, %v1204_v1 }
 0x235 PF: > { %s10737_s28 = scalar_lea.vmem [#allocation8], %s9781_s20  ;;  %v9077_v3 = vmov 0.0   ;;  %vm9078_vm1 = vmmov 0   ;;  %v1208_v5 = vld [vmem:[#allocation2] sm:$0xff]  ;;  %v1209_v6 = vld [vmem:[#allocation2 + $0x8] sm:$0xff]  ;;  %vm1236_vm2 = vcmask 261120  }
 0x236   : > { %v7846_v2 = vld [vmem:[%s10737_s28] sm:$0xff]   ;;  %7523 = vmatprep.subr.bf16.mxu0 %v9077_v3  ;;  %7536 = vmatprep.subr.mxu1 %v9077_v3  ;;  %s10738_s8 = smov %s10737_s28  ;;  %v1212_v7 = vpack.c.bf16 %v1209_v6, %v1208_v5  ;;  %s9079_s23 = smov 96   ;;  %vm1288_vm3 = vcmask 64512   ;;  %vm1949_vm4 = vcmask 1043456   ;;  %vm6396_vm5 = vcmask 523264  }
 0x237   : > { %7524 = vmatpush3.bf16.msra.mxu0 %v7846_v2  ;;  %v7847_v4 = vld [vmem:[%s10738_s8 + $0x8] sm:$0xff]   ;;  %7527 = vmatprep.mubr.msk.bf16.mxu0 %vm9078_vm1, %v9077_v3  ;;  %v6909_v8 = vld [vmem:[%s942_s21] ss:$0 sm:$0xff]  ;;  %s9080_s21 = smov 64   ;;  %s9081_s0 = smov 88  }
 0x238   : > { %7525 = vmatprep.subr.bf16.mxu0 %v9077_v3  ;;  %7538 = vmatprep.mubr.msk.f32.mxu1 %vm9078_vm1, %v9077_v3  ;;  %s9082_s24 = smov 120   ;;  %s9083_s14 = smov 56  }
 0x239   : > { %s9084_s4 = smov 80   ;;  %s9085_s5 = smov 112  }
 0x23a   : > { %s9086_s28 = smov 72   ;;  %s9087_s8 = smov 48  }
 0x23b   : > { %7526 = vmatpush3.bf16.msra.mxu0 %v7847_v4 }
 0x23c   : > { %7531 = vmatprep.subr.mxu0 %v9077_v3 }
 0x23e   : > { %7528 = vmatmul.mubr.msk.bf16.vlgmr.msra.gmra.mrb[0].mxu0 %vm1236_vm2, %v1212_v7  ;;  %v1282_v7 = vld [vmem:[%s9806_s6 + $0x4] sm:$0xf] }
 0x23f   : > { %7533 = vmatprep.mubr.msk.f32.mxu0 %vm9078_vm1, %v9077_v3 }
 0x311   : > { %v1274_v9 = vpop.f32.mrb[0].mxu0 }
 0x312   : > { %v9844_v10 = vadd.f32 %v6909_v8, %v1274_v9  ;;  %v7529_v11 = vpop.f32.mrb[1].mxu0 }
 0x313   : > { %v1277_v12 = vpop.f32.mrb[2].mxu0  ;;  %v1951_v11 = vsel %vm1949_vm4, %v1282_v7, 0 }
 0x314   : > { %1286 = vrot.lane.b32.xlu0 %v9844_v10, %s9079_s23  ;;  %v7530_v13 = vpop.f32.mrb[3].mxu0  ;;  %v9847_v14 = vadd.f32 %v6909_v8, %v1277_v12  ;;  %v1281_v12 = vld [vmem:[%s9806_s6] sm:$0xf] }
 0x318   : > { %1364 = vrot.lane.b32.xlu0 %v9847_v14, %s9079_s23  ;;  %s9088_s23 = smov 104  }
 0x386   : > { %v1287_v15 = vpop.permute.xlu0 %1286 }
 0x387   : > { %7532 = vmatpush3.xpose.msk.msra.mxu0 %vm1288_vm3, %v1287_v15 }
 0x388   : > { %7546 = vmatprep.subr.mxu0 %v9077_v3 }
 0x38a   : > { %7534 = vmatmul.mubr.msk.f32.vlgmr.msra.gmra.mrb[4].mxu0 %vm1288_vm3, %v9844_v10  ;;  %v1365_v16 = vpop.permute.xlu0 %1364 }
 0x38b   : > { %7537 = vmatpush3.xpose.msk.msra.mxu1 %vm1288_vm3, %v1365_v16  ;;  %7548 = vmatprep.mubr.msk.f32.mxu0 %vm9078_vm1, %v9077_v3  ;;  %v1998_v16 = vsel %vm1949_vm4, %v1281_v12, 0 }
 0x38c   : > { %7541 = vmatprep.subr.mxu1 %v9077_v3 }
 0x38e   : > { %7539 = vmatmul.mubr.msk.f32.vlgmr.msra.gmra.mrb[0].mxu1 %vm1288_vm3, %v9847_v14 }
 0x38f   : > { %7543 = vmatprep.mubr.msk.f32.mxu1 %vm9078_vm1, %v9077_v3 }
 0x45d   : > { %v1359_v17 = vpop.f32.mrb[4].mxu0 }
 0x45e   : > { %v7535_v18 = vpop.f32.mrb[5].mxu0  ;;  %v1440_v19 = vsel %vm1288_vm3, %v1359_v17, -inf }
 0x45f   : > { %1441 = vmax.xlane.f32.xlu1 %v1440_v19 }
 0x461   : > { %v1436_v20 = vpop.f32.mrb[0].mxu1 }
 0x462   : > { %v7540_v21 = vpop.f32.mrb[1].mxu1  ;;  %v1443_v22 = vsel %vm1288_vm3, %v1436_v20, -inf }
 0x463   : > { %1444 = vmax.xlane.f32.xlu1 %v1443_v22 }
 0x474   : > { %1462 = vrot.lane.b32.xlu1 %v9844_v10, %s9080_s21 }
 0x478   : > { %1538 = vrot.lane.b32.xlu1 %v9847_v14, %s9080_s21  ;;  %s9089_s21 = smov 40  }
 0x47c   : > { %1617 = vrot.lane.b32.xlu1 %v9844_v10, %s9081_s0 }
 0x480   : > { %1695 = vrot.lane.b32.xlu1 %v9847_v14, %s9081_s0 }
 0x4ec   : > { %v1442_v23 = vpop.xlane.xlu1 %1441 }
 0x4ed   : > { %v1446_v24 = vsub.f32 %v1359_v17, %v1442_v23 }
 0x4ef   : > { %v1448_v25 = vmul.f32 1.442695, %v1446_v24 }
 0x4f0   : > { %v1445_v26 = vpop.xlane.xlu1 %1444 }
 0x4f1   : > { %8431 = vpow2.f32 %v1448_v25  ;;  %v1447_v27 = vsub.f32 %v1436_v20, %v1445_v26 }
 0x4f3   : > { %v1450_v28 = vmul.f32 1.442695, %v1447_v27 }
 0x4f4   : > { %v1463_v29 = vpop.permute.xlu1 %1462 }
 0x4f5   : > { %8433 = vpow2.f32 %v1450_v28  ;;  %7542 = vmatpush3.msra.mxu1 %v1463_v29 }
 0x4f6   : > { %7551 = vmatprep.subr.mxu1 %v9077_v3 }
 0x4f8   : > { %v1539_v30 = vpop.permute.xlu1 %1538 }
 0x4f9   : > { %7547 = vmatpush3.msra.mxu0 %v1539_v30 }
 0x4fa   : > { %7556 = vmatprep.subr.mxu0 %v9077_v3 }
 0x4fb   : > { %v8432_v31 = vpop.eup %8431 }
 0x4fc   : > { %v1452_v32 = vsel %vm1288_vm3, %v8432_v31, 0.0  ;;  %v1618_v35 = vpop.permute.xlu1 %1617 }
 0x4fd   : > { %1453 = vadd.xlane.f32.xlu0 %v1452_v32 }
 0x4ff   : > { %v8434_v33 = vpop.eup %8433 }
 0x500   : > { %v1455_v34 = vsel %vm1288_vm3, %v8434_v33, 0.0  ;;  %v1696_v36 = vpop.permute.xlu1 %1695 }
 0x501   : > { %1456 = vadd.xlane.f32.xlu1 %v1455_v34 }
 0x512   : > { %1693 = vrot.lane.b32.xlu1 %v9847_v14, %s9082_s24 }
 0x513   : > { %1615 = vrot.lane.b32.xlu0 %v9844_v10, %s9082_s24 }
 0x58a   : > { %v1454_v37 = vpop.xlane.xlu0 %1453 }
 0x58b   : > { %8435 = vrcp.f32 %v1454_v37 }
 0x58e   : > { %v1457_v38 = vpop.xlane.xlu1 %1456  ;;  %v1616_v43 = vpop.permute.xlu0 %1615 }
 0x58f   : > { %8437 = vrcp.f32 %v1457_v38 }
 0x592   : > { %v1694_v44 = vpop.permute.xlu1 %1693 }
 0x595   : > { %v8436_v39 = vpop.eup %8435 }
 0x596   : > { %v1459_v40 = vmul.f32 %v8436_v39, %v8432_v31 }
 0x598   : > { %7544 = vmatmul.mubr.msk.f32.vlgmr.msra.gmra.mrb[2].mxu1 %vm1288_vm3, %v1459_v40 }
 0x599   : > { %v8438_v41 = vpop.eup %8437  ;;  %7552 = vmatpush3.xpose.msk.msra.mxu1 %vm1288_vm3, %v1618_v35  ;;  %7553 = vmatprep.mubr.msk.f32.mxu1 %vm9078_vm1, %v9077_v3 }
 0x59a   : > { %v1461_v42 = vmul.f32 %v8438_v41, %v8434_v33  ;;  %7561 = vmatprep.subr.mxu1 %v9077_v3 }
 0x59c   : > { %7549 = vmatmul.mubr.msk.f32.vlgmr.msra.gmra.mrb[6].mxu0 %vm1288_vm3, %v1461_v42  ;;  %7554 = vmatmul.mubr.msk.f32.vlgmr.msra.gmra.mrb[4].mxu1 %vm1288_vm3, %v1616_v43 }
 0x59d   : > { %7557 = vmatpush3.xpose.msk.msra.mxu0 %vm1288_vm3, %v1696_v36  ;;  %7558 = vmatprep.mubr.msk.f32.mxu0 %vm9078_vm1, %v9077_v3 }
 0x59e   : > { %7566 = vmatprep.subr.mxu0 %v9077_v3  ;;  %7563 = vmatprep.mubr.msk.f32.mxu1 %vm9078_vm1, %v9077_v3 }
 0x5a0   : > { %7559 = vmatmul.mubr.msk.f32.vlgmr.msra.gmra.mrb[8].mxu0 %vm1288_vm3, %v1694_v44 }
 0x5a1   : > { %7568 = vmatprep.mubr.msk.f32.mxu0 %vm9078_vm1, %v9077_v3 }
 0x66b   : > { %v9890_v45 = vpop.f32.mrb[2].mxu1 }
 0x66c   : > { %v7545_v46 = vpop.f32.mrb[3].mxu1 }
 0x66f   : > { %v9892_v47 = vpop.f32.mrb[6].mxu0  ;;  %v1689_v48 = vpop.f32.mrb[4].mxu1 }
 0x670   : > { %v1614_v49 = vpack.c.bf16 %v9892_v47, %v9890_v45  ;;  %v7550_v50 = vpop.f32.mrb[7].mxu0  ;;  %v7555_v51 = vpop.f32.mrb[5].mxu1  ;;  %v1771_v52 = vsel %vm1288_vm3, %v1689_v48, -inf }
 0x671   : > { %1772 = vmax.xlane.f32.xlu1 %v1771_v52 }
 0x673   : > { %v1767_v53 = vpop.f32.mrb[8].mxu0 }
 0x674   : > { %v7560_v54 = vpop.f32.mrb[9].mxu0  ;;  %v1774_v55 = vsel %vm1288_vm3, %v1767_v53, -inf }
 0x675   : > { %1775 = vmax.xlane.f32.xlu0 %v1774_v55 }
 0x68b   : > { %1869 = vrot.lane.b32.xlu0 %v9847_v14, %s9083_s14 }
 0x68f   : > { %2043 = vrot.lane.b32.xlu0 %v9844_v10, %s9084_s4 }
 0x6fe   : > { %v1773_v56 = vpop.xlane.xlu1 %1772 }
 0x6ff   : > { %v1777_v57 = vsub.f32 %v1689_v48, %v1773_v56 }
 0x701   : > { %v1779_v58 = vmul.f32 1.442695, %v1777_v57 }
 0x702   : > { %v1776_v59 = vpop.xlane.xlu0 %1775 }
 0x703   : > { %8439 = vpow2.f32 %v1779_v58  ;;  %v1778_v60 = vsub.f32 %v1767_v53, %v1776_v59 }
 0x705   : > { %v1781_v61 = vmul.f32 1.442695, %v1778_v60 }
 0x706   : > { %v1870_v62 = vpop.permute.xlu0 %1869 }
 0x707   : > { %8441 = vpow2.f32 %v1781_v61  ;;  %7567 = vmatpush3.msra.mxu0 %v1870_v62 }
 0x708   : > { %7577 = vmatprep.subr.bf16.mxu0 %v9077_v3 }
 0x70a   : > { %v2044_v24 = vpop.permute.xlu0 %2043 }
 0x70d   : > { %v8440_v63 = vpop.eup %8439 }
 0x70e   : > { %v1783_v0 = vsel %vm1288_vm3, %v8440_v63, 0.0 }
 0x70f   : > { %1784 = vadd.xlane.f32.xlu1 %v1783_v0 }
 0x711   : > { %v8442_v1 = vpop.eup %8441 }
 0x712   : > { %v1786_v2 = vsel %vm1288_vm3, %v8442_v1, 0.0 }
 0x713   : > { %1787 = vadd.xlane.f32.xlu1 %v1786_v2 }
 0x724   : > { %1793 = vrot.lane.b32.xlu1 %v9844_v10, %s9083_s14 }
 0x728   : > { %2121 = vrot.lane.b32.xlu1 %v9847_v14, %s9084_s4 }
 0x72c   : > { %2119 = vrot.lane.b32.xlu1 %v9847_v14, %s9085_s5 }
 0x730   : > { %2041 = vrot.lane.b32.xlu1 %v9844_v10, %s9085_s5 }
 0x734   : > { %2423 = vrot.lane.b32.xlu1 %v9844_v10, %s9086_s28 }
 0x79c   : > { %v1785_v4 = vpop.xlane.xlu1 %1784 }
 0x79d   : > { %8443 = vrcp.f32 %v1785_v4 }
 0x7a0   : > { %v1788_v5 = vpop.xlane.xlu1 %1787 }
 0x7a1   : > { %8445 = vrcp.f32 %v1788_v5 }
 0x7a4   : > { %v1794_v6 = vpop.permute.xlu1 %1793 }
 0x7a5   : > { %7562 = vmatpush3.msra.mxu1 %v1794_v6 }
 0x7a6   : > { %7571 = vmatprep.subr.bf16.mxu1 %v9077_v3 }
 0x7a7   : > { %v8444_v8 = vpop.eup %8443 }
 0x7a8   : > { %v1790_v9 = vmul.f32 %v8444_v8, %v8440_v63  ;;  %v2122_v17 = vpop.permute.xlu1 %2121 }
 0x7aa   : > { %7564 = vmatmul.mubr.msk.f32.vlgmr.msra.gmra.mrb[6].mxu1 %vm1288_vm3, %v1790_v9  ;;  %v1283_v9 = vld [vmem:[%s9806_s6 + $0x8] sm:$0xf] }
 0x7ab   : > { %v8446_v13 = vpop.eup %8445  ;;  %7572 = vmatpush3.bf16.msra.mxu1 %v1951_v11  ;;  %7573 = vmatprep.mubr.msk.bf16.mxu1 %vm9078_vm1, %v9077_v3  ;;  %v2376_v11 = vsel %vm1949_vm4, %v1283_v9, 0  ;;  %v7892_v9 = vld [vmem:[%s9816_s2 + $0x2a4] ss:$24 sps:$4 sm:$0xff]  }
 0x7ac   : > { %v1792_v15 = vmul.f32 %v8446_v13, %v8442_v1  ;;  %7583 = vmatprep.subr.mxu1 %v9077_v3  ;;  %v2120_v18 = vpop.permute.xlu1 %2119 }
 0x7ae   : > { %7569 = vmatmul.mubr.msk.f32.vlgmr.msra.gmra.mrb[10].mxu0 %vm1288_vm3, %v1792_v15 }
 0x7af   : > { %7578 = vmatpush3.bf16.msra.mxu0 %v1998_v16  ;;  %7579 = vmatprep.mubr.msk.bf16.mxu0 %vm9078_vm1, %v9077_v3 }
 0x7b0   : > { %7588 = vmatprep.subr.mxu0 %v9077_v3  ;;  %v2042_v29 = vpop.permute.xlu1 %2041 }
 0x7b2   : > { %7580 = vmatmul.mubr.msk.bf16.vlgmr.msra.gmra.mrb[12].mxu0 %vm1288_vm3, %v1614_v49 }
 0x7b3   : > { %7590 = vmatprep.mubr.msk.f32.mxu0 %vm9078_vm1, %v9077_v3 }
 0x7b4   : > { %v2424_v48 = vpop.permute.xlu1 %2423 }
 0x7b8   : > { %7589 = vmatpush3.xpose.msk.msra.mxu0 %vm1288_vm3, %v2122_v17 }
 0x7b9   : > { %7598 = vmatprep.subr.mxu0 %v9077_v3 }
 0x7bb   : > { %7591 = vmatmul.mubr.msk.f32.vlgmr.msra.gmra.mrb[16].mxu0 %vm1288_vm3, %v2120_v18 }
 0x7bc   : > { %7600 = vmatprep.mubr.msk.f32.mxu0 %vm9078_vm1, %v9077_v3 }
 0x87d   : > { %v1865_v19 = vpop.f32.mrb[6].mxu1 }
 0x87e   : > { %v7565_v20 = vpop.f32.mrb[7].mxu1 }
 0x881   : > { %v1941_v21 = vpop.f32.mrb[10].mxu0 }
 0x882   : > { %v1945_v22 = vpack.c.bf16 %v1941_v21, %v1865_v19  ;;  %v7570_v23 = vpop.f32.mrb[11].mxu0 }
 0x883   : > { %v7850_v23 = vld [vmem:[%s9816_s2 + $0x4] ss:$24 sps:$4 sm:$0xff]  }
 0x884   : > { %7574 = vmatmul.mubr.msk.bf16.vlgmr.msra.gmra.mrb[8].mxu1 %vm1288_vm3, %v1945_v22 }
 0x885   : > { %7584 = vmatpush3.xpose.msk.msra.mxu1 %vm1288_vm3, %v2044_v24  ;;  %v2034_v25 = vpop.f32.mrb[12].mxu0  ;;  %7585 = vmatprep.mubr.msk.f32.mxu1 %vm9078_vm1, %v9077_v3 }
 0x886   : > { %v7581_v26 = vpop.f32.mrb[13].mxu0  ;;  %7593 = vmatprep.subr.mxu1 %v9077_v3 }
 0x887   : > { %v2037_v27 = vpop.f32.mrb[14].mxu0 }
 0x888   : > { %v7582_v28 = vpop.f32.mrb[15].mxu0 }
 0x88c   : > { %7586 = vmatmul.mubr.msk.f32.vlgmr.msra.gmra.mrb[12].mxu1 %vm1288_vm3, %v2042_v29  ;;  %v2816_v29 = vlaneseq }
 0x88d   : > { %7595 = vmatprep.mubr.msk.f32.mxu1 %vm9078_vm1, %v9077_v3 }
 0x88e   : > { %v2193_v30 = vpop.f32.mrb[16].mxu0 }
 0x88f   : > { %v7592_v31 = vpop.f32.mrb[17].mxu0  ;;  %v2200_v32 = vsel %vm1288_vm3, %v2193_v30, -inf }
 0x890   : > { %2201 = vmax.xlane.f32.xlu0 %v2200_v32  ;;  %v9987_v31 = vshrl.u32 %v2816_v29, 7  ;;  %v7913_v29 = vld [vmem:[%s9816_s2 + $0x3f4] ss:$24 sps:$4 sm:$0xff]  }
 0x8a6   : > { %2295 = vrot.lane.b32.xlu0 %v9847_v14, %s9087_s8 }
 0x8aa   : > { %2421 = vrot.lane.b32.xlu0 %v9844_v10, %s9088_s23 }
 0x8ae   : > { %2499 = vrot.lane.b32.xlu0 %v9847_v14, %s9088_s23 }
 0x91d   : > { %v2202_v33 = vpop.xlane.xlu0 %2201 }
 0x91e   : > { %v2204_v34 = vsub.f32 %v2193_v30, %v2202_v33 }
 0x920   : > { %v2207_v35 = vmul.f32 1.442695, %v2204_v34  ;;  %v9992_v34 = vld [vmem:[#allocation6] sm:$0xff] }
 0x921   : > { %v2296_v36 = vpop.permute.xlu0 %2295 }
 0x922   : > { %8447 = vpow2.f32 %v2207_v35  ;;  %7599 = vmatpush3.msra.mxu0 %v2296_v36 }
 0x923   : > { %7609 = vmatprep.subr.mxu0 %v9077_v3 }
 0x925   : > { %v2422_v52 = vpop.permute.xlu0 %2421 }
 0x929   : > { %v2500_v54 = vpop.permute.xlu0 %2499 }
 0x92c   : > { %v8448_v37 = vpop.eup %8447 }
 0x92d   : > { %v2212_v38 = vsel %vm1288_vm3, %v8448_v37, 0.0 }
 0x92e   : > { %2213 = vadd.xlane.f32.xlu1 %v2212_v38 }
 0x93f   : > { %2501 = vrot.lane.b32.xlu1 %v9847_v14, %s9086_s28 }
 0x957   : > { %v1987_v39 = vpop.f32.mrb[8].mxu1 }
 0x958   : > { %v9947_v40 = vadd.f32 %v2034_v25, %v1987_v39  ;;  %v7575_v41 = vpop.f32.mrb[9].mxu1 }
 0x959   : > { %v1990_v42 = vpop.f32.mrb[10].mxu1 }
 0x95a   : > { %v9949_v43 = vadd.f32 %v2037_v27, %v1990_v42  ;;  %v7576_v44 = vpop.f32.mrb[11].mxu1  ;;  %v9090_v27 = vmov 1983009808   ;;  %v7848_v42 = vld [vmem:[%s9816_s2] ss:$24 sps:$4 sm:$0xff]  }
 0x95b   : > { %v2814_v28 = vunpack.c.l.s4 %v9090_v27  ;;  %v7910_v27 = vld [vmem:[%s9816_s2 + $0x3c4] ss:$24 sps:$4 sm:$0xff]  }
 0x95d   : > { %v2815_v30 = vunpack.c.0.s8 %v2814_v28  ;;  %v7908_v28 = vld [vmem:[%s9816_s2 + $0x3c0] ss:$24 sps:$4 sm:$0xff]  }
 0x95f   : > { %v2115_v45 = vpop.f32.mrb[12].mxu1 }
 0x960   : > { %v7587_v46 = vpop.f32.mrb[13].mxu1  ;;  %v2197_v47 = vsel %vm1288_vm3, %v2115_v45, -inf }
 0x961   : > { %v7853_v46 = vld [vmem:[%s9816_s2 + $0x34] ss:$24 sps:$4 sm:$0xff]  }
 0x963   : > { %2198 = vmax.xlane.f32.xlu1 %v2197_v47  ;;  %v7851_v47 = vld [vmem:[%s9816_s2 + $0x30] ss:$24 sps:$4 sm:$0xff]  }
 0x9bb   : > { %v2214_v49 = vpop.xlane.xlu1 %2213 }
 0x9bc   : > { %8449 = vrcp.f32 %v2214_v49  ;;  %v7854_v49 = vld [vmem:[%s9816_s2 + $0x60] ss:$24 sps:$4 sm:$0xff]  }
 0x9bf   : > { %v2502_v53 = vpop.permute.xlu1 %2501 }
 0x9c6   : > { %v8450_v50 = vpop.eup %8449 }
 0x9c7   : > { %v2218_v51 = vmul.f32 %v8450_v50, %v8448_v37  ;;  %v7859_v50 = vld [vmem:[%s9816_s2 + $0x94] ss:$24 sps:$4 sm:$0xff]  }
 0x9c9   : > { %7601 = vmatmul.mubr.msk.f32.vlgmr.msra.gmra.mrb[18].mxu0 %vm1288_vm3, %v2218_v51  ;;  %v7857_v51 = vld [vmem:[%s9816_s2 + $0x90] ss:$24 sps:$4 sm:$0xff]  }
 0x9ca   : > { %7610 = vmatpush3.xpose.msk.msra.mxu0 %vm1288_vm3, %v2424_v48  ;;  %7611 = vmatprep.mubr.msk.f32.mxu0 %vm9078_vm1, %v9077_v3  ;;  %v7856_v48 = vld [vmem:[%s9816_s2 + $0x64] ss:$24 sps:$4 sm:$0xff]  }
 0x9cb   : > { %7614 = vmatprep.subr.mxu0 %v9077_v3 }
 0x9cd   : > { %7612 = vmatmul.mubr.msk.f32.vlgmr.msra.gmra.mrb[20].mxu0 %vm1288_vm3, %v2422_v52  ;;  %v7862_v52 = vld [vmem:[%s9816_s2 + $0xc4] ss:$24 sps:$4 sm:$0xff]  }
 0x9ce   : > { %7615 = vmatpush3.xpose.msk.msra.mxu0 %vm1288_vm3, %v2502_v53  ;;  %7616 = vmatprep.mubr.msk.f32.mxu0 %vm9078_vm1, %v9077_v3  ;;  %v7860_v53 = vld [vmem:[%s9816_s2 + $0xc0] ss:$24 sps:$4 sm:$0xff]  }
 0x9cf   : > { %7624 = vmatprep.subr.mxu0 %v9077_v3 }
 0x9d1   : > { %7617 = vmatmul.mubr.msk.f32.vlgmr.msra.gmra.mrb[22].mxu0 %vm1288_vm3, %v2500_v54  ;;  %v7865_v54 = vld [vmem:[%s9816_s2 + $0xf4] ss:$24 sps:$4 sm:$0xff]  }
 0x9d2   : > { %7626 = vmatprep.mubr.msk.f32.mxu0 %vm9078_vm1, %v9077_v3 }
 0x9f0   : > { %v2199_v55 = vpop.xlane.xlu1 %2198 }
 0x9f1   : > { %v2203_v56 = vsub.f32 %v2115_v45, %v2199_v55  ;;  %v7863_v55 = vld [vmem:[%s9816_s2 + $0xf0] ss:$24 sps:$4 sm:$0xff]  }
 0x9f3   : > { %v2205_v57 = vmul.f32 1.442695, %v2203_v56  ;;  %v7868_v56 = vld [vmem:[%s9816_s2 + $0x124] ss:$24 sps:$4 sm:$0xff]  }
 0x9f5   : > { %8451 = vpow2.f32 %v2205_v57  ;;  %v7866_v57 = vld [vmem:[%s9816_s2 + $0x120] ss:$24 sps:$4 sm:$0xff]  }
 0x9ff   : > { %v8452_v58 = vpop.eup %8451 }
 0xa00   : > { %v2209_v59 = vsel %vm1288_vm3, %v8452_v58, 0.0 }
 0xa01   : > { %2210 = vadd.xlane.f32.xlu0 %v2209_v59  ;;  %v7869_v59 = vld [vmem:[%s9816_s2 + $0x150] ss:$24 sps:$4 sm:$0xff]  }
 0xa17   : > { %2219 = vrot.lane.b32.xlu0 %v9844_v10, %s9087_s8 }
 0xa1b   : > { %2675 = vrot.lane.b32.xlu0 %v9847_v14, %s9089_s21 }
 0xa8e   : > { %v2211_v60 = vpop.xlane.xlu0 %2210 }
 0xa8f   : > { %8453 = vrcp.f32 %v2211_v60  ;;  %v7874_v60 = vld [vmem:[%s9816_s2 + $0x184] ss:$24 sps:$4 sm:$0xff]  }
 0xa92   : > { %v2220_v61 = vpop.permute.xlu0 %2219 }
 0xa93   : > { %7594 = vmatpush3.msra.mxu1 %v2220_v61  ;;  %v7872_v61 = vld [vmem:[%s9816_s2 + $0x180] ss:$24 sps:$4 sm:$0xff]  }
 0xa94   : > { %7603 = vmatprep.subr.bf16.mxu1 %v9077_v3 }
 0xa96   : > { %v2676_v62 = vpop.permute.xlu0 %2675 }
 0xa97   : > { %7625 = vmatpush3.msra.mxu0 %v2676_v62  ;;  %v7877_v62 = vld [vmem:[%s9816_s2 + $0x1b4] ss:$24 sps:$4 sm:$0xff]  }
 0xa98   : > { %4318 = vmatprep.subr.bf16.mxu0 %v7850_v23  ;;  %v7904_v23 = vld [vmem:[%s9816_s2 + $0x364] ss:$24 sps:$4 sm:$0xff]  }
 0xa99   : > { %v8454_v63 = vpop.eup %8453 }
 0xa9a   : > { %v2216_v0 = vmul.f32 %v8454_v63, %v8452_v58  ;;  %v7871_v58 = vld [vmem:[%s9816_s2 + $0x154] ss:$24 sps:$4 sm:$0xff]   ;;  %v7875_v63 = vld [vmem:[%s9816_s2 + $0x1b0] ss:$24 sps:$4 sm:$0xff]  }
 0xa9c   : > { %7596 = vmatmul.mubr.msk.f32.vlgmr.msra.gmra.mrb[14].mxu1 %vm1288_vm3, %v2216_v0  ;;  %v2367_v1 = vpop.f32.mrb[18].mxu0  ;;  %v7880_v0 = vld [vmem:[%s9816_s2 + $0x1e4] ss:$24 sps:$4 sm:$0xff]  }
 0xa9d   : > { %v7602_v2 = vpop.f32.mrb[19].mxu0  ;;  %7605 = vmatprep.mubr.msk.bf16.mxu1 %vm9078_vm1, %v9077_v3  ;;  %7604 = vmatpush3.bf16.msra.mxu1 %v2376_v11  ;;  %v7890_v11 = vld [vmem:[%s9816_s2 + $0x2a0] ss:$24 sps:$4 sm:$0xff]  }
 0xa9e   : > { %7619 = vmatprep.subr.mxu1 %v9077_v3  ;;  %v7883_v2 = vld [vmem:[%s9816_s2 + $0x214] ss:$24 sps:$4 sm:$0xff]  }
 0xaa0   : > { %v2495_v4 = vpop.f32.mrb[20].mxu0 }
 0xaa1   : > { %v7613_v14 = vpop.f32.mrb[21].mxu0  ;;  %v2577_v5 = vsel %vm1288_vm3, %v2495_v4, -inf }
 0xaa2   : > { %2578 = vmax.xlane.f32.xlu1 %v2577_v5  ;;  %v7886_v14 = vld [vmem:[%s9816_s2 + $0x244] ss:$24 sps:$4 sm:$0xff]   ;;  %v7884_v5 = vld [vmem:[%s9816_s2 + $0x240] ss:$24 sps:$4 sm:$0xff]  }
 0xaa4   : > { %v2573_v6 = vpop.f32.mrb[22].mxu0 }
 0xaa5   : > { %v7618_v7 = vpop.f32.mrb[23].mxu0  ;;  %v2580_v8 = vsel %vm1288_vm3, %v2573_v6, -inf }
 0xaa6   : > { %2581 = vmax.xlane.f32.xlu1 %v2580_v8  ;;  %v7887_v7 = vld [vmem:[%s9816_s2 + $0x270] ss:$24 sps:$4 sm:$0xff]   ;;  %v2812_v8 = vcombine.high %v9992_v34, %v9992_v34 }
 0xb2f   : > { %v2579_v12 = vpop.xlane.xlu1 %2578 }
 0xb30   : > { %v2583_v13 = vsub.f32 %v2495_v4, %v2579_v12  ;;  %v7881_v4 = vld [vmem:[%s9816_s2 + $0x210] ss:$24 sps:$4 sm:$0xff]  }
 0xb32   : > { %v2585_v15 = vmul.f32 1.442695, %v2583_v13  ;;  %v7895_v13 = vld [vmem:[%s9816_s2 + $0x2d4] ss:$24 sps:$4 sm:$0xff]  }
 0xb33   : > { %v2582_v16 = vpop.xlane.xlu1 %2581 }
 0xb34   : > { %8455 = vpow2.f32 %v2585_v15  ;;  %v2584_v17 = vsub.f32 %v2573_v6, %v2582_v16  ;;  %v7889_v6 = vld [vmem:[%s9816_s2 + $0x274] ss:$24 sps:$4 sm:$0xff]   ;;  %v7893_v15 = vld [vmem:[%s9816_s2 + $0x2d0] ss:$24 sps:$4 sm:$0xff]  }
 0xb36   : > { %v2587_v18 = vmul.f32 1.442695, %v2584_v17  ;;  %v7898_v17 = vld [vmem:[%s9816_s2 + $0x304] ss:$24 sps:$4 sm:$0xff]  }
 0xb38   : > { %8457 = vpow2.f32 %v2587_v18 }
 0xb3e   : > { %v8456_v19 = vpop.eup %8455 }
 0xb3f   : > { %v2589_v20 = vsel %vm1288_vm3, %v8456_v19, 0.0 }
 0xb40   : > { %2590 = vadd.xlane.f32.xlu1 %v2589_v20 }
 0xb42   : > { %v8458_v21 = vpop.eup %8457 }
 0xb43   : > { %v2592_v22 = vsel %vm1288_vm3, %v8458_v21, 0.0 }
 0xb44   : > { %2593 = vadd.xlane.f32.xlu1 %v2592_v22  ;;  %v7899_v22 = vld [vmem:[%s9816_s2 + $0x330] ss:$24 sps:$4 sm:$0xff]  }
 0xb55   : > { %2599 = vrot.lane.b32.xlu1 %v9844_v10, %s9089_s21  ;;  %v9990_v10 = vsub.s32 %v2815_v30, %v9987_v31  ;;  %v1284_v30 = vld [vmem:[%s9806_s6 + $0xc] sm:$0xf]  ;;  %s10739_s6 = sld [smem:[#allocation31_spill]] }
 0xb57   : > { %v9996_v35 = vrot.slane %v9992_v34, %v9990_v10  ;;  %v10040_v12 = vrot.slane %v2812_v8, %v9990_v10  ;;  %v2756_v10 = vsel %vm1949_vm4, %v1284_v30, 0  ;;  %v7995_v34 = vld [vmem:[%s9816_s2 + $0xc] ss:$24 sps:$4 sm:$0xff]   ;;  %v7957_v8 = vld [vmem:[%s9816_s2 + $0x6c0] ss:$24 sps:$4 sm:$0xff]  }
 0xb58   : > { %v7981_v30 = vld [vmem:[%s9816_s2 + $0xd0] ss:$24 sps:$4 sm:$0xff]  }
 0xb59   : > { %v2827_v38 = vcombine.high %v9996_v35, %v9996_v35  ;;  %v2828_v16 = vcombine.high %v10040_v12, %v10040_v12  ;;  %v10049_v18 = vpack.c.bf16 %v9996_v35, %v9996_v35  ;;  %v7914_v35 = vld [vmem:[%s9816_s2 + $0x420] ss:$24 sps:$4 sm:$0xff]  }
 0xb5b   : > { %v10003_v44 = vpack.c.bf16 %v2827_v38, %v2827_v38  ;;  %v10052_v20 = vpack.c.bf16 %v2828_v16, %v2828_v16  ;;  %v7922_v38 = vld [vmem:[%s9816_s2 + $0x484] ss:$24 sps:$4 sm:$0xff]   ;;  %v7966_v16 = vld [vmem:[%s9816_s2 + $0x750] ss:$24 sps:$4 sm:$0xff]   ;;  %p7366_p8 = scmp.ne.s32.totalorder %s10739_s6, 1 }
 0xb6f   : > { %v2291_v24 = vpop.f32.mrb[14].mxu1 }
 0xb70   : > { %v2371_v25 = vpack.c.bf16 %v2367_v1, %v2291_v24  ;;  %v7597_v26 = vpop.f32.mrb[15].mxu1  ;;  %v7878_v1 = vld [vmem:[%s9816_s2 + $0x1e0] ss:$24 sps:$4 sm:$0xff]  }
 0xb71   : > { %v7902_v24 = vld [vmem:[%s9816_s2 + $0x360] ss:$24 sps:$4 sm:$0xff]   ;;  %v7905_v26 = vld [vmem:[%s9816_s2 + $0x390] ss:$24 sps:$4 sm:$0xff]  }
 0xb72   : > { %7606 = vmatmul.mubr.msk.bf16.vlgmr.msra.gmra.mrb[16].mxu1 %vm1288_vm3, %v2371_v25  ;;  %v7907_v25 = vld [vmem:[%s9816_s2 + $0x394] ss:$24 sps:$4 sm:$0xff]  }
 0xb73   : > { %7621 = vmatprep.mubr.msk.f32.mxu1 %vm9078_vm1, %v9077_v3 }
 0xbcd   : > { %v2591_v32 = vpop.xlane.xlu1 %2590 }
 0xbce   : > { %8459 = vrcp.f32 %v2591_v32  ;;  %v7911_v32 = vld [vmem:[%s9816_s2 + $0x3f0] ss:$24 sps:$4 sm:$0xff]  }
 0xbd1   : > { %v2594_v33 = vpop.xlane.xlu1 %2593 }
 0xbd2   : > { %8461 = vrcp.f32 %v2594_v33  ;;  %v7916_v33 = vld [vmem:[%s9816_s2 + $0x424] ss:$24 sps:$4 sm:$0xff]  }
 0xbd5   : > { %v2600_v36 = vpop.permute.xlu1 %2599 }
 0xbd6   : > { %7620 = vmatpush3.msra.mxu1 %v2600_v36  ;;  %v7919_v36 = vld [vmem:[%s9816_s2 + $0x454] ss:$24 sps:$4 sm:$0xff]  }
 0xbd7   : > { %7629 = vmatprep.subr.bf16.mxu1 %v9077_v3 }
 0xbd8   : > { %v8460_v37 = vpop.eup %8459 }
 0xbd9   : > { %v2596_v39 = vmul.f32 %v8460_v37, %v8456_v19  ;;  %v7896_v19 = vld [vmem:[%s9816_s2 + $0x300] ss:$24 sps:$4 sm:$0xff]   ;;  %v7917_v37 = vld [vmem:[%s9816_s2 + $0x450] ss:$24 sps:$4 sm:$0xff]  }
 0xbdb   : > { %7622 = vmatmul.mubr.msk.f32.vlgmr.msra.gmra.mrb[20].mxu1 %vm1288_vm3, %v2596_v39  ;;  %v7920_v39 = vld [vmem:[%s9816_s2 + $0x480] ss:$24 sps:$4 sm:$0xff]  }
 0xbdc   : > { %v8462_v41 = vpop.eup %8461  ;;  %7631 = vmatprep.mubr.msk.bf16.mxu1 %vm9078_vm1, %v9077_v3  ;;  %7630 = vmatpush3.bf16.msra.mxu1 %v2756_v10  ;;  %v7984_v10 = vld [vmem:[%s9816_s2 + $0x100] ss:$24 sps:$4 sm:$0xff]  }
 0xbdd   : > { %v2598_v45 = vmul.f32 %v8462_v41, %v8458_v21  ;;  %v7901_v21 = vld [vmem:[%s9816_s2 + $0x334] ss:$24 sps:$4 sm:$0xff]   ;;  %4441 = vmatprep.subr.bf16.mxu1 %v7995_v34  ;;  %v7987_v34 = vld [vmem:[%s9816_s2 + $0x130] ss:$24 sps:$4 sm:$0xff]  }
 0xbde   : > { %v7925_v41 = vld [vmem:[%s9816_s2 + $0x4b4] ss:$24 sps:$4 sm:$0xff]  }
 0xbdf   : > { %7627 = vmatmul.mubr.msk.f32.vlgmr.msra.gmra.mrb[24].mxu0 %vm1288_vm3, %v2598_v45  ;;  %v7928_v45 = vld [vmem:[%s9816_s2 + $0x4e4] ss:$24 sps:$4 sm:$0xff]  }
 0xbe0   : > { %4319 = vmatpush1.bf16.msra.mxu0 %v7848_v42  ;;  %4350 = vmatprep.mubr.bf16.mxu0 %v10003_v44  ;;  %v7923_v42 = vld [vmem:[%s9816_s2 + $0x4b0] ss:$24 sps:$4 sm:$0xff]  }
 0xbe1   : > { %4320 = vmatprep.subr.bf16.mxu0 %v7853_v46  ;;  %v7926_v46 = vld [vmem:[%s9816_s2 + $0x4e0] ss:$24 sps:$4 sm:$0xff]  }
 0xbe4   : > { %4321 = vmatpush1.bf16.msra.mxu0 %v7851_v47 }
 0xbe5   : > { %4322 = vmatprep.subr.bf16.mxu0 %v7856_v48  ;;  %v7931_v48 = vld [vmem:[%s9816_s2 + $0x514] ss:$24 sps:$4 sm:$0xff]  }
 0xbe8   : > { %4323 = vmatpush1.bf16.msra.mxu0 %v7854_v49 }
 0xbe9   : > { %4324 = vmatprep.subr.bf16.mxu0 %v7859_v50 }
 0xbec   : > { %4325 = vmatpush1.bf16.msra.mxu0 %v7857_v51 }
 0xbed   : > { %4326 = vmatprep.subr.bf16.mxu0 %v7862_v52 }
 0xbf0   : > { %4327 = vmatpush1.bf16.msra.mxu0 %v7860_v53 }
 0xbf1   : > { %4328 = vmatprep.subr.bf16.mxu0 %v7865_v54  ;;  %v7929_v54 = vld [vmem:[%s9816_s2 + $0x510] ss:$24 sps:$4 sm:$0xff]  }
 0xbf4   : > { %4329 = vmatpush1.bf16.msra.mxu0 %v7863_v55  ;;  %v7934_v55 = vld [vmem:[%s9816_s2 + $0x544] ss:$24 sps:$4 sm:$0xff]  }
 0xbf5   : > { %4330 = vmatprep.subr.bf16.mxu0 %v7868_v56  ;;  %v7932_v56 = vld [vmem:[%s9816_s2 + $0x540] ss:$24 sps:$4 sm:$0xff]  }
 0xbf8   : > { %4331 = vmatpush1.bf16.msra.mxu0 %v7866_v57  ;;  %v7935_v57 = vld [vmem:[%s9816_s2 + $0x570] ss:$24 sps:$4 sm:$0xff]  }
 0xbf9   : > { %4332 = vmatprep.subr.bf16.mxu0 %v7871_v58  ;;  %v7940_v58 = vld [vmem:[%s9816_s2 + $0x5a4] ss:$24 sps:$4 sm:$0xff]  }
 0xbfc   : > { %4333 = vmatpush1.bf16.msra.mxu0 %v7869_v59  ;;  %v7943_v59 = vld [vmem:[%s9816_s2 + $0x5d4] ss:$24 sps:$4 sm:$0xff]  }
 0xbfd   : > { %4334 = vmatprep.subr.bf16.mxu0 %v7874_v60  ;;  %v7941_v60 = vld [vmem:[%s9816_s2 + $0x5d0] ss:$24 sps:$4 sm:$0xff]  }
 0xc00   : > { %4335 = vmatpush1.bf16.msra.mxu0 %v7872_v61  ;;  %v7947_v61 = vld [vmem:[%s9816_s2 + $0x604] ss:$24 sps:$4 sm:$0xff]  }
 0xc01   : > { %4336 = vmatprep.subr.bf16.mxu0 %v7877_v62  ;;  %v10098_v62 = vpack.c.bf16 %v10040_v12, %v10040_v12  ;;  %v7965_v12 = vld [vmem:[%s9816_s2 + $0x724] ss:$24 sps:$4 sm:$0xff]  }
 0xc04   : > { %4337 = vmatpush1.bf16.msra.mxu0 %v7875_v63  ;;  %v7945_v63 = vld [vmem:[%s9816_s2 + $0x600] ss:$24 sps:$4 sm:$0xff]  }
 0xc05   : > { %4338 = vmatprep.subr.bf16.mxu0 %v7880_v0  ;;  %v7950_v0 = vld [vmem:[%s9816_s2 + $0x634] ss:$24 sps:$4 sm:$0xff]  }
 0xc08   : > { %4339 = vmatpush1.bf16.msra.mxu0 %v7878_v1  ;;  %v7948_v1 = vld [vmem:[%s9816_s2 + $0x630] ss:$24 sps:$4 sm:$0xff]  }
 0xc09   : > { %4340 = vmatprep.subr.bf16.mxu0 %v7883_v2  ;;  %v9091_v2 = vmov 0  }
 0xc0c   : > { %4341 = vmatpush1.bf16.msra.mxu0 %v7881_v4  ;;  %v7953_v4 = vld [vmem:[%s9816_s2 + $0x664] ss:$24 sps:$4 sm:$0xff]  }
 0xc0d   : > { %4342 = vmatprep.subr.bf16.mxu0 %v7886_v14  ;;  %v7951_v14 = vld [vmem:[%s9816_s2 + $0x660] ss:$24 sps:$4 sm:$0xff]  }
 0xc10   : > { %4343 = vmatpush1.bf16.msra.mxu0 %v7884_v5  ;;  %v7956_v5 = vld [vmem:[%s9816_s2 + $0x694] ss:$24 sps:$4 sm:$0xff]  }
 0xc11   : > { %4344 = vmatprep.subr.bf16.mxu0 %v7889_v6  ;;  %v7954_v6 = vld [vmem:[%s9816_s2 + $0x690] ss:$24 sps:$4 sm:$0xff]  }
 0xc14   : > { %4345 = vmatpush1.bf16.msra.mxu0 %v7887_v7  ;;  %v7959_v7 = vld [vmem:[%s9816_s2 + $0x6c4] ss:$24 sps:$4 sm:$0xff]  }
 0xc15   : > { %4346 = vmatprep.subr.bf16.mxu0 %v7892_v9  ;;  %v7962_v9 = vld [vmem:[%s9816_s2 + $0x6f4] ss:$24 sps:$4 sm:$0xff]  }
 0xc18   : > { %4347 = vmatpush1.bf16.msra.mxu0 %v7890_v11  ;;  %v7960_v11 = vld [vmem:[%s9816_s2 + $0x6f0] ss:$24 sps:$4 sm:$0xff]  }
 0xc19   : > { %4348 = vmatprep.subr.bf16.mxu0 %v7895_v13  ;;  %v7963_v13 = vld [vmem:[%s9816_s2 + $0x720] ss:$24 sps:$4 sm:$0xff]  }
 0xc1c   : > { %4349 = vmatpush1.bf16.msra.mxu0 %v7893_v15  ;;  %v7968_v15 = vld [vmem:[%s9816_s2 + $0x754] ss:$24 sps:$4 sm:$0xff]  }
 0xc1d   : > { %4359 = vmatprep.subr.bf16.mxu0 %v7898_v17  ;;  %v6942_v17 = vld.sshfl [vmem:[#allocation6 + $0x8] sm:$0x3 pattern:$0x76325410] }
 0xc1f   : > { %4351 = vmatmul.mubr.bf16.vlgmr.msra.gmra.mrb[28].mxu0 %v10049_v18 }
 0xc20   : > { %4360 = vmatpush1.bf16.msra.mxu0 %v7896_v19  ;;  %4391 = vmatprep.mubr.bf16.mxu0 %v10052_v20  ;;  %v7971_v19 = vld [vmem:[%s9816_s2 + $0x14] ss:$24 sps:$4 sm:$0xff]  }
 0xc21   : > { %4361 = vmatprep.subr.bf16.mxu0 %v7901_v21  ;;  %v10118_v21 = vpack.c.bf16 %v6942_v17, %v6942_v17  ;;  %v8023_v17 = vld [vmem:[%s9816_s2 + $0xf8] ss:$24 sps:$4 sm:$0xff]  }
 0xc24   : > { %4362 = vmatpush1.bf16.msra.mxu0 %v7899_v22  ;;  %v7969_v22 = vld [vmem:[%s9816_s2 + $0x10] ss:$24 sps:$4 sm:$0xff]  }
 0xc25   : > { %4363 = vmatprep.subr.bf16.mxu0 %v7904_v23  ;;  %v7974_v23 = vld [vmem:[%s9816_s2 + $0x44] ss:$24 sps:$4 sm:$0xff]  }
 0xc28   : > { %4364 = vmatpush1.bf16.msra.mxu0 %v7902_v24  ;;  %v7972_v24 = vld [vmem:[%s9816_s2 + $0x40] ss:$24 sps:$4 sm:$0xff]  }
 0xc29   : > { %4365 = vmatprep.subr.bf16.mxu0 %v7907_v25  ;;  %v7977_v25 = vld [vmem:[%s9816_s2 + $0x74] ss:$24 sps:$4 sm:$0xff]  }
 0xc2c   : > { %4366 = vmatpush1.bf16.msra.mxu0 %v7905_v26  ;;  %v7975_v26 = vld [vmem:[%s9816_s2 + $0x70] ss:$24 sps:$4 sm:$0xff]  }
 0xc2d   : > { %4367 = vmatprep.subr.bf16.mxu0 %v7910_v27  ;;  %v7980_v27 = vld [vmem:[%s9816_s2 + $0xa4] ss:$24 sps:$4 sm:$0xff]  }
 0xc30   : > { %4368 = vmatpush1.bf16.msra.mxu0 %v7908_v28  ;;  %v7978_v28 = vld [vmem:[%s9816_s2 + $0xa0] ss:$24 sps:$4 sm:$0xff]  }
 0xc31   : > { %4369 = vmatprep.subr.bf16.mxu0 %v7913_v29  ;;  %v7983_v29 = vld [vmem:[%s9816_s2 + $0xd4] ss:$24 sps:$4 sm:$0xff]  }
 0xc34   : > { %4370 = vmatpush1.bf16.msra.mxu0 %v7911_v32  ;;  %v7986_v32 = vld [vmem:[%s9816_s2 + $0x104] ss:$24 sps:$4 sm:$0xff]  }
 0xc35   : > { %4371 = vmatprep.subr.bf16.mxu0 %v7916_v33  ;;  %v7989_v33 = vld [vmem:[%s9816_s2 + $0x134] ss:$24 sps:$4 sm:$0xff]  }
 0xc38   : > { %4372 = vmatpush1.bf16.msra.mxu0 %v7914_v35  ;;  %v7992_v35 = vld [vmem:[%s9816_s2 + $0x164] ss:$24 sps:$4 sm:$0xff]  }
 0xc39   : > { %4373 = vmatprep.subr.bf16.mxu0 %v7919_v36  ;;  %v7990_v36 = vld [vmem:[%s9816_s2 + $0x160] ss:$24 sps:$4 sm:$0xff]  }
 0xc3c   : > { %4374 = vmatpush1.bf16.msra.mxu0 %v7917_v37  ;;  %v7998_v37 = vld [vmem:[%s9816_s2 + $0x194] ss:$24 sps:$4 sm:$0xff]  }
 0xc3d   : > { %4375 = vmatprep.subr.bf16.mxu0 %v7922_v38  ;;  %v7996_v38 = vld [vmem:[%s9816_s2 + $0x190] ss:$24 sps:$4 sm:$0xff]  }
 0xc40   : > { %4376 = vmatpush1.bf16.msra.mxu0 %v7920_v39  ;;  %v8004_v39 = vld [vmem:[%s9816_s2 + $0x1c4] ss:$24 sps:$4 sm:$0xff]  }
 0xc41   : > { %4377 = vmatprep.subr.bf16.mxu0 %v7925_v41  ;;  %v8002_v41 = vld [vmem:[%s9816_s2 + $0x1c0] ss:$24 sps:$4 sm:$0xff]  }
 0xc44   : > { %4378 = vmatpush1.bf16.msra.mxu0 %v7923_v42  ;;  %v8010_v42 = vld [vmem:[%s9816_s2 + $0x1f4] ss:$24 sps:$4 sm:$0xff]  }
 0xc45   : > { %v2412_v47 = vpop.f32.mrb[16].mxu1  ;;  %4379 = vmatprep.subr.bf16.mxu0 %v7928_v45  ;;  %v8008_v45 = vld [vmem:[%s9816_s2 + $0x1f0] ss:$24 sps:$4 sm:$0xff]  }
 0xc46   : > { %v10081_v49 = vadd.f32 %v2412_v47, %v9947_v40  ;;  %v7607_v50 = vpop.f32.mrb[17].mxu1  ;;  %v7937_v40 = vld [vmem:[%s9816_s2 + $0x574] ss:$24 sps:$4 sm:$0xff]   ;;  %v8014_v47 = vld [vmem:[%s9816_s2 + $0x220] ss:$24 sps:$4 sm:$0xff]  }
 0xc47   : > { %v2415_v51 = vpop.f32.mrb[18].mxu1  ;;  %v8020_v50 = vld [vmem:[%s9816_s2 + $0x250] ss:$24 sps:$4 sm:$0xff]  }
 0xc48   : > { %v10084_v52 = vadd.f32 %v2415_v51, %v9949_v43  ;;  %v7608_v53 = vpop.f32.mrb[19].mxu1  ;;  %4380 = vmatpush1.bf16.msra.mxu0 %v7926_v46  ;;  %v7938_v43 = vld [vmem:[%s9816_s2 + $0x5a0] ss:$24 sps:$4 sm:$0xff]   ;;  %v8016_v46 = vld [vmem:[%s9816_s2 + $0x224] ss:$24 sps:$4 sm:$0xff]  }
 0xc49   : > { %4381 = vmatprep.subr.bf16.mxu0 %v7931_v48  ;;  %v8022_v48 = vld [vmem:[%s9816_s2 + $0x254] ss:$24 sps:$4 sm:$0xff]   ;;  %v8028_v51 = vld [vmem:[%s9816_s2 + $0x284] ss:$24 sps:$4 sm:$0xff]  }
 0xc4c   : > { %4382 = vmatpush1.bf16.msra.mxu0 %v7929_v54 }
 0xc4d   : > { %4383 = vmatprep.subr.bf16.mxu0 %v7934_v55  ;;  %v8026_v55 = vld [vmem:[%s9816_s2 + $0x280] ss:$24 sps:$4 sm:$0xff]  }
 0xc50   : > { %4384 = vmatpush1.bf16.msra.mxu0 %v7932_v56  ;;  %v8034_v56 = vld [vmem:[%s9816_s2 + $0x2b4] ss:$24 sps:$4 sm:$0xff]  }
 0xc51   : > { %4385 = vmatprep.subr.bf16.mxu0 %v7937_v40 }
 0xc54   : > { %4386 = vmatpush1.bf16.msra.mxu0 %v7935_v57  ;;  %v7993_v57 = vld [vmem:[%s9816_s2 + $0x8] ss:$24 sps:$4 sm:$0xff]  }
 0xc55   : > { %4387 = vmatprep.subr.bf16.mxu0 %v7940_v58 }
 0xc58   : > { %4388 = vmatpush1.bf16.msra.mxu0 %v7938_v43 }
 0xc59   : > { %4389 = vmatprep.subr.bf16.mxu0 %v7943_v59  ;;  %v8001_v59 = vld [vmem:[%s9816_s2 + $0x3c] ss:$24 sps:$4 sm:$0xff]  }
 0xc5c   : > { %4390 = vmatpush1.bf16.msra.mxu0 %v7941_v60  ;;  %v8032_v60 = vld [vmem:[%s9816_s2 + $0x2b0] ss:$24 sps:$4 sm:$0xff]  }
 0xc5d   : > { %4400 = vmatprep.subr.bf16.mxu0 %v7947_v61  ;;  %v8040_v61 = vld [vmem:[%s9816_s2 + $0x2e4] ss:$24 sps:$4 sm:$0xff]  }
 0xc5f   : > { %4392 = vmatmul.mubr.bf16.vlgmr.msra.gmra.mrb[28].mxu0 %v10098_v62 }
 0xc60   : > { %4401 = vmatpush1.bf16.msra.mxu0 %v7945_v63  ;;  %4432 = vmatprep.mubr.bf16.mxu0 %v9091_v2  ;;  %v7999_v63 = vld [vmem:[%s9816_s2 + $0x38] ss:$24 sps:$4 sm:$0xff]  }
 0xc61   : > { %4402 = vmatprep.subr.bf16.mxu0 %v7950_v0  ;;  %v8007_v0 = vld [vmem:[%s9816_s2 + $0x6c] ss:$24 sps:$4 sm:$0xff]  }
 0xc64   : > { %4403 = vmatpush1.bf16.msra.mxu0 %v7948_v1  ;;  %v8038_v1 = vld [vmem:[%s9816_s2 + $0x2e0] ss:$24 sps:$4 sm:$0xff]  }
 0xc65   : > { %4404 = vmatprep.subr.bf16.mxu0 %v7953_v4  ;;  %v8046_v4 = vld [vmem:[%s9816_s2 + $0x314] ss:$24 sps:$4 sm:$0xff]  }
 0xc68   : > { %4405 = vmatpush1.bf16.msra.mxu0 %v7951_v14  ;;  %v8005_v14 = vld [vmem:[%s9816_s2 + $0x68] ss:$24 sps:$4 sm:$0xff]  }
 0xc69   : > { %4406 = vmatprep.subr.bf16.mxu0 %v7956_v5  ;;  %v8013_v5 = vld [vmem:[%s9816_s2 + $0x9c] ss:$24 sps:$4 sm:$0xff]  }
 0xc6c   : > { %4407 = vmatpush1.bf16.msra.mxu0 %v7954_v6  ;;  %v8044_v6 = vld [vmem:[%s9816_s2 + $0x310] ss:$24 sps:$4 sm:$0xff]  }
 0xc6d   : > { %4408 = vmatprep.subr.bf16.mxu0 %v7959_v7  ;;  %v8011_v7 = vld [vmem:[%s9816_s2 + $0x98] ss:$24 sps:$4 sm:$0xff]  }
 0xc70   : > { %4409 = vmatpush1.bf16.msra.mxu0 %v7957_v8  ;;  %v8019_v8 = vld [vmem:[%s9816_s2 + $0xcc] ss:$24 sps:$4 sm:$0xff]  }
 0xc71   : > { %4410 = vmatprep.subr.bf16.mxu0 %v7962_v9  ;;  %v8050_v9 = vld [vmem:[%s9816_s2 + $0x340] ss:$24 sps:$4 sm:$0xff]  }
 0xc74   : > { %4411 = vmatpush1.bf16.msra.mxu0 %v7960_v11  ;;  %v8058_v11 = vld [vmem:[%s9816_s2 + $0x374] ss:$24 sps:$4 sm:$0xff]  }
 0xc75   : > { %4412 = vmatprep.subr.bf16.mxu0 %v7965_v12  ;;  %v8017_v12 = vld [vmem:[%s9816_s2 + $0xc8] ss:$24 sps:$4 sm:$0xff]  }
 0xc78   : > { %4413 = vmatpush1.bf16.msra.mxu0 %v7963_v13  ;;  %v8025_v13 = vld [vmem:[%s9816_s2 + $0xfc] ss:$24 sps:$4 sm:$0xff]  }
 0xc79   : > { %4414 = vmatprep.subr.bf16.mxu0 %v7968_v15  ;;  %v8056_v15 = vld [vmem:[%s9816_s2 + $0x370] ss:$24 sps:$4 sm:$0xff]  }
 0xc7c   : > { %4415 = vmatpush1.bf16.msra.mxu0 %v7966_v16  ;;  %v8064_v16 = vld [vmem:[%s9816_s2 + $0x3a4] ss:$24 sps:$4 sm:$0xff]  }
 0xc7d   : > { %4564 = vmatprep.subr.bf16.mxu0 %v7971_v19  ;;  %v8031_v19 = vld [vmem:[%s9816_s2 + $0x12c] ss:$24 sps:$4 sm:$0xff]  }
 0xc7f   : > { %4433 = vmatmul.mubr.bf16.vlgmr.msra.gmra.mrb[28].mxu0 %v10118_v21 }
 0xc80   : > { %4565 = vmatpush1.bf16.msra.mxu0 %v7969_v22  ;;  %4596 = vmatprep.mubr.bf16.mxu0 %v10003_v44  ;;  %v8062_v22 = vld [vmem:[%s9816_s2 + $0x3a0] ss:$24 sps:$4 sm:$0xff]  }
 0xc81   : > { %4566 = vmatprep.subr.bf16.mxu0 %v7974_v23  ;;  %v8070_v23 = vld [vmem:[%s9816_s2 + $0x3d4] ss:$24 sps:$4 sm:$0xff]  }
 0xc84   : > { %4567 = vmatpush1.bf16.msra.mxu0 %v7972_v24  ;;  %v8029_v24 = vld [vmem:[%s9816_s2 + $0x128] ss:$24 sps:$4 sm:$0xff]  }
 0xc85   : > { %4568 = vmatprep.subr.bf16.mxu0 %v7977_v25  ;;  %v8037_v25 = vld [vmem:[%s9816_s2 + $0x15c] ss:$24 sps:$4 sm:$0xff]  }
 0xc88   : > { %4569 = vmatpush1.bf16.msra.mxu0 %v7975_v26  ;;  %v8068_v26 = vld [vmem:[%s9816_s2 + $0x3d0] ss:$24 sps:$4 sm:$0xff]  }
 0xc89   : > { %4570 = vmatprep.subr.bf16.mxu0 %v7980_v27  ;;  %v8076_v27 = vld [vmem:[%s9816_s2 + $0x404] ss:$24 sps:$4 sm:$0xff]  }
 0xc8c   : > { %4571 = vmatpush1.bf16.msra.mxu0 %v7978_v28  ;;  %v8035_v28 = vld [vmem:[%s9816_s2 + $0x158] ss:$24 sps:$4 sm:$0xff]  }
 0xc8d   : > { %4572 = vmatprep.subr.bf16.mxu0 %v7983_v29  ;;  %v8043_v29 = vld [vmem:[%s9816_s2 + $0x18c] ss:$24 sps:$4 sm:$0xff]  }
 0xc90   : > { %4573 = vmatpush1.bf16.msra.mxu0 %v7981_v30  ;;  %v8074_v30 = vld [vmem:[%s9816_s2 + $0x400] ss:$24 sps:$4 sm:$0xff]  }
 0xc91   : > { %4574 = vmatprep.subr.bf16.mxu0 %v7986_v32  ;;  %v8082_v32 = vld [vmem:[%s9816_s2 + $0x434] ss:$24 sps:$4 sm:$0xff]  }
 0xc94   : > { %4575 = vmatpush1.bf16.msra.mxu0 %v7984_v10  ;;  %v8041_v10 = vld [vmem:[%s9816_s2 + $0x188] ss:$24 sps:$4 sm:$0xff]  }
 0xc95   : > { %4576 = vmatprep.subr.bf16.mxu0 %v7989_v33  ;;  %v8049_v33 = vld [vmem:[%s9816_s2 + $0x1bc] ss:$24 sps:$4 sm:$0xff]  }
 0xc98   : > { %4577 = vmatpush1.bf16.msra.mxu0 %v7987_v34  ;;  %v8080_v34 = vld [vmem:[%s9816_s2 + $0x430] ss:$24 sps:$4 sm:$0xff]  }
 0xc99   : > { %4578 = vmatprep.subr.bf16.mxu0 %v7992_v35  ;;  %v8088_v35 = vld [vmem:[%s9816_s2 + $0x464] ss:$24 sps:$4 sm:$0xff]  }
 0xc9c   : > { %4579 = vmatpush1.bf16.msra.mxu0 %v7990_v36  ;;  %v8047_v36 = vld [vmem:[%s9816_s2 + $0x1b8] ss:$24 sps:$4 sm:$0xff]  }
 0xc9d   : > { %4580 = vmatprep.subr.bf16.mxu0 %v7998_v37  ;;  %v8055_v37 = vld [vmem:[%s9816_s2 + $0x1ec] ss:$24 sps:$4 sm:$0xff]  }
 0xca0   : > { %4581 = vmatpush1.bf16.msra.mxu0 %v7996_v38  ;;  %v8086_v38 = vld [vmem:[%s9816_s2 + $0x460] ss:$24 sps:$4 sm:$0xff]  }
 0xca1   : > { %4582 = vmatprep.subr.bf16.mxu0 %v8004_v39  ;;  %v8094_v39 = vld [vmem:[%s9816_s2 + $0x494] ss:$24 sps:$4 sm:$0xff]  }
 0xca4   : > { %4583 = vmatpush1.bf16.msra.mxu0 %v8002_v41  ;;  %v8053_v41 = vld [vmem:[%s9816_s2 + $0x1e8] ss:$24 sps:$4 sm:$0xff]  }
 0xca5   : > { %4584 = vmatprep.subr.bf16.mxu0 %v8010_v42  ;;  %v8061_v42 = vld [vmem:[%s9816_s2 + $0x21c] ss:$24 sps:$4 sm:$0xff]  }
 0xca8   : > { %4585 = vmatpush1.bf16.msra.mxu0 %v8008_v45  ;;  %v8092_v45 = vld [vmem:[%s9816_s2 + $0x490] ss:$24 sps:$4 sm:$0xff]  }
 0xca9   : > { %4586 = vmatprep.subr.bf16.mxu0 %v8016_v46  ;;  %v8100_v46 = vld [vmem:[%s9816_s2 + $0x4c4] ss:$24 sps:$4 sm:$0xff]  }
 0xcac   : > { %4587 = vmatpush1.bf16.msra.mxu0 %v8014_v47  ;;  %v8059_v47 = vld [vmem:[%s9816_s2 + $0x218] ss:$24 sps:$4 sm:$0xff]  }
 0xcad   : > { %4588 = vmatprep.subr.bf16.mxu0 %v8022_v48  ;;  %v8067_v48 = vld [vmem:[%s9816_s2 + $0x24c] ss:$24 sps:$4 sm:$0xff]  }
 0xcae   : > { %v2671_v53 = vpop.f32.mrb[20].mxu1 }
 0xcaf   : > { %v7623_v54 = vpop.f32.mrb[21].mxu1 }
 0xcb0   : > { %4589 = vmatpush1.bf16.msra.mxu0 %v8020_v50  ;;  %v8098_v50 = vld [vmem:[%s9816_s2 + $0x4c0] ss:$24 sps:$4 sm:$0xff]   ;;  %v8073_v54 = vld [vmem:[%s9816_s2 + $0x27c] ss:$24 sps:$4 sm:$0xff]  }
 0xcb1   : > { %4590 = vmatprep.subr.bf16.mxu0 %v8028_v51  ;;  %v8106_v51 = vld [vmem:[%s9816_s2 + $0x4f4] ss:$24 sps:$4 sm:$0xff]  }
 0xcb2   : > { %v2747_v40 = vpop.f32.mrb[24].mxu0 }
 0xcb3   : > { %v2751_v58 = vpack.c.bf16 %v2747_v40, %v2671_v53  ;;  %v7628_v43 = vpop.f32.mrb[25].mxu0  ;;  %v8065_v53 = vld [vmem:[%s9816_s2 + $0x248] ss:$24 sps:$4 sm:$0xff]   ;;  %v8071_v40 = vld [vmem:[%s9816_s2 + $0x278] ss:$24 sps:$4 sm:$0xff]  }
 0xcb4   : > { %4591 = vmatpush1.bf16.msra.mxu0 %v8026_v55  ;;  %v8104_v55 = vld [vmem:[%s9816_s2 + $0x4f0] ss:$24 sps:$4 sm:$0xff]   ;;  %v8118_v43 = vld [vmem:[%s9816_s2 + $0x554] ss:$24 sps:$4 sm:$0xff]  }
 0xcb5   : > { %7632 = vmatmul.mubr.msk.bf16.vlgmr.msra.gmra.mrb[24].mxu1 %vm1288_vm3, %v2751_v58  ;;  %4592 = vmatprep.subr.bf16.mxu0 %v8034_v56  ;;  %v8112_v56 = vld [vmem:[%s9816_s2 + $0x524] ss:$24 sps:$4 sm:$0xff]   ;;  %v8110_v58 = vld [vmem:[%s9816_s2 + $0x520] ss:$24 sps:$4 sm:$0xff]  }
 0xcb6   : > { %4442 = vmatpush1.bf16.msra.mxu1 %v7993_v57  ;;  %4473 = vmatprep.mubr.bf16.mxu1 %v10003_v44  ;;  %v8052_v44 = vld [vmem:[%s9816_s2 + $0x344] ss:$24 sps:$4 sm:$0xff]  }
 0xcb7   : > { %4443 = vmatprep.subr.bf16.mxu1 %v8001_v59  ;;  %v8079_v57 = vld [vmem:[%s9816_s2 + $0x2ac] ss:$24 sps:$4 sm:$0xff]   ;;  %v8077_v59 = vld [vmem:[%s9816_s2 + $0x2a8] ss:$24 sps:$4 sm:$0xff]  }
 0xcb8   : > { %4593 = vmatpush1.bf16.msra.mxu0 %v8032_v60  ;;  %v8085_v60 = vld [vmem:[%s9816_s2 + $0x2dc] ss:$24 sps:$4 sm:$0xff]  }
 0xcb9   : > { %4594 = vmatprep.subr.bf16.mxu0 %v8040_v61  ;;  %v8116_v61 = vld [vmem:[%s9816_s2 + $0x550] ss:$24 sps:$4 sm:$0xff]  }
 0xcba   : > { %4444 = vmatpush1.bf16.msra.mxu1 %v7999_v63  ;;  %v8124_v63 = vld [vmem:[%s9816_s2 + $0x584] ss:$24 sps:$4 sm:$0xff]  }
 0xcbb   : > { %4445 = vmatprep.subr.bf16.mxu1 %v8007_v0  ;;  %v8083_v0 = vld [vmem:[%s9816_s2 + $0x2d8] ss:$24 sps:$4 sm:$0xff]  }
 0xcbc   : > { %4595 = vmatpush1.bf16.msra.mxu0 %v8038_v1  ;;  %v8091_v1 = vld [vmem:[%s9816_s2 + $0x30c] ss:$24 sps:$4 sm:$0xff]  }
 0xcbd   : > { %4605 = vmatprep.subr.bf16.mxu0 %v8046_v4  ;;  %v8122_v4 = vld [vmem:[%s9816_s2 + $0x580] ss:$24 sps:$4 sm:$0xff]  }
 0xcbe   : > { %4446 = vmatpush1.bf16.msra.mxu1 %v8005_v14  ;;  %v8130_v14 = vld [vmem:[%s9816_s2 + $0x5b4] ss:$24 sps:$4 sm:$0xff]  }
 0xcbf   : > { %4447 = vmatprep.subr.bf16.mxu1 %v8013_v5  ;;  %4597 = vmatmul.mubr.bf16.vlgmr.msra.gmra.mrb[32].mxu0 %v10049_v18  ;;  %v8089_v5 = vld [vmem:[%s9816_s2 + $0x308] ss:$24 sps:$4 sm:$0xff]  }
 0xcc0   : > { %4606 = vmatpush1.bf16.msra.mxu0 %v8044_v6  ;;  %4637 = vmatprep.mubr.bf16.mxu0 %v10052_v20  ;;  %v8097_v6 = vld [vmem:[%s9816_s2 + $0x33c] ss:$24 sps:$4 sm:$0xff]  }
 0xcc1   : > { %4607 = vmatprep.subr.bf16.mxu0 %v8052_v44  ;;  %v8128_v44 = vld [vmem:[%s9816_s2 + $0x5b0] ss:$24 sps:$4 sm:$0xff]  }
 0xcc2   : > { %4448 = vmatpush1.bf16.msra.mxu1 %v8011_v7  ;;  %v8136_v7 = vld [vmem:[%s9816_s2 + $0x5e4] ss:$24 sps:$4 sm:$0xff]  }
 0xcc3   : > { %4449 = vmatprep.subr.bf16.mxu1 %v8019_v8  ;;  %v8095_v8 = vld [vmem:[%s9816_s2 + $0x338] ss:$24 sps:$4 sm:$0xff]  }
 0xcc4   : > { %4608 = vmatpush1.bf16.msra.mxu0 %v8050_v9  ;;  %v8103_v9 = vld [vmem:[%s9816_s2 + $0x36c] ss:$24 sps:$4 sm:$0xff]  }
 0xcc5   : > { %4609 = vmatprep.subr.bf16.mxu0 %v8058_v11  ;;  %v8134_v11 = vld [vmem:[%s9816_s2 + $0x5e0] ss:$24 sps:$4 sm:$0xff]  }
 0xcc6   : > { %4450 = vmatpush1.bf16.msra.mxu1 %v8017_v12  ;;  %v8142_v12 = vld [vmem:[%s9816_s2 + $0x614] ss:$24 sps:$4 sm:$0xff]  }
 0xcc7   : > { %4451 = vmatprep.subr.bf16.mxu1 %v8025_v13  ;;  %v8101_v13 = vld [vmem:[%s9816_s2 + $0x368] ss:$24 sps:$4 sm:$0xff]  }
 0xcc8   : > { %4610 = vmatpush1.bf16.msra.mxu0 %v8056_v15  ;;  %v8140_v15 = vld [vmem:[%s9816_s2 + $0x610] ss:$24 sps:$4 sm:$0xff]  }
 0xcc9   : > { %4611 = vmatprep.subr.bf16.mxu0 %v8064_v16  ;;  %v8107_v16 = vld [vmem:[%s9816_s2 + $0x398] ss:$24 sps:$4 sm:$0xff]  }
 0xcca   : > { %4452 = vmatpush1.bf16.msra.mxu1 %v8023_v17  ;;  %v8115_v17 = vld [vmem:[%s9816_s2 + $0x3cc] ss:$24 sps:$4 sm:$0xff]  }
 0xccb   : > { %4453 = vmatprep.subr.bf16.mxu1 %v8031_v19  ;;  %v8146_v19 = vld [vmem:[%s9816_s2 + $0x640] ss:$24 sps:$4 sm:$0xff]  }
 0xccc   : > { %4612 = vmatpush1.bf16.msra.mxu0 %v8062_v22  ;;  %v8154_v22 = vld [vmem:[%s9816_s2 + $0x674] ss:$24 sps:$4 sm:$0xff]  }
 0xccd   : > { %4613 = vmatprep.subr.bf16.mxu0 %v8070_v23  ;;  %v8113_v23 = vld [vmem:[%s9816_s2 + $0x3c8] ss:$24 sps:$4 sm:$0xff]  }
 0xcce   : > { %4454 = vmatpush1.bf16.msra.mxu1 %v8029_v24  ;;  %v8121_v24 = vld [vmem:[%s9816_s2 + $0x3fc] ss:$24 sps:$4 sm:$0xff]  }
 0xccf   : > { %4455 = vmatprep.subr.bf16.mxu1 %v8037_v25  ;;  %v8152_v25 = vld [vmem:[%s9816_s2 + $0x670] ss:$24 sps:$4 sm:$0xff]  }
 0xcd0   : > { %4614 = vmatpush1.bf16.msra.mxu0 %v8068_v26  ;;  %v8160_v26 = vld [vmem:[%s9816_s2 + $0x6a4] ss:$24 sps:$4 sm:$0xff]  }
 0xcd1   : > { %4615 = vmatprep.subr.bf16.mxu0 %v8076_v27  ;;  %v8119_v27 = vld [vmem:[%s9816_s2 + $0x3f8] ss:$24 sps:$4 sm:$0xff]  }
 0xcd2   : > { %4456 = vmatpush1.bf16.msra.mxu1 %v8035_v28  ;;  %v8127_v28 = vld [vmem:[%s9816_s2 + $0x42c] ss:$24 sps:$4 sm:$0xff]  }
 0xcd3   : > { %4457 = vmatprep.subr.bf16.mxu1 %v8043_v29  ;;  %v8158_v29 = vld [vmem:[%s9816_s2 + $0x6a0] ss:$24 sps:$4 sm:$0xff]  }
 0xcd4   : > { %4616 = vmatpush1.bf16.msra.mxu0 %v8074_v30  ;;  %v8166_v30 = vld [vmem:[%s9816_s2 + $0x6d4] ss:$24 sps:$4 sm:$0xff]  }
 0xcd5   : > { %4617 = vmatprep.subr.bf16.mxu0 %v8082_v32  ;;  %v8125_v32 = vld [vmem:[%s9816_s2 + $0x428] ss:$24 sps:$4 sm:$0xff]  }
 0xcd6   : > { %4458 = vmatpush1.bf16.msra.mxu1 %v8041_v10  ;;  %v8133_v10 = vld [vmem:[%s9816_s2 + $0x45c] ss:$24 sps:$4 sm:$0xff]  }
 0xcd7   : > { %4459 = vmatprep.subr.bf16.mxu1 %v8049_v33  ;;  %v8164_v33 = vld [vmem:[%s9816_s2 + $0x6d0] ss:$24 sps:$4 sm:$0xff]  }
 0xcd8   : > { %4618 = vmatpush1.bf16.msra.mxu0 %v8080_v34  ;;  %v8172_v34 = vld [vmem:[%s9816_s2 + $0x704] ss:$24 sps:$4 sm:$0xff]  }
 0xcd9   : > { %4619 = vmatprep.subr.bf16.mxu0 %v8088_v35  ;;  %v8131_v35 = vld [vmem:[%s9816_s2 + $0x458] ss:$24 sps:$4 sm:$0xff]  }
 0xcda   : > { %4460 = vmatpush1.bf16.msra.mxu1 %v8047_v36  ;;  %v8139_v36 = vld [vmem:[%s9816_s2 + $0x48c] ss:$24 sps:$4 sm:$0xff]  }
 0xcdb   : > { %4461 = vmatprep.subr.bf16.mxu1 %v8055_v37  ;;  %v8170_v37 = vld [vmem:[%s9816_s2 + $0x700] ss:$24 sps:$4 sm:$0xff]  }
 0xcdc   : > { %4620 = vmatpush1.bf16.msra.mxu0 %v8086_v38  ;;  %v8178_v38 = vld [vmem:[%s9816_s2 + $0x734] ss:$24 sps:$4 sm:$0xff]  }
 0xcdd   : > { %4621 = vmatprep.subr.bf16.mxu0 %v8094_v39  ;;  %v8137_v39 = vld [vmem:[%s9816_s2 + $0x488] ss:$24 sps:$4 sm:$0xff]  }
 0xcde   : > { %4462 = vmatpush1.bf16.msra.mxu1 %v8053_v41  ;;  %v8145_v41 = vld [vmem:[%s9816_s2 + $0x4bc] ss:$24 sps:$4 sm:$0xff]  }
 0xcdf   : > { %4463 = vmatprep.subr.bf16.mxu1 %v8061_v42  ;;  %v8176_v42 = vld [vmem:[%s9816_s2 + $0x730] ss:$24 sps:$4 sm:$0xff]  }
 0xce0   : > { %4622 = vmatpush1.bf16.msra.mxu0 %v8092_v45  ;;  %v8184_v45 = vld [vmem:[%s9816_s2 + $0x764] ss:$24 sps:$4 sm:$0xff]  }
 0xce1   : > { %4623 = vmatprep.subr.bf16.mxu0 %v8100_v46  ;;  %v8143_v46 = vld [vmem:[%s9816_s2 + $0x4b8] ss:$24 sps:$4 sm:$0xff]  }
 0xce2   : > { %4464 = vmatpush1.bf16.msra.mxu1 %v8059_v47  ;;  %v8151_v47 = vld [vmem:[%s9816_s2 + $0x4ec] ss:$24 sps:$4 sm:$0xff]  }
 0xce3   : > { %4465 = vmatprep.subr.bf16.mxu1 %v8067_v48  ;;  %v8182_v48 = vld [vmem:[%s9816_s2 + $0x760] ss:$24 sps:$4 sm:$0xff]  }
 0xce4   : > { %4624 = vmatpush1.bf16.msra.mxu0 %v8098_v50  ;;  %v8209_v50 = vld [vmem:[%s9820_s26 + $0xc8] ss:$12 sps:$4 sm:$0xff]  }
 0xce5   : > { %4625 = vmatprep.subr.bf16.mxu0 %v8106_v51  ;;  %v8149_v51 = vld [vmem:[%s9816_s2 + $0x4e8] ss:$24 sps:$4 sm:$0xff]  }
 0xce6   : > { %4466 = vmatpush1.bf16.msra.mxu1 %v8065_v53  ;;  %v8157_v53 = vld [vmem:[%s9816_s2 + $0x51c] ss:$24 sps:$4 sm:$0xff]  }
 0xce7   : > { %4467 = vmatprep.subr.bf16.mxu1 %v8073_v54  ;;  %v8210_v54 = vld [vmem:[%s9820_s26 + $0x8] ss:$12 sps:$4 sm:$0xff]  }
 0xce8   : > { %4626 = vmatpush1.bf16.msra.mxu0 %v8104_v55  ;;  %v8214_v55 = vld [vmem:[%s9820_s26 + $0xe0] ss:$12 sps:$4 sm:$0xff]  }
 0xce9   : > { %4627 = vmatprep.subr.bf16.mxu0 %v8112_v56  ;;  %v8155_v56 = vld [vmem:[%s9816_s2 + $0x518] ss:$24 sps:$4 sm:$0xff]  }
 0xcea   : > { %4468 = vmatpush1.bf16.msra.mxu1 %v8071_v40  ;;  %v8163_v40 = vld [vmem:[%s9816_s2 + $0x54c] ss:$24 sps:$4 sm:$0xff]  }
 0xceb   : > { %4469 = vmatprep.subr.bf16.mxu1 %v8079_v57  ;;  %v8215_v57 = vld [vmem:[%s9820_s26 + $0x20] ss:$12 sps:$4 sm:$0xff]  }
 0xcec   : > { %4628 = vmatpush1.bf16.msra.mxu0 %v8110_v58  ;;  %v8219_v58 = vld [vmem:[%s9820_s26 + $0xf8] ss:$12 sps:$4 sm:$0xff]  }
 0xced   : > { %4629 = vmatprep.subr.bf16.mxu0 %v8118_v43  ;;  %v8161_v43 = vld [vmem:[%s9816_s2 + $0x548] ss:$24 sps:$4 sm:$0xff]  }
 0xcee   : > { %4470 = vmatpush1.bf16.msra.mxu1 %v8077_v59  ;;  %v8169_v59 = vld [vmem:[%s9816_s2 + $0x57c] ss:$24 sps:$4 sm:$0xff]  }
 0xcef   : > { %4471 = vmatprep.subr.bf16.mxu1 %v8085_v60  ;;  %v8220_v60 = vld [vmem:[%s9820_s26 + $0x38] ss:$12 sps:$4 sm:$0xff]  }
 0xcf0   : > { %4630 = vmatpush1.bf16.msra.mxu0 %v8116_v61  ;;  %v8224_v61 = vld [vmem:[%s9820_s26 + $0x110] ss:$12 sps:$4 sm:$0xff]  }
 0xcf1   : > { %4631 = vmatprep.subr.bf16.mxu0 %v8124_v63  ;;  %v8167_v63 = vld [vmem:[%s9816_s2 + $0x578] ss:$24 sps:$4 sm:$0xff]  }
 0xcf2   : > { %4472 = vmatpush1.bf16.msra.mxu1 %v8083_v0  ;;  %v8175_v0 = vld [vmem:[%s9816_s2 + $0x5ac] ss:$24 sps:$4 sm:$0xff]  }
 0xcf3   : > { %4482 = vmatprep.subr.bf16.mxu1 %v8091_v1  ;;  %v8225_v1 = vld [vmem:[%s9820_s26 + $0x50] ss:$12 sps:$4 sm:$0xff]  }
 0xcf4   : > { %4632 = vmatpush1.bf16.msra.mxu0 %v8122_v4  ;;  %v8229_v4 = vld [vmem:[%s9820_s26 + $0x128] ss:$12 sps:$4 sm:$0xff]  }
 0xcf5   : > { %4474 = vmatmul.mubr.bf16.vlgmr.msra.gmra.mrb[28].mxu1 %v10049_v18  ;;  %4633 = vmatprep.subr.bf16.mxu0 %v8130_v14  ;;  %v8109_v18 = vld [vmem:[%s9816_s2 + $0x39c] ss:$24 sps:$4 sm:$0xff]   ;;  %v8173_v14 = vld [vmem:[%s9816_s2 + $0x5a8] ss:$24 sps:$4 sm:$0xff]  }
 0xcf6   : > { %4483 = vmatpush1.bf16.msra.mxu1 %v8089_v5  ;;  %4514 = vmatprep.mubr.bf16.mxu1 %v10052_v20  ;;  %v8148_v20 = vld [vmem:[%s9816_s2 + $0x644] ss:$24 sps:$4 sm:$0xff]  }
 0xcf7   : > { %4484 = vmatprep.subr.bf16.mxu1 %v8097_v6  ;;  %v8181_v5 = vld [vmem:[%s9816_s2 + $0x5dc] ss:$24 sps:$4 sm:$0xff]  }
 0xcf8   : > { %4634 = vmatpush1.bf16.msra.mxu0 %v8128_v44  ;;  %v8230_v6 = vld [vmem:[%s9820_s26 + $0x68] ss:$12 sps:$4 sm:$0xff]   ;;  %v8234_v44 = vld [vmem:[%s9820_s26 + $0x140] ss:$12 sps:$4 sm:$0xff]  }
 0xcf9   : > { %4635 = vmatprep.subr.bf16.mxu0 %v8136_v7  ;;  %v8179_v7 = vld [vmem:[%s9816_s2 + $0x5d8] ss:$24 sps:$4 sm:$0xff]  }
 0xcfa   : > { %4485 = vmatpush1.bf16.msra.mxu1 %v8095_v8  ;;  %v8187_v8 = vld [vmem:[%s9816_s2 + $0x60c] ss:$24 sps:$4 sm:$0xff]  }
 0xcfb   : > { %4486 = vmatprep.subr.bf16.mxu1 %v8103_v9  ;;  %v8235_v9 = vld [vmem:[%s9820_s26 + $0x80] ss:$12 sps:$4 sm:$0xff]  }
 0xcfc   : > { %4636 = vmatpush1.bf16.msra.mxu0 %v8134_v11  ;;  %v8239_v11 = vld [vmem:[%s9820_s26 + $0x158] ss:$12 sps:$4 sm:$0xff]  }
 0xcfd   : > { %4646 = vmatprep.subr.bf16.mxu0 %v8142_v12  ;;  %v8185_v12 = vld [vmem:[%s9816_s2 + $0x608] ss:$24 sps:$4 sm:$0xff]  }
 0xcfe   : > { %4487 = vmatpush1.bf16.msra.mxu1 %v8101_v13  ;;  %v8190_v13 = vld [vmem:[%s9816_s2 + $0x63c] ss:$24 sps:$4 sm:$0xff]  }
 0xcff   : > { %4488 = vmatprep.subr.bf16.mxu1 %v8109_v18  ;;  %4638 = vmatmul.mubr.bf16.vlgmr.msra.gmra.mrb[32].mxu0 %v10098_v62  ;;  %v8240_v18 = vld [vmem:[%s9820_s26 + $0x98] ss:$12 sps:$4 sm:$0xff]  }
 0xd00   : > { %4647 = vmatpush1.bf16.msra.mxu0 %v8140_v15  ;;  %4678 = vmatprep.mubr.bf16.mxu0 %v9091_v2  ;;  %v8244_v15 = vld [vmem:[%s9820_s26 + $0x170] ss:$12 sps:$4 sm:$0xff]  }
 0xd01   : > { %4648 = vmatprep.subr.bf16.mxu0 %v8148_v20  ;;  %v8188_v20 = vld [vmem:[%s9816_s2 + $0x638] ss:$24 sps:$4 sm:$0xff]  }
 0xd02   : > { %4489 = vmatpush1.bf16.msra.mxu1 %v8107_v16  ;;  %v8193_v16 = vld [vmem:[%s9816_s2 + $0x66c] ss:$24 sps:$4 sm:$0xff]  }
 0xd03   : > { %4490 = vmatprep.subr.bf16.mxu1 %v8115_v17  ;;  %v8245_v17 = vld [vmem:[%s9820_s26 + $0xb0] ss:$12 sps:$4 sm:$0xff]  }
 0xd04   : > { %4649 = vmatpush1.bf16.msra.mxu0 %v8146_v19  ;;  %v8191_v19 = vld [vmem:[%s9816_s2 + $0x668] ss:$24 sps:$4 sm:$0xff]  }
 0xd05   : > { %4650 = vmatprep.subr.bf16.mxu0 %v8154_v22  ;;  %v8194_v22 = vld [vmem:[%s9816_s2 + $0x698] ss:$24 sps:$4 sm:$0xff]  }
 0xd06   : > { %4491 = vmatpush1.bf16.msra.mxu1 %v8113_v23  ;;  %v8197_v23 = vld [vmem:[%s9816_s2 + $0x6c8] ss:$24 sps:$4 sm:$0xff]  }
 0xd07   : > { %4492 = vmatprep.subr.bf16.mxu1 %v8121_v24  ;;  %v8202_v24 = vld [vmem:[%s9816_s2 + $0x6fc] ss:$24 sps:$4 sm:$0xff]  }
 0xd08   : > { %4651 = vmatpush1.bf16.msra.mxu0 %v8152_v25  ;;  %v8200_v25 = vld [vmem:[%s9816_s2 + $0x6f8] ss:$24 sps:$4 sm:$0xff]  }
 0xd09   : > { %4652 = vmatprep.subr.bf16.mxu0 %v8160_v26  ;;  %v8205_v26 = vld [vmem:[%s9816_s2 + $0x72c] ss:$24 sps:$4 sm:$0xff]  }
 0xd0a   : > { %4493 = vmatpush1.bf16.msra.mxu1 %v8119_v27  ;;  %v8203_v27 = vld [vmem:[%s9816_s2 + $0x728] ss:$24 sps:$4 sm:$0xff]  }
 0xd0b   : > { %4494 = vmatprep.subr.bf16.mxu1 %v8127_v28  ;;  %v8208_v28 = vld [vmem:[%s9816_s2 + $0x75c] ss:$24 sps:$4 sm:$0xff]  }
 0xd0c   : > { %4653 = vmatpush1.bf16.msra.mxu0 %v8158_v29  ;;  %v10307_v29 = vsub.s32 0, %v9987_v31 }
 0xd0d   : > { %4654 = vmatprep.subr.bf16.mxu0 %v8166_v30  ;;  %v10310_v30 = vld [vmem:[%s9818_s22] sm:$0x3f] }
 0xd0e   : > { %4495 = vmatpush1.bf16.msra.mxu1 %v8125_v32  ;;  %v3094_v32 = vsub.s32 1, %v9987_v31 }
 0xd0f   : > { %4496 = vmatprep.subr.bf16.mxu1 %v8133_v10  ;;  %v8206_v10 = vld [vmem:[%s9816_s2 + $0x758] ss:$24 sps:$4 sm:$0xff]  }
 0xd10   : > { %4655 = vmatpush1.bf16.msra.mxu0 %v8164_v33  ;;  %v8213_v33 = vld [vmem:[%s9820_s26 + $0x4] ss:$12 sps:$4 sm:$0xff]  }
 0xd11   : > { %4656 = vmatprep.subr.bf16.mxu0 %v8172_v34  ;;  %v3091_v34 = vrot.slane %v10310_v30, %v10307_v29 }
 0xd12   : > { %4497 = vmatpush1.bf16.msra.mxu1 %v8131_v35  ;;  %v3095_v35 = vrot.slane %v10310_v30, %v3094_v32 }
 0xd13   : > { %4498 = vmatprep.subr.bf16.mxu1 %v8139_v36  ;;  %v8211_v36 = vld [vmem:[%s9820_s26] ss:$12 sps:$4 sm:$0xff]  }
 0xd14   : > { %4657 = vmatpush1.bf16.msra.mxu0 %v8170_v37 }
 0xd15   : > { %4658 = vmatprep.subr.bf16.mxu0 %v8178_v38  ;;  %v8218_v38 = vld [vmem:[%s9820_s26 + $0x1c] ss:$12 sps:$4 sm:$0xff]  }
 0xd16   : > { %4499 = vmatpush1.bf16.msra.mxu1 %v8137_v39 }
 0xd17   : > { %4500 = vmatprep.subr.bf16.mxu1 %v8145_v41 }
 0xd18   : > { %4659 = vmatpush1.bf16.msra.mxu0 %v8176_v42 }
 0xd19   : > { %4660 = vmatprep.subr.bf16.mxu0 %v8184_v45 }
 0xd1a   : > { %4501 = vmatpush1.bf16.msra.mxu1 %v8143_v46 }
 0xd1b   : > { %4502 = vmatprep.subr.bf16.mxu1 %v8151_v47 }
 0xd1c   : > { %4661 = vmatpush1.bf16.msra.mxu0 %v8182_v48  ;;  %v8216_v48 = vld [vmem:[%s9820_s26 + $0x18] ss:$12 sps:$4 sm:$0xff]  }
 0xd1d   : > { %7418 = vmatprep.subr.bf16.mxu0 %v8209_v50 }
 0xd1e   : > { %4503 = vmatpush1.bf16.msra.mxu1 %v8149_v51  ;;  %v8223_v51 = vld [vmem:[%s9820_s26 + $0x34] ss:$12 sps:$4 sm:$0xff]  }
 0xd1f   : > { %4504 = vmatprep.subr.bf16.mxu1 %v8157_v53  ;;  %4679 = vmatmul.mubr.bf16.vlgmr.msra.gmra.mrb[32].mxu0 %v10118_v21 }
 0xd20   : > { %7419 = vmatpush3.bf16.msra.mxu0 %v8210_v54 }
 0xd21   : > { %7420 = vmatprep.subr.bf16.mxu0 %v8214_v55  ;;  %v8221_v55 = vld [vmem:[%s9820_s26 + $0x30] ss:$12 sps:$4 sm:$0xff]  }
 0xd22   : > { %4505 = vmatpush1.bf16.msra.mxu1 %v8155_v56  ;;  %v8226_v56 = vld [vmem:[%s9820_s26 + $0x48] ss:$12 sps:$4 sm:$0xff]  }
 0xd23   : > { %4506 = vmatprep.subr.bf16.mxu1 %v8163_v40  ;;  %v8233_v40 = vld [vmem:[%s9820_s26 + $0x64] ss:$12 sps:$4 sm:$0xff]  }
 0xd24   : > { %7421 = vmatpush3.bf16.msra.mxu0 %v8215_v57  ;;  %v8231_v57 = vld [vmem:[%s9820_s26 + $0x60] ss:$12 sps:$4 sm:$0xff]  }
 0xd25   : > { %7422 = vmatprep.subr.bf16.mxu0 %v8219_v58  ;;  %v8238_v58 = vld [vmem:[%s9820_s26 + $0x7c] ss:$12 sps:$4 sm:$0xff]  }
 0xd26   : > { %4507 = vmatpush1.bf16.msra.mxu1 %v8161_v43  ;;  %v8236_v43 = vld [vmem:[%s9820_s26 + $0x78] ss:$12 sps:$4 sm:$0xff]  }
 0xd27   : > { %4508 = vmatprep.subr.bf16.mxu1 %v8169_v59  ;;  %v8243_v59 = vld [vmem:[%s9820_s26 + $0x94] ss:$12 sps:$4 sm:$0xff]  }
 0xd28   : > { %7423 = vmatpush3.bf16.msra.mxu0 %v8220_v60  ;;  %v8241_v60 = vld [vmem:[%s9820_s26 + $0x90] ss:$12 sps:$4 sm:$0xff]  }
 0xd29   : > { %7424 = vmatprep.subr.bf16.mxu0 %v8224_v61  ;;  %v8248_v61 = vld [vmem:[%s9820_s26 + $0xac] ss:$12 sps:$4 sm:$0xff]  }
 0xd2a   : > { %4509 = vmatpush1.bf16.msra.mxu1 %v8167_v63  ;;  %v8246_v63 = vld [vmem:[%s9820_s26 + $0xa8] ss:$12 sps:$4 sm:$0xff]  }
 0xd2b   : > { %4510 = vmatprep.subr.bf16.mxu1 %v8175_v0  ;;  %v8251_v0 = vld [vmem:[%s9820_s26 + $0xc4] ss:$12 sps:$4 sm:$0xff]  }
 0xd2c   : > { %7425 = vmatpush3.bf16.msra.mxu0 %v8225_v1  ;;  %v8249_v1 = vld [vmem:[%s9820_s26 + $0xc0] ss:$12 sps:$4 sm:$0xff]  }
 0xd2d   : > { %7426 = vmatprep.subr.bf16.mxu0 %v8229_v4  ;;  %v8254_v4 = vld [vmem:[%s9820_s26 + $0xdc] ss:$12 sps:$4 sm:$0xff]  }
 0xd2e   : > { %4511 = vmatpush1.bf16.msra.mxu1 %v8173_v14  ;;  %v8252_v14 = vld [vmem:[%s9820_s26 + $0xd8] ss:$12 sps:$4 sm:$0xff]  }
 0xd2f   : > { %4512 = vmatprep.subr.bf16.mxu1 %v8181_v5  ;;  %v8257_v5 = vld [vmem:[%s9820_s26 + $0xf4] ss:$12 sps:$4 sm:$0xff]  }
 0xd30   : > { %7427 = vmatpush3.bf16.msra.mxu0 %v8230_v6  ;;  %v8300_v6 = vld [vmem:[%s9820_s26 + $0x248] ss:$12 sps:$4 sm:$0xff]  }
 0xd31   : > { %7428 = vmatprep.subr.bf16.mxu0 %v8234_v44  ;;  %v8301_v44 = vld [vmem:[%s9820_s26 + $0x188] ss:$12 sps:$4 sm:$0xff]  }
 0xd32   : > { %4513 = vmatpush1.bf16.msra.mxu1 %v8179_v7  ;;  %v8255_v7 = vld [vmem:[%s9820_s26 + $0xf0] ss:$12 sps:$4 sm:$0xff]  }
 0xd33   : > { %4523 = vmatprep.subr.bf16.mxu1 %v8187_v8  ;;  %v8305_v8 = vld [vmem:[%s9820_s26 + $0x260] ss:$12 sps:$4 sm:$0xff]  }
 0xd34   : > { %7429 = vmatpush3.bf16.msra.mxu0 %v8235_v9  ;;  %v8260_v9 = vld [vmem:[%s9820_s26 + $0x10c] ss:$12 sps:$4 sm:$0xff]  }
 0xd35   : > { %4515 = vmatmul.mubr.bf16.vlgmr.msra.gmra.mrb[28].mxu1 %v10098_v62  ;;  %7430 = vmatprep.subr.bf16.mxu0 %v8239_v11  ;;  %v8196_v62 = vld [vmem:[%s9816_s2 + $0x69c] ss:$24 sps:$4 sm:$0xff]   ;;  %v8306_v11 = vld [vmem:[%s9820_s26 + $0x1a0] ss:$12 sps:$4 sm:$0xff]  }
 0xd36   : > { %4524 = vmatpush1.bf16.msra.mxu1 %v8185_v12  ;;  %4555 = vmatprep.mubr.bf16.mxu1 %v9091_v2  ;;  %v8199_v2 = vld [vmem:[%s9816_s2 + $0x6cc] ss:$24 sps:$4 sm:$0xff]  }
 0xd37   : > { %4525 = vmatprep.subr.bf16.mxu1 %v8190_v13  ;;  %v8310_v12 = vld [vmem:[%s9820_s26 + $0x278] ss:$12 sps:$4 sm:$0xff]   ;;  %v8258_v13 = vld [vmem:[%s9820_s26 + $0x108] ss:$12 sps:$4 sm:$0xff]  }
 0xd38   : > { %7431 = vmatpush3.bf16.msra.mxu0 %v8240_v18  ;;  %v8263_v18 = vld [vmem:[%s9820_s26 + $0x124] ss:$12 sps:$4 sm:$0xff]  }
 0xd39   : > { %7432 = vmatprep.subr.bf16.mxu0 %v8244_v15  ;;  %v8311_v15 = vld [vmem:[%s9820_s26 + $0x1b8] ss:$12 sps:$4 sm:$0xff]  }
 0xd3a   : > { %4526 = vmatpush1.bf16.msra.mxu1 %v8188_v20  ;;  %v8315_v20 = vld [vmem:[%s9820_s26 + $0x290] ss:$12 sps:$4 sm:$0xff]  }
 0xd3b   : > { %4527 = vmatprep.subr.bf16.mxu1 %v8193_v16  ;;  %v8261_v16 = vld [vmem:[%s9820_s26 + $0x120] ss:$12 sps:$4 sm:$0xff]  }
 0xd3c   : > { %7433 = vmatpush3.bf16.msra.mxu0 %v8245_v17  ;;  %v8266_v17 = vld [vmem:[%s9820_s26 + $0x13c] ss:$12 sps:$4 sm:$0xff]  }
 0xd3d   : > { %7440 = vmatprep.subr.bf16.mxu0 %v8300_v6  ;;  %v8324_v6 = vld [vmem:[%s9820_s26 + $0x2bc] ss:$12 sps:$4 sm:$0xff]  }
 0xd3e   : > { %4528 = vmatpush1.bf16.msra.mxu1 %v8191_v19  ;;  %v8316_v19 = vld [vmem:[%s9820_s26 + $0x1d0] ss:$12 sps:$4 sm:$0xff]  }
 0xd3f   : > { %4529 = vmatprep.subr.bf16.mxu1 %v8196_v62  ;;  %v8320_v62 = vld [vmem:[%s9820_s26 + $0x2a8] ss:$12 sps:$4 sm:$0xff]  }
 0xd42   : > { %4530 = vmatpush1.bf16.msra.mxu1 %v8194_v22  ;;  %v8264_v22 = vld [vmem:[%s9820_s26 + $0x138] ss:$12 sps:$4 sm:$0xff]  }
 0xd43   : > { %4531 = vmatprep.subr.bf16.mxu1 %v8199_v2  ;;  %v8269_v2 = vld [vmem:[%s9820_s26 + $0x154] ss:$12 sps:$4 sm:$0xff]  }
 0xd46   : > { %4532 = vmatpush1.bf16.msra.mxu1 %v8197_v23 }
 0xd47   : > { %4533 = vmatprep.subr.bf16.mxu1 %v8202_v24  ;;  %v8321_v24 = vld [vmem:[%s9820_s26 + $0x1e8] ss:$12 sps:$4 sm:$0xff]  }
 0xd4a   : > { %4534 = vmatpush1.bf16.msra.mxu1 %v8200_v25 }
 0xd4b   : > { %4535 = vmatprep.subr.bf16.mxu1 %v8205_v26 }
 0xd4e   : > { %4536 = vmatpush1.bf16.msra.mxu1 %v8203_v27  ;;  %v8325_v27 = vld [vmem:[%s9820_s26 + $0x2c0] ss:$12 sps:$4 sm:$0xff]  }
 0xd4f   : > { %4537 = vmatprep.subr.bf16.mxu1 %v8208_v28 }
 0xd52   : > { %4538 = vmatpush1.bf16.msra.mxu1 %v8206_v10  ;;  %v4434_v37 = vpop.f32.mrb[28].mxu0  ;;  %v8267_v10 = vld [vmem:[%s9820_s26 + $0x150] ss:$12 sps:$4 sm:$0xff]  }
 0xd53   : > { %5676 = vmatprep.subr.bf16.mxu1 %v8213_v33  ;;  %v7675_v39 = vadd.f32 %v4434_v37, %v3091_v34  ;;  %v4436_v41 = vpop.f32.mrb[29].mxu0  ;;  %v8275_v37 = vld [vmem:[%s9820_s26 + $0x184] ss:$12 sps:$4 sm:$0xff]  }
 0xd54   : > { %v7676_v42 = vadd.f32 %v4436_v41, %v3095_v35  ;;  %v4438_v45 = vpop.f32.mrb[30].mxu0  ;;  %v8272_v35 = vld [vmem:[%s9820_s26 + $0x16c] ss:$12 sps:$4 sm:$0xff]   ;;  %v8281_v41 = vld [vmem:[%s9820_s26 + $0x1b4] ss:$12 sps:$4 sm:$0xff]  }
 0xd55   : > { %4556 = vmatmul.mubr.bf16.vlgmr.msra.gmra.mrb[28].mxu1 %v10118_v21  ;;  %v4687_v46 = vmax.f32 %v7675_v39, 0.0  ;;  %v4439_v47 = vpop.f32.mrb[31].mxu0  ;;  %v8228_v21 = vld [vmem:[%s9820_s26 + $0x4c] ss:$12 sps:$4 sm:$0xff]  }
 0xd56   : > { %5677 = vmatpush1.bf16.msra.mxu1 %v8211_v36  ;;  %v4688_v50 = vmax.f32 %v7676_v42, 0.0  ;;  %v8270_v36 = vld [vmem:[%s9820_s26 + $0x168] ss:$12 sps:$4 sm:$0xff]   ;;  %v8276_v39 = vld [vmem:[%s9820_s26 + $0x198] ss:$12 sps:$4 sm:$0xff]  }
 0xd57   : > { %5678 = vmatprep.subr.bf16.mxu1 %v8218_v38  ;;  %v10325_v53 = vpack.c.bf16 %v4687_v46, %v4687_v46  ;;  %v8278_v38 = vld [vmem:[%s9820_s26 + $0x19c] ss:$12 sps:$4 sm:$0xff]   ;;  %v8284_v45 = vld [vmem:[%s9820_s26 + $0x1cc] ss:$12 sps:$4 sm:$0xff]   ;;  %v8287_v47 = vld [vmem:[%s9820_s26 + $0x1e4] ss:$12 sps:$4 sm:$0xff]  }
 0xd58   : > { %v4694_v54 = vpack.c.bf16 %v4688_v50, %v4688_v50  ;;  %v8279_v42 = vld [vmem:[%s9820_s26 + $0x1b0] ss:$12 sps:$4 sm:$0xff]   ;;  %v8282_v46 = vld [vmem:[%s9820_s26 + $0x1c8] ss:$12 sps:$4 sm:$0xff]  }
 0xd59   : > { %v8290_v50 = vld [vmem:[%s9820_s26 + $0x1fc] ss:$12 sps:$4 sm:$0xff]  }
 0xd5a   : > { %5679 = vmatpush1.bf16.msra.mxu1 %v8216_v48  ;;  %5831 = vmatprep.mubr.bf16.mxu0 %v4694_v54  ;;  %v8285_v48 = vld [vmem:[%s9820_s26 + $0x1e0] ss:$12 sps:$4 sm:$0xff]  }
 0xd5b   : > { %5680 = vmatprep.subr.bf16.mxu1 %v8223_v51  ;;  %5832 = vmatmul.mubr.bf16.vlgmr.msra.gmra.mrb[36].mxu0 %v10325_v53  ;;  %v8288_v51 = vld [vmem:[%s9820_s26 + $0x1f8] ss:$12 sps:$4 sm:$0xff]  }
 0xd5c   : > { %5708 = vmatprep.mubr.bf16.mxu1 %v4694_v54  ;;  %7441 = vmatpush3.bf16.msra.mxu0 %v8301_v44  ;;  %v8330_v54 = vld [vmem:[%s9820_s26 + $0x2d8] ss:$12 sps:$4 sm:$0xff]  }
 0xd5d   : > { %7442 = vmatprep.subr.bf16.mxu0 %v8305_v8  ;;  %v8322_v44 = vld [vmem:[%s9820_s26 + $0x2b8] ss:$12 sps:$4 sm:$0xff]   ;;  %v8327_v8 = vld [vmem:[%s9820_s26 + $0x2d0] ss:$12 sps:$4 sm:$0xff]  }
 0xd5e   : > { %5681 = vmatpush1.bf16.msra.mxu1 %v8221_v55  ;;  %v8331_v55 = vld [vmem:[%s9820_s26 + $0x218] ss:$12 sps:$4 sm:$0xff]  }
 0xd5f   : > { %5682 = vmatprep.subr.bf16.mxu1 %v8228_v21  ;;  %v8291_v21 = vld [vmem:[%s9820_s26 + $0x210] ss:$12 sps:$4 sm:$0xff]  }
 0xd60   : > { %7443 = vmatpush3.bf16.msra.mxu0 %v8306_v11  ;;  %v8332_v11 = vld [vmem:[%s9820_s26 + $0x2e8] ss:$12 sps:$4 sm:$0xff]  }
 0xd61   : > { %7444 = vmatprep.subr.bf16.mxu0 %v8310_v12  ;;  %v8339_v12 = vld [vmem:[%s9820_s26 + $0x304] ss:$12 sps:$4 sm:$0xff]  }
 0xd62   : > { %5683 = vmatpush1.bf16.msra.mxu1 %v8226_v56  ;;  %v8296_v56 = vld [vmem:[%s9820_s26 + $0x22c] ss:$12 sps:$4 sm:$0xff]  }
 0xd63   : > { %5684 = vmatprep.subr.bf16.mxu1 %v8233_v40  ;;  %v8335_v40 = vld [vmem:[%s9820_s26 + $0x2f0] ss:$12 sps:$4 sm:$0xff]  }
 0xd64   : > { %7445 = vmatpush3.bf16.msra.mxu0 %v8311_v15 }
 0xd65   : > { %7446 = vmatprep.subr.bf16.mxu0 %v8315_v20 }
 0xd66   : > { %5685 = vmatpush1.bf16.msra.mxu1 %v8231_v57  ;;  %v8336_v57 = vld [vmem:[%s9820_s26 + $0x230] ss:$12 sps:$4 sm:$0xff]  }
 0xd67   : > { %5686 = vmatprep.subr.bf16.mxu1 %v8238_v58  ;;  %v8294_v58 = vld [vmem:[%s9820_s26 + $0x228] ss:$12 sps:$4 sm:$0xff]  }
 0xd68   : > { %7447 = vmatpush3.bf16.msra.mxu0 %v8316_v19  ;;  %v3102_v19 = vsub.s32 3, %v9987_v31 }
 0xd69   : > { %7448 = vmatprep.subr.bf16.mxu0 %v8320_v62 }
 0xd6a   : > { %5687 = vmatpush1.bf16.msra.mxu1 %v8236_v43  ;;  %v8299_v43 = vld [vmem:[%s9820_s26 + $0x244] ss:$12 sps:$4 sm:$0xff]  }
 0xd6b   : > { %5688 = vmatprep.subr.bf16.mxu1 %v8243_v59  ;;  %v8297_v59 = vld [vmem:[%s9820_s26 + $0x240] ss:$12 sps:$4 sm:$0xff]  }
 0xd6c   : > { %7449 = vmatpush3.bf16.msra.mxu0 %v8321_v24 }
 0xd6d   : > { %7450 = vmatprep.subr.bf16.mxu0 %v8325_v27 }
 0xd6e   : > { %5689 = vmatpush1.bf16.msra.mxu1 %v8241_v60  ;;  %v8304_v60 = vld [vmem:[%s9820_s26 + $0x25c] ss:$12 sps:$4 sm:$0xff]  }
 0xd6f   : > { %5690 = vmatprep.subr.bf16.mxu1 %v8248_v61  ;;  %v8302_v61 = vld [vmem:[%s9820_s26 + $0x258] ss:$12 sps:$4 sm:$0xff]  }
 0xd72   : > { %5691 = vmatpush1.bf16.msra.mxu1 %v8246_v63  ;;  %v8309_v63 = vld [vmem:[%s9820_s26 + $0x274] ss:$12 sps:$4 sm:$0xff]  }
 0xd73   : > { %5692 = vmatprep.subr.bf16.mxu1 %v8251_v0  ;;  %v8307_v0 = vld [vmem:[%s9820_s26 + $0x270] ss:$12 sps:$4 sm:$0xff]  }
 0xd76   : > { %5693 = vmatpush1.bf16.msra.mxu1 %v8249_v1  ;;  %v8314_v1 = vld [vmem:[%s9820_s26 + $0x28c] ss:$12 sps:$4 sm:$0xff]  }
 0xd77   : > { %5694 = vmatprep.subr.bf16.mxu1 %v8254_v4  ;;  %v8312_v4 = vld [vmem:[%s9820_s26 + $0x288] ss:$12 sps:$4 sm:$0xff]  }
 0xd7a   : > { %5695 = vmatpush1.bf16.msra.mxu1 %v8252_v14  ;;  %v8319_v14 = vld [vmem:[%s9820_s26 + $0x2a4] ss:$12 sps:$4 sm:$0xff]  }
 0xd7b   : > { %5696 = vmatprep.subr.bf16.mxu1 %v8257_v5  ;;  %v8317_v5 = vld [vmem:[%s9820_s26 + $0x2a0] ss:$12 sps:$4 sm:$0xff]  }
 0xd7e   : > { %5697 = vmatpush1.bf16.msra.mxu1 %v8255_v7  ;;  %v8329_v7 = vld [vmem:[%s9820_s26 + $0x2d4] ss:$12 sps:$4 sm:$0xff]  }
 0xd7f   : > { %5698 = vmatprep.subr.bf16.mxu1 %v8260_v9  ;;  %v8334_v9 = vld [vmem:[%s9820_s26 + $0x2ec] ss:$12 sps:$4 sm:$0xff]  }
 0xd82   : > { %5699 = vmatpush1.bf16.msra.mxu1 %v8258_v13 }
 0xd83   : > { %5700 = vmatprep.subr.bf16.mxu1 %v8263_v18 }
 0xd86   : > { %5701 = vmatpush1.bf16.msra.mxu1 %v8261_v16  ;;  %v3110_v16 = vsub.s32 5, %v9987_v31 }
 0xd87   : > { %5702 = vmatprep.subr.bf16.mxu1 %v8266_v17  ;;  %v3098_v17 = vsub.s32 2, %v9987_v31 }
 0xd88   : > { %v2792_v23 = vpop.f32.mrb[24].mxu1  ;;  %v3111_v62 = vrot.slane %v10310_v30, %v3110_v16  ;;  %v8384_v16 = vld [vmem:[%s9820_s26 + $0x46c] ss:$12 sps:$4 sm:$0xff]  }
 0xd89   : > { %v10363_v25 = vadd.f32 %v2792_v23, %v10081_v49  ;;  %v7633_v26 = vpop.f32.mrb[25].mxu1  ;;  %v8326_v49 = vld [vmem:[%s9820_s26 + $0x200] ss:$12 sps:$4 sm:$0xff]  }
 0xd8a   : > { %5703 = vmatpush1.bf16.msra.mxu1 %v8264_v22  ;;  %v2795_v28 = vpop.f32.mrb[26].mxu1  ;;  %7451 = vmatpush3.bf16.msra.mxu0 %v8326_v49  ;;  %v3099_v22 = vrot.slane %v10310_v30, %v3098_v17 }
 0xd8b   : > { %v10368_v33 = vadd.f32 %v2795_v28, %v10084_v52  ;;  %v7634_v34 = vpop.f32.mrb[27].mxu1  ;;  %5704 = vmatprep.subr.bf16.mxu1 %v8269_v2  ;;  %v8273_v52 = vld [vmem:[%s9820_s26 + $0x180] ss:$12 sps:$4 sm:$0xff]   ;;  %7452 = vmatprep.subr.bf16.mxu0 %v8330_v54  ;;  %v3103_v2 = vrot.slane %v10310_v30, %v3102_v19  ;;  %v8382_v19 = vld [vmem:[%s9820_s26 + $0x468] ss:$12 sps:$4 sm:$0xff]  }
 0xd8c   : > { %v8348_v54 = vld [vmem:[%s9820_s26 + $0x34c] ss:$12 sps:$4 sm:$0xff]  }
 0xd8e   : > { %5705 = vmatpush1.bf16.msra.mxu1 %v8267_v10  ;;  %7453 = vmatpush3.bf16.msra.mxu0 %v8331_v55  ;;  %v8346_v55 = vld [vmem:[%s9820_s26 + $0x348] ss:$12 sps:$4 sm:$0xff]  }
 0xd8f   : > { %5706 = vmatprep.subr.bf16.mxu1 %v8272_v35  ;;  %7454 = vmatprep.subr.bf16.mxu0 %v8335_v40  ;;  %v8354_v40 = vld [vmem:[%s9820_s26 + $0x37c] ss:$12 sps:$4 sm:$0xff]  }
 0xd92   : > { %5707 = vmatpush1.bf16.msra.mxu1 %v8270_v36  ;;  %7455 = vmatpush3.bf16.msra.mxu0 %v8336_v57  ;;  %v8352_v57 = vld [vmem:[%s9820_s26 + $0x378] ss:$12 sps:$4 sm:$0xff]  }
 0xd93   : > { %5717 = vmatprep.subr.bf16.mxu1 %v8275_v37 }
 0xd95   : > { %5709 = vmatmul.mubr.bf16.vlgmr.msra.gmra.mrb[32].mxu1 %v10325_v53  ;;  %v8293_v53 = vld [vmem:[%s9820_s26 + $0x214] ss:$12 sps:$4 sm:$0xff]  }
 0xd96   : > { %5718 = vmatpush1.bf16.msra.mxu1 %v8273_v52  ;;  %v8337_v52 = vld [vmem:[%s9820_s26 + $0x300] ss:$12 sps:$4 sm:$0xff]  }
 0xd97   : > { %5719 = vmatprep.subr.bf16.mxu1 %v8278_v38 }
 0xd9a   : > { %5720 = vmatpush1.bf16.msra.mxu1 %v8276_v39 }
 0xd9b   : > { %5721 = vmatprep.subr.bf16.mxu1 %v8281_v41  ;;  %v8342_v41 = vld [vmem:[%s9820_s26 + $0x31c] ss:$12 sps:$4 sm:$0xff]  }
 0xd9e   : > { %5722 = vmatpush1.bf16.msra.mxu1 %v8279_v42 }
 0xd9f   : > { %5723 = vmatprep.subr.bf16.mxu1 %v8284_v45 }
 0xda2   : > { %5724 = vmatpush1.bf16.msra.mxu1 %v8282_v46 }
 0xda3   : > { %5725 = vmatprep.subr.bf16.mxu1 %v8287_v47 }
 0xda6   : > { %5726 = vmatpush1.bf16.msra.mxu1 %v8285_v48 }
 0xda7   : > { %5727 = vmatprep.subr.bf16.mxu1 %v8290_v50  ;;  %v8340_v50 = vld [vmem:[%s9820_s26 + $0x318] ss:$12 sps:$4 sm:$0xff]  }
 0xdaa   : > { %5728 = vmatpush1.bf16.msra.mxu1 %v8288_v51  ;;  %v8345_v51 = vld [vmem:[%s9820_s26 + $0x334] ss:$12 sps:$4 sm:$0xff]  }
 0xdab   : > { %5729 = vmatprep.subr.bf16.mxu1 %v8293_v53  ;;  %v8343_v53 = vld [vmem:[%s9820_s26 + $0x330] ss:$12 sps:$4 sm:$0xff]  }
 0xdae   : > { %5730 = vmatpush1.bf16.msra.mxu1 %v8291_v21  ;;  %v8351_v21 = vld [vmem:[%s9820_s26 + $0x364] ss:$12 sps:$4 sm:$0xff]  }
 0xdaf   : > { %5731 = vmatprep.subr.bf16.mxu1 %v8296_v56  ;;  %v8349_v56 = vld [vmem:[%s9820_s26 + $0x360] ss:$12 sps:$4 sm:$0xff]  }
 0xdb2   : > { %5732 = vmatpush1.bf16.msra.mxu1 %v8294_v58  ;;  %v8357_v58 = vld [vmem:[%s9820_s26 + $0x394] ss:$12 sps:$4 sm:$0xff]  }
 0xdb3   : > { %5733 = vmatprep.subr.bf16.mxu1 %v8299_v43  ;;  %v8355_v43 = vld [vmem:[%s9820_s26 + $0x390] ss:$12 sps:$4 sm:$0xff]  }
 0xdb6   : > { %5734 = vmatpush1.bf16.msra.mxu1 %v8297_v59  ;;  %v8360_v59 = vld [vmem:[%s9820_s26 + $0x3ac] ss:$12 sps:$4 sm:$0xff]  }
 0xdb7   : > { %5735 = vmatprep.subr.bf16.mxu1 %v8304_v60  ;;  %v8358_v60 = vld [vmem:[%s9820_s26 + $0x3a8] ss:$12 sps:$4 sm:$0xff]  }
 0xdba   : > { %5736 = vmatpush1.bf16.msra.mxu1 %v8302_v61  ;;  %v8363_v61 = vld [vmem:[%s9820_s26 + $0x3c4] ss:$12 sps:$4 sm:$0xff]  }
 0xdbb   : > { %5737 = vmatprep.subr.bf16.mxu1 %v8309_v63  ;;  %v8361_v63 = vld [vmem:[%s9820_s26 + $0x3c0] ss:$12 sps:$4 sm:$0xff]  }
 0xdbe   : > { %5738 = vmatpush1.bf16.msra.mxu1 %v8307_v0  ;;  %v8366_v0 = vld [vmem:[%s9820_s26 + $0x3dc] ss:$12 sps:$4 sm:$0xff]  }
 0xdbf   : > { %5739 = vmatprep.subr.bf16.mxu1 %v8314_v1  ;;  %v8364_v1 = vld [vmem:[%s9820_s26 + $0x3d8] ss:$12 sps:$4 sm:$0xff]  }
 0xdc2   : > { %5740 = vmatpush1.bf16.msra.mxu1 %v8312_v4  ;;  %v8369_v4 = vld [vmem:[%s9820_s26 + $0x3f4] ss:$12 sps:$4 sm:$0xff]  }
 0xdc3   : > { %5741 = vmatprep.subr.bf16.mxu1 %v8319_v14  ;;  %v8367_v14 = vld [vmem:[%s9820_s26 + $0x3f0] ss:$12 sps:$4 sm:$0xff]  }
 0xdc6   : > { %5742 = vmatpush1.bf16.msra.mxu1 %v8317_v5  ;;  %v8372_v5 = vld [vmem:[%s9820_s26 + $0x40c] ss:$12 sps:$4 sm:$0xff]  }
 0xdc7   : > { %5743 = vmatprep.subr.bf16.mxu1 %v8324_v6  ;;  %v8370_v6 = vld [vmem:[%s9820_s26 + $0x408] ss:$12 sps:$4 sm:$0xff]  }
 0xdca   : > { %5744 = vmatpush1.bf16.msra.mxu1 %v8322_v44  ;;  %v8375_v44 = vld [vmem:[%s9820_s26 + $0x424] ss:$12 sps:$4 sm:$0xff]  }
 0xdcb   : > { %5745 = vmatprep.subr.bf16.mxu1 %v8329_v7  ;;  %v8373_v7 = vld [vmem:[%s9820_s26 + $0x420] ss:$12 sps:$4 sm:$0xff]  }
 0xdce   : > { %5746 = vmatpush1.bf16.msra.mxu1 %v8327_v8  ;;  %v3106_v8 = vsub.s32 4, %v9987_v31 }
 0xdcf   : > { %5747 = vmatprep.subr.bf16.mxu1 %v8334_v9  ;;  %v8378_v9 = vld [vmem:[%s9820_s26 + $0x43c] ss:$12 sps:$4 sm:$0xff]  }
 0xdd2   : > { %5748 = vmatpush1.bf16.msra.mxu1 %v8332_v11  ;;  %v8376_v11 = vld [vmem:[%s9820_s26 + $0x438] ss:$12 sps:$4 sm:$0xff]  }
 0xdd3   : > { %5758 = vmatprep.subr.bf16.mxu1 %v8339_v12  ;;  %v3107_v12 = vrot.slane %v10310_v30, %v3106_v8  ;;  %v8386_v30 = vld [vmem:[%s9820_s26 + $0x308] ss:$12 sps:$4 sm:$0xff]  }
 0xdf2   : > { %v10411_v13 = vpop.f32.mrb[32].mxu0 }
 0xdf3   : > { %v4682_v18 = vpop.f32.mrb[33].mxu0 }
 0xdf4   : > { %v4684_v15 = vpop.f32.mrb[34].mxu0  ;;  %v7680_v23 = vadd.f32 %v4682_v18, %v3111_v62  ;;  %v8381_v18 = vld [vmem:[%s9820_s26 + $0x454] ss:$12 sps:$4 sm:$0xff]  }
 0xdf5   : > { %v4685_v20 = vpop.f32.mrb[35].mxu0  ;;  %v8379_v15 = vld [vmem:[%s9820_s26 + $0x450] ss:$12 sps:$4 sm:$0xff]  }
 0xdf6   : > { %v4692_v49 = vmax.f32 %v7680_v23, 0.0  ;;  %v7679_v20 = vadd.f32 %v10411_v13, %v3107_v12  ;;  %v8387_v23 = vld [vmem:[%s9820_s26 + $0x3e0] ss:$12 sps:$4 sm:$0xff]  }
 0xdf7   : > { %v8388_v13 = vld [vmem:[%s9820_s26 + $0x320] ss:$12 sps:$4 sm:$0xff]  }
 0xdf8   : > { %v10423_v45 = vpack.c.bf16 %v4692_v49, %v4692_v49  ;;  %v4691_v62 = vmax.f32 %v7679_v20, 0.0  ;;  %v8396_v49 = vld [vmem:[%s9820_s26 + $0x380] ss:$12 sps:$4 sm:$0xff]  }
 0xe28   : > { %v4557_v24 = vpop.f32.mrb[28].mxu1 }
 0xe29   : > { %v7677_v26 = vadd.f32 %v4557_v24, %v3099_v22  ;;  %v4559_v27 = vpop.f32.mrb[29].mxu1  ;;  %v8385_v22 = vld [vmem:[%s9820_s26 + $0x3c8] ss:$12 sps:$4 sm:$0xff]   ;;  %v8389_v24 = vld [vmem:[%s9820_s26 + $0x3f8] ss:$12 sps:$4 sm:$0xff]  }
 0xe2a   : > { %v7678_v28 = vadd.f32 %v4559_v27, %v3103_v2  ;;  %v4561_v10 = vpop.f32.mrb[30].mxu1  ;;  %v4697_v2 = vpack.c.bf16 %v4691_v62, %v4691_v62  ;;  %v8391_v27 = vld [vmem:[%s9820_s26 + $0x410] ss:$12 sps:$4 sm:$0xff]  }
 0xe2b   : > { %v4689_v34 = vmax.f32 %v7677_v26, 0.0  ;;  %v4562_v35 = vpop.f32.mrb[31].mxu1  ;;  %v8390_v26 = vld [vmem:[%s9820_s26 + $0x338] ss:$12 sps:$4 sm:$0xff]   ;;  %v8393_v10 = vld [vmem:[%s9820_s26 + $0x428] ss:$12 sps:$4 sm:$0xff]  }
 0xe2c   : > { %v4690_v36 = vmax.f32 %v7678_v28, 0.0  ;;  %v8392_v28 = vld [vmem:[%s9820_s26 + $0x350] ss:$12 sps:$4 sm:$0xff]   ;;  %v8395_v35 = vld [vmem:[%s9820_s26 + $0x440] ss:$12 sps:$4 sm:$0xff]  }
 0xe2d   : > { %v4695_v39 = vpack.c.bf16 %v4689_v34, %v4689_v34  ;;  %v8394_v34 = vld [vmem:[%s9820_s26 + $0x368] ss:$12 sps:$4 sm:$0xff]  }
 0xe2e   : > { %v4696_v37 = vpack.c.bf16 %v4690_v36, %v4690_v36  ;;  %v7434_v38 = vpop.f32.mrb[36].mxu0  ;;  %v8397_v36 = vld [vmem:[%s9820_s26 + $0x458] ss:$12 sps:$4 sm:$0xff]  }
 0xe2f   : > { %v7435_v42 = vpop.f32.mrb[37].mxu0 }
 0xe30   : > { %5749 = vmatprep.mubr.bf16.mxu1 %v4696_v37  ;;  %5871 = vmatprep.mubr.bf16.mxu0 %v4696_v37  ;;  %v10425_v46 = vadd.f32 %v7435_v42, %v7434_v38  ;;  %v7437_v47 = vpop.f32.mrb[38].mxu0  ;;  %v8398_v37 = vld [vmem:[%s9820_s26 + $0x398] ss:$12 sps:$4 sm:$0xff]   ;;  %v8400_v42 = vld [vmem:[%s9820_s26 + $0x3b0] ss:$12 sps:$4 sm:$0xff]  }
 0xe31   : > { %5750 = vmatmul.mubr.bf16.vlgmr.msra.gmra.mrb[32].mxu1 %v4695_v39  ;;  %5872 = vmatmul.mubr.bf16.vlgmr.msra.gmra.mrb[40].mxu0 %v4695_v39  ;;  %v7438_v48 = vpop.f32.mrb[39].mxu0  ;;  %v8401_v38 = vld [vmem:[%s9802_s3 + $0x40] sm:$0xff]   ;;  %v8405_v47 = vld [vmem:[%s9802_s3 + $0x50] sm:$0xff]  }
 0xe32   : > { %5759 = vmatpush1.bf16.msra.mxu1 %v8337_v52  ;;  %5790 = vmatprep.mubr.bf16.mxu1 %v10423_v45  ;;  %v8399_v52 = vld [vmem:[%s9820_s26 + $0x470] ss:$12 sps:$4 sm:$0xff]  }
 0xe33   : > { %5760 = vmatprep.subr.bf16.mxu1 %v8342_v41  ;;  %v8402_v39 = vld [vmem:[%s9802_s3] sm:$0xff]   ;;  %v8403_v41 = vld [vmem:[%s9802_s3 + $0x48] sm:$0xff]   ;;  %7484 = vmatprep.subr.bf16.mxu0 %v8401_v38  ;;  %v8406_v48 = vld [vmem:[%s9802_s3 + $0x10] sm:$0xff]   ;;  %v9092_v38 = vmov 1966171168  }
 0xe34   : > { %7485 = vmatpush3.bf16.msra.mxu0 %v8402_v39  ;;  %v6206_v39 = vunpack.c.l.s4 %v9092_v38 }
 0xe35   : > { %7486 = vmatprep.subr.bf16.mxu0 %v8403_v41 }
 0xe36   : > { %5761 = vmatpush1.bf16.msra.mxu1 %v8340_v50  ;;  %v8407_v50 = vld [vmem:[%s9802_s3 + $0x58] sm:$0xff]   ;;  %v6207_v41 = vunpack.c.0.s8 %v6206_v39 }
 0xe37   : > { %5762 = vmatprep.subr.bf16.mxu1 %v8345_v51  ;;  %v8408_v51 = vld [vmem:[%s9802_s3 + $0x18] sm:$0xff]  }
 0xe3a   : > { %5763 = vmatpush1.bf16.msra.mxu1 %v8343_v53  ;;  %v8409_v53 = vld [vmem:[%s9802_s3 + $0x60] sm:$0xff]  }
 0xe3b   : > { %5764 = vmatprep.subr.bf16.mxu1 %v8348_v54  ;;  %v8410_v54 = vld [vmem:[%s9802_s3 + $0x20] sm:$0xff]  }
 0xe3e   : > { %5765 = vmatpush1.bf16.msra.mxu1 %v8346_v55  ;;  %v8411_v55 = vld [vmem:[%s9802_s3 + $0x68] sm:$0xff]  }
 0xe3f   : > { %5766 = vmatprep.subr.bf16.mxu1 %v8351_v21  ;;  %v8412_v21 = vld [vmem:[%s9802_s3 + $0x28] sm:$0xff]  }
 0xe42   : > { %5767 = vmatpush1.bf16.msra.mxu1 %v8349_v56  ;;  %v8413_v56 = vld [vmem:[%s9802_s3 + $0x70] sm:$0xff]  }
 0xe43   : > { %5768 = vmatprep.subr.bf16.mxu1 %v8354_v40  ;;  %v8414_v40 = vld [vmem:[%s9802_s3 + $0x30] sm:$0xff]  }
 0xe46   : > { %5769 = vmatpush1.bf16.msra.mxu1 %v8352_v57  ;;  %v8415_v57 = vld [vmem:[%s9802_s3 + $0x78] sm:$0xff]  }
 0xe47   : > { %5770 = vmatprep.subr.bf16.mxu1 %v8357_v58  ;;  %v8416_v58 = vld [vmem:[%s9802_s3 + $0x38] sm:$0xff]  }
 0xe4a   : > { %5771 = vmatpush1.bf16.msra.mxu1 %v8355_v43  ;;  %v8417_v43 = vld [vmem:[%s9802_s3 + $0x80] sm:$0xff]  }
 0xe4b   : > { %5772 = vmatprep.subr.bf16.mxu1 %v8360_v59  ;;  %v8418_v59 = vld [vmem:[%s9802_s3 + $0x88] sm:$0xff]  }
 0xe4e   : > { %5773 = vmatpush1.bf16.msra.mxu1 %v8358_v60  ;;  %v8419_v60 = vld [vmem:[%s9802_s3 + $0x90] sm:$0xff]  }
 0xe4f   : > { %5774 = vmatprep.subr.bf16.mxu1 %v8363_v61  ;;  %v8420_v61 = vld [vmem:[%s9802_s3 + $0x98] sm:$0xff]  }
 0xe52   : > { %5775 = vmatpush1.bf16.msra.mxu1 %v8361_v63  ;;  %v8421_v63 = vld [vmem:[%s9802_s3 + $0xa0] sm:$0xff]  }
 0xe53   : > { %5776 = vmatprep.subr.bf16.mxu1 %v8366_v0  ;;  %v8422_v0 = vld [vmem:[%s9802_s3 + $0xa8] sm:$0xff]  }
 0xe56   : > { %5777 = vmatpush1.bf16.msra.mxu1 %v8364_v1  ;;  %v8423_v1 = vld [vmem:[%s9802_s3 + $0xb0] sm:$0xff]  }
 0xe57   : > { %5778 = vmatprep.subr.bf16.mxu1 %v8369_v4  ;;  %v8424_v4 = vld [vmem:[%s9802_s3 + $0xb8] sm:$0xff]  }
 0xe5a   : > { %5779 = vmatpush1.bf16.msra.mxu1 %v8367_v14  ;;  %v4891_v14 = vld [vmem:[%s9822_s16] sm:$0x7] }
 0xe5b   : > { %5780 = vmatprep.subr.bf16.mxu1 %v8372_v5  ;;  %v4904_v5 = vrot.slane %v4891_v14, %v3098_v17 }
 0xe5e   : > { %5781 = vmatpush1.bf16.msra.mxu1 %v8370_v6 }
 0xe5f   : > { %5782 = vmatprep.subr.bf16.mxu1 %v8375_v44 }
 0xe62   : > { %5783 = vmatpush1.bf16.msra.mxu1 %v8373_v7  ;;  %v5834_v7 = vadd.f32 %v10425_v46, %v4904_v5 }
 0xe63   : > { %5784 = vmatprep.subr.bf16.mxu1 %v8378_v9 }
 0xe66   : > { %5785 = vmatpush1.bf16.msra.mxu1 %v8376_v11 }
 0xe67   : > { %5786 = vmatprep.subr.bf16.mxu1 %v8381_v18  ;;  %v4896_v18 = vrot.slane %v4891_v14, %v10307_v29 }
 0xe6a   : > { %5787 = vmatpush1.bf16.msra.mxu1 %v8379_v15  ;;  %v4900_v15 = vrot.slane %v4891_v14, %v3094_v32 }
 0xe6b   : > { %5788 = vmatprep.subr.bf16.mxu1 %v8384_v16 }
 0xe6e   : > { %5789 = vmatpush1.bf16.msra.mxu1 %v8382_v19 }
 0xe6f   : > { %7462 = vmatprep.subr.bf16.mxu1 %v8385_v22 }
 0xe71   : > { %5791 = vmatmul.mubr.bf16.vlgmr.msra.gmra.mrb[32].mxu1 %v4697_v2 }
 0xe72   : > { %7463 = vmatpush3.bf16.msra.mxu1 %v8386_v30  ;;  %5911 = vmatprep.mubr.bf16.mxu1 %v10423_v45  ;;  %v8404_v45 = vld [vmem:[%s9802_s3 + $0x8] sm:$0xff]  }
 0xe73   : > { %7464 = vmatprep.subr.bf16.mxu1 %v8387_v23  ;;  %7487 = vmatpush3.bf16.msra.mxu0 %v8404_v45 }
 0xe74   : > { %7488 = vmatprep.subr.bf16.mxu0 %v8405_v47  ;;  %v6210_v47 = vsub.s32 %v6207_v41, %v9987_v31 }
 0xe76   : > { %7465 = vmatpush3.bf16.msra.mxu1 %v8388_v13 }
 0xe77   : > { %7466 = vmatprep.subr.bf16.mxu1 %v8389_v24  ;;  %7489 = vmatpush3.bf16.msra.mxu0 %v8406_v48 }
 0xe78   : > { %7490 = vmatprep.subr.bf16.mxu0 %v8407_v50 }
 0xe7a   : > { %7467 = vmatpush3.bf16.msra.mxu1 %v8390_v26 }
 0xe7b   : > { %7468 = vmatprep.subr.bf16.mxu1 %v8391_v27  ;;  %7491 = vmatpush3.bf16.msra.mxu0 %v8408_v51 }
 0xe7c   : > { %7492 = vmatprep.subr.bf16.mxu0 %v8409_v53 }
 0xe7e   : > { %7469 = vmatpush3.bf16.msra.mxu1 %v8392_v28 }
 0xe7f   : > { %7470 = vmatprep.subr.bf16.mxu1 %v8393_v10  ;;  %7493 = vmatpush3.bf16.msra.mxu0 %v8410_v54 }
 0xe80   : > { %7494 = vmatprep.subr.bf16.mxu0 %v8411_v55 }
 0xe82   : > { %7471 = vmatpush3.bf16.msra.mxu1 %v8394_v34 }
 0xe83   : > { %7472 = vmatprep.subr.bf16.mxu1 %v8395_v35  ;;  %7495 = vmatpush3.bf16.msra.mxu0 %v8412_v21  ;;  %v6941_v21 = vld [vmem:[%s959_s7] ss:$0 sm:$0xff] }
 0xe84   : > { %7496 = vmatprep.subr.bf16.mxu0 %v8413_v56 }
 0xe86   : > { %7473 = vmatpush3.bf16.msra.mxu1 %v8396_v49 }
 0xe87   : > { %7474 = vmatprep.subr.bf16.mxu1 %v8397_v36  ;;  %7497 = vmatpush3.bf16.msra.mxu0 %v8414_v40 }
 0xe88   : > { %7498 = vmatprep.subr.bf16.mxu0 %v8415_v57  ;;  %v2808_v57 = vadd.f32 %v6941_v21, %v10363_v25 }
 0xe8a   : > { %7475 = vmatpush3.bf16.msra.mxu1 %v8398_v37 }
 0xe8b   : > { %7476 = vmatprep.subr.bf16.mxu1 %v8399_v52  ;;  %7499 = vmatpush3.bf16.msra.mxu0 %v8416_v58 }
 0xe8c   : > { %7655 = vmatprep.subr.bf16.mxu0 %v9077_v3 }
 0xe8e   : > { %7477 = vmatpush3.bf16.msra.mxu1 %v8400_v42  ;;  %v7327_v42 = vld [vmem:[%s1060_s29] ss:$0 sm:$0xff] }
 0xe8f   : > { %7635 = vmatprep.subr.bf16.mxu1 %v9077_v3 }
 0xe91   : > { %5912 = vmatmul.mubr.bf16.vlgmr.msra.gmra.mrb[36].mxu1 %v4697_v2 }
 0xe92   : > { %7651 = vmatprep.mubr.msk.bf16.mxu1 %vm9078_vm1, %v9077_v3  ;;  %7636 = vmatpush3.bf16.msra.mxu1 %v8417_v43 }
 0xe93   : > { %7637 = vmatprep.subr.bf16.mxu1 %v9077_v3 }
 0xe96   : > { %7638 = vmatpush3.bf16.msra.mxu1 %v8418_v59  ;;  %v2809_v59 = vadd.f32 %v6941_v21, %v10368_v33 }
 0xe97   : > { %7639 = vmatprep.subr.bf16.mxu1 %v9077_v3 }
 0xe9a   : > { %7640 = vmatpush3.bf16.msra.mxu1 %v8419_v60 }
 0xe9b   : > { %7641 = vmatprep.subr.bf16.mxu1 %v9077_v3 }
 0xe9e   : > { %7642 = vmatpush3.bf16.msra.mxu1 %v8420_v61  ;;  %v8471_v61 = vld [vmem:[#allocation2] sm:$0xff] }
 0xe9f   : > { %7643 = vmatprep.subr.bf16.mxu1 %v9077_v3 }
 0xea2   : > { %7644 = vmatpush3.bf16.msra.mxu1 %v8421_v63 }
 0xea3   : > { %7645 = vmatprep.subr.bf16.mxu1 %v9077_v3 }
 0xea6   : > { %7646 = vmatpush3.bf16.msra.mxu1 %v8422_v0 }
 0xea7   : > { %7647 = vmatprep.subr.bf16.mxu1 %v9077_v3 }
 0xeaa   : > { %7648 = vmatpush3.bf16.msra.mxu1 %v8423_v1 }
 0xeab   : > { %7649 = vmatprep.subr.bf16.mxu1 %v9077_v3 }
 0xeae   : > { %7650 = vmatpush3.bf16.msra.mxu1 %v8424_v4  ;;  %v8472_v4 = vld [vmem:[#allocation2 + $0x8] sm:$0xff] }
 0xeaf   : > { %7663 = vmatprep.subr.bf16.mxu1 %v9077_v3 }
 0xf04   : > { %v7456_v6 = vpop.f32.mrb[40].mxu0 }
 0xf05   : > { %v7457_v44 = vpop.f32.mrb[41].mxu0 }
 0xf06   : > { %v7458_v8 = vadd.f32 %v7457_v44, %v7456_v6  ;;  %v7459_v9 = vpop.f32.mrb[42].mxu0 }
 0xf07   : > { %v7460_v11 = vpop.f32.mrb[43].mxu0 }
 0xf08   : > { %v5874_v12 = vadd.f32 %v7458_v8, %v5834_v7 }
 0xf44   : > { %v5792_v20 = vpop.f32.mrb[32].mxu1 }
 0xf45   : > { %v7681_v16 = vadd.f32 %v5792_v20, %v4896_v18  ;;  %v5794_v19 = vpop.f32.mrb[33].mxu1  ;;  %v8425_v18 = vld [vmem:[%s968_s9] sm:$0xff]  }
 0xf46   : > { %v7682_v62 = vadd.f32 %v5794_v19, %v4900_v15  ;;  %v5796_v22 = vpop.f32.mrb[34].mxu1  ;;  %v8426_v15 = vld [vmem:[%s968_s9 + $0x8] sm:$0xff]  }
 0xf47   : > { %v5919_v30 = vmax.f32 %v7681_v16, 0.0  ;;  %v5797_v17 = vpop.f32.mrb[35].mxu1  ;;  %v8427_v20 = vld [vmem:[%s9797_s27] sm:$0xff]   ;;  %v8428_v16 = vld [vmem:[%s9797_s27 + $0x8] sm:$0xff]  }
 0xf48   : > { %v5920_v2 = vmax.f32 %v7682_v62, 0.0 }
 0xf49   : > { %v5922_v13 = vpack.c.bf16 %v5919_v30, %v5919_v30 }
 0xf4a   : > { %v5923_v23 = vpack.c.bf16 %v5920_v2, %v5920_v2 }
 0xf4c   : > { %6156 = vmatprep.mubr.bf16.mxu0 %v5923_v23 }
 0xf4d   : > { %6157 = vmatmul.mubr.bf16.vlgmr.msra.gmra.mrb[44].mxu0 %v5922_v13 }
 0xf4e   : > { %7659 = vmatprep.mubr.msk.bf16.mxu0 %vm9078_vm1, %v9077_v3  ;;  %7656 = vmatpush3.bf16.msra.mxu0 %v8425_v18 }
 0xf4f   : > { %7657 = vmatprep.subr.bf16.mxu0 %v9077_v3 }
 0xf52   : > { %7658 = vmatpush3.bf16.msra.mxu0 %v8426_v15  ;;  %v7365_v15 = vld [vmem:[%s1016_s15] ss:$0 sm:$0xff] }
 0xf64   : > { %v7478_v46 = vpop.f32.mrb[36].mxu1 }
 0xf65   : > { %v7479_v24 = vpop.f32.mrb[37].mxu1 }
 0xf66   : > { %v7480_v26 = vadd.f32 %v7479_v24, %v7478_v46  ;;  %v7481_v32 = vpop.f32.mrb[38].mxu1  ;;  %v7352_v46 = vld [vmem:[%s992_s12] ss:$0 sm:$0xff] }
 0xf67   : > { %v7482_v27 = vpop.f32.mrb[39].mxu1 }
 0xf68   : > { %v5914_v28 = vadd.f32 %v7480_v26, %v5874_v12  ;;  %v7353_v27 = vld [vmem:[%s1000_s30] ss:$0 sm:$0xff] }
 0xf6a   : > { %v5921_v10 = vmax.f32 %v5914_v28, 0.0 }
 0xf6c   : > { %v5924_v34 = vpack.c.bf16 %v5921_v10, %v5921_v10 }
 0xf6e   : > { %7652 = vmatmul.mubr.bf16.vlgmr.msra.gmra.mrb[40].mxu1 %v5924_v34 }
 0xf6f   : > { %7671 = vmatprep.mubr.msk.bf16.mxu1 %vm9078_vm1, %v9077_v3  ;;  %7664 = vmatpush3.bf16.msra.mxu1 %v8427_v20 }
 0xf70   : > { %7665 = vmatprep.subr.bf16.mxu1 %v9077_v3 }
 0xf73   : > { %7666 = vmatpush3.bf16.msra.mxu1 %v8428_v16 }
 0xf74   : > { %7667 = vmatprep.subr.bf16.mxu1 %v9077_v3 }
0x1020   : > { %v7500_v35 = vpop.f32.mrb[44].mxu0 }
0x1021   : > { %v7501_v49 = vpop.f32.mrb[45].mxu0 }
0x1022   : > { %v7502_v36 = vadd.f32 %v7501_v49, %v7500_v35  ;;  %v7503_v37 = vpop.f32.mrb[46].mxu0  ;;  %v8429_v49 = vld [vmem:[%s9797_s27 + $0x10] sm:$0xff]  }
0x1023   : > { %v7504_v52 = vpop.f32.mrb[47].mxu0  ;;  %7668 = vmatpush3.bf16.msra.mxu1 %v8429_v49  ;;  %v7354_v37 = vld [vmem:[%s976_s10] ss:$0 sm:$0xff] }
0x1024   : > { %v6159_v45 = vadd.f32 %v7502_v36, %v7327_v42  ;;  %7669 = vmatprep.subr.bf16.mxu1 %v9077_v3  ;;  %v8430_v36 = vld [vmem:[%s9797_s27 + $0x18] sm:$0xff]  }
0x1027   : > { %7670 = vmatpush3.bf16.msra.mxu1 %v8430_v36 }
0x1041   : > { %v6198_v48 = vpop.f32.mrb[40].mxu1 }
0x1042   : > { %v6199_v50 = vadd.f32 %v6198_v48, %v6159_v45  ;;  %v7653_v51 = vpop.f32.mrb[41].mxu1 }
0x1043   : > { %v6201_v53 = vpop.f32.mrb[42].mxu1  ;;  %v7358_v51 = vld [vmem:[%s984_s11] ss:$0 sm:$0xff] }
0x1044   : > { %v6211_v54 = vrot.slane %v6199_v50, %v6210_v47  ;;  %v7654_v55 = vpop.f32.mrb[43].mxu1 }
0x1046   : > { %v6212_v56 = vcombine.high %v6211_v54, %v6211_v54  ;;  %v6219_v40 = vrot.slane %v6211_v54, %v6210_v47 }
0x1048   : > { %v6226_v58 = vrot.slane %v6212_v56, %v6210_v47  ;;  %v10531_v43 = vrot.slane %v6219_v40, %v10307_v29 }
0x104a   : > { %v6237_v31 = vadd.f32 %v10531_v43, %v2808_v57  ;;  %v10536_v60 = vrot.slane %v6226_v58, %v10307_v29 }
0x104c   : > { %v6239_v63 = vadd.f32 %v8471_v61, %v6237_v31  ;;  %v6238_v0 = vadd.f32 %v10536_v60, %v2809_v59 }
0x104e   : > { %v6243_v1 = vsel %vm1236_vm2, %v6239_v63, 0.0  ;;  %v6240_v14 = vadd.f32 %v8472_v4, %v6238_v0 }
0x104f   : > { %6244 = vadd.xlane.f32.xlu0 %v6243_v1 }
0x1050   : > { %v6246_v25 = vsel %vm1236_vm2, %v6240_v14, 0.0 }
0x1051   : > { %6247 = vadd.xlane.f32.xlu1 %v6246_v25 }
0x10dc   : > { %v6245_v33 = vpop.xlane.xlu0 %6244 }
0x10dd   : > { %v6250_v5 = vmul.f32 0.03125, %v6245_v33 }
0x10de   : > { %v6248_v6 = vpop.xlane.xlu1 %6247 }
0x10df   : > { %v6252_v29 = vsub.f32 %v6239_v63, %v6250_v5  ;;  %v6251_v44 = vmul.f32 0.03125, %v6248_v6 }
0x10e1   : > { %v6253_v7 = vsub.f32 %v6240_v14, %v6251_v44  ;;  %v6254_v8 = vmul.f32 %v6252_v29, %v6252_v29 }
0x10e3   : > { %v6256_v9 = vsel %vm1236_vm2, %v6254_v8, 0.0  ;;  %v6255_v11 = vmul.f32 %v6253_v7, %v6253_v7 }
0x10e4   : > { %6257 = vadd.xlane.f32.xlu0 %v6256_v9 }
0x10e5   : > { %v6259_v12 = vsel %vm1236_vm2, %v6255_v11, 0.0 }
0x10e8   : > { %6260 = vadd.xlane.f32.xlu0 %v6259_v12  ;;  %v7364_v12 = vld [vmem:[%s1008_s13] ss:$0 sm:$0xff] }
0x1171   : > { %v6258_v19 = vpop.xlane.xlu0 %6257 }
0x1172   : > { %v6262_v62 = vmul.f32 0.03125, %v6258_v19 }
0x1174   : > { %v6264_v22 = vadd.f32 1e-05, %v6262_v62 }
0x1175   : > { %v6261_v30 = vpop.xlane.xlu0 %6260 }
0x1176   : > { %8463 = vrsqrt.f32 %v6264_v22  ;;  %v6263_v17 = vmul.f32 0.03125, %v6261_v30 }
0x1178   : > { %v6265_v2 = vadd.f32 1e-05, %v6263_v17 }
0x117a   : > { %8465 = vrsqrt.f32 %v6265_v2 }
0x1180   : > { %v8464_v23 = vpop.eup %8463 }
0x1181   : > { %v6268_v13 = vmul.f32 %v8464_v23, %v6252_v29 }
0x1183   : > { %v6276_v26 = vmul.f32 %v7352_v46, %v6268_v13 }
0x1184   : > { %v8466_v24 = vpop.eup %8465 }
0x1185   : > { %v6269_v32 = vmul.f32 %v8466_v24, %v6253_v7  ;;  %v6284_v10 = vadd.f32 %v7353_v27, %v6276_v26 }
0x1187   : > { %v6277_v28 = vmul.f32 %v7352_v46, %v6269_v32 }
0x1189   : > { %v6285_v34 = vadd.f32 %v7353_v27, %v6277_v28 }
0x118b   : > { %v6286_v35 = vpack.c.bf16 %v6285_v34, %v6284_v10 }
0x118d   : > { %7660 = vmatmul.mubr.msk.bf16.vlgmr.msra.gmra.mrb[48].mxu0 %vm1236_vm2, %v6286_v35 }
0x1260   : > { %v6347_v52 = vpop.f32.mrb[48].mxu0 }
0x1261   : > { %v6348_v38 = vadd.f32 %v7354_v37, %v6347_v52  ;;  %v7661_v39 = vpop.f32.mrb[49].mxu0 }
0x1262   : > { %v6350_v41 = vpop.f32.mrb[50].mxu0 }
0x1263   : > { %v6351_v42 = vadd.f32 %v7354_v37, %v6350_v41  ;;  %v7662_v45 = vpop.f32.mrb[51].mxu0  ;;  %v6354_v47 = vmax.f32 %v6348_v38, 0.0 }
0x1265   : > { %v6355_v48 = vmax.f32 %v6351_v42, 0.0 }
0x1267   : > { %v6356_v50 = vpack.c.bf16 %v6355_v48, %v6354_v47 }
0x1269   : > { %7672 = vmatmul.mubr.msk.bf16.vlgmr.msra.gmra.mrb[44].mxu1 %vm6396_vm5, %v6356_v50 }
0x133c   : > { %v6434_v53 = vpop.f32.mrb[44].mxu1 }
0x133d   : > { %v6435_v54 = vadd.f32 %v7358_v51, %v6434_v53  ;;  %v7673_v3 = vpop.f32.mrb[45].mxu1 }
0x133e   : > { %v6437_v55 = vpop.f32.mrb[46].mxu1 }
0x133f   : > { %v6441_v21 = vadd.f32 %v6435_v54, %v10531_v43  ;;  %v6438_v56 = vadd.f32 %v7358_v51, %v6437_v55  ;;  %v7674_v40 = vpop.f32.mrb[47].mxu1 }
0x1341   : > { %v6442_v57 = vadd.f32 %v6438_v56, %v10536_v60  ;;  %v6443_v58 = vadd.f32 %v6441_v21, %v6284_v10 }
0x1343   : > { %v6447_v59 = vsel %vm1236_vm2, %v6443_v58, 0.0  ;;  %v6444_v31 = vadd.f32 %v6442_v57, %v6285_v34 }
0x1344   : > { %6448 = vadd.xlane.f32.xlu0 %v6447_v59 }
0x1345   : > { %v6450_v61 = vsel %vm1236_vm2, %v6444_v31, 0.0 }
0x1348   : > { %6451 = vadd.xlane.f32.xlu0 %v6450_v61 }
0x13d1   : > { %v6449_v63 = vpop.xlane.xlu0 %6448 }
0x13d2   : > { %v6453_v0 = vmul.f32 0.03125, %v6449_v63 }
0x13d4   : > { %v6455_v1 = vsub.f32 %v6443_v58, %v6453_v0 }
0x13d5   : > { %v6452_v4 = vpop.xlane.xlu0 %6451 }
0x13d6   : > { %v6454_v14 = vmul.f32 0.03125, %v6452_v4  ;;  %v6457_v25 = vmul.f32 %v6455_v1, %v6455_v1 }
0x13d8   : > { %v6456_v43 = vsub.f32 %v6444_v31, %v6454_v14  ;;  %v6459_v33 = vsel %vm1236_vm2, %v6457_v25, 0.0 }
0x13d9   : > { %6460 = vadd.xlane.f32.xlu1 %v6459_v33 }
0x13da   : > { %v6458_v60 = vmul.f32 %v6456_v43, %v6456_v43 }
0x13dc   : > { %v6462_v5 = vsel %vm1236_vm2, %v6458_v60, 0.0 }
0x13dd   : > { %6463 = vadd.xlane.f32.xlu0 %v6462_v5 }
0x1466   : > { %v6461_v6 = vpop.xlane.xlu1 %6460 }
0x1467   : > { %v6465_v29 = vmul.f32 0.03125, %v6461_v6 }
0x1469   : > { %v6467_v44 = vadd.f32 1e-05, %v6465_v29 }
0x146a   : > { %v6464_v7 = vpop.xlane.xlu0 %6463 }
0x146b   : > { %8467 = vrsqrt.f32 %v6467_v44  ;;  %v6466_v8 = vmul.f32 0.03125, %v6464_v7 }
0x146d   : > { %v6468_v9 = vadd.f32 1e-05, %v6466_v8 }
0x146f   : > { %8469 = vrsqrt.f32 %v6468_v9 }
0x1475   : > { %v8468_v11 = vpop.eup %8467 }
0x1476   : > { %v6471_v18 = vmul.f32 %v8468_v11, %v6455_v1 }
0x1478   : > { %v6479_v20 = vmul.f32 %v7364_v12, %v6471_v18 }
0x1479   : > { %v8470_v16 = vpop.eup %8469 }
0x147a   : > { %v6487_v19 = vadd.f32 %v7365_v15, %v6479_v20  ;;  %v6472_v62 = vmul.f32 %v8470_v16, %v6456_v43  ;;  %6494 = sbr.rel (%p7366_p8) target bundleno = 5249 (0x1481), region = 180 }
0x147c   : > { %6489 = vst.msk [vmem:[#allocation2] sm:$0xff] %vm1236_vm2, %v6487_v19  ;;  %v6480_v22 = vmul.f32 %v7364_v12, %v6472_v62  ;;  %6495 = vst.msk [vmem:[#allocation24] sm:$0xff] (!%p7366_p8), %vm1236_vm2, %v6487_v19 }
0x147e   : > { %v6488_v30 = vadd.f32 %v7365_v15, %v6480_v22 }
0x1480   : > { %6490 = vst.msk [vmem:[#allocation2 + $0x8] sm:$0xff] %vm1236_vm2, %v6488_v30  ;;  %6496 = vst.msk [vmem:[#allocation24 + $0x8] sm:$0xff] (!%p7366_p8), %vm1236_vm2, %v6488_v30 }
0x1481 PF: > { %s10740_s7 = sld [smem:[#allocation31_spill]]  ;;  %s9093_s9 = smov [#allocation24]  }
0x1482   : > { %s6503_s10 = sshll.u32 %s9093_s9, 4  ;;  %s6504_s10 = int_to_ptr.vmem [resolvable:$true] %s6503_s10 }
0x1483   : > { %s8977_s11 = scalar_lea.vmem %s6504_s10, 256  ;;  %p8984_p6 = scmp.lt.s32.totalorder %s6504_s10, %s6504_s10 }
0x1484   : > { %p8978_p2 = scmp.ne.s32.totalorder %s6504_s10, %s8977_s11  ;;  %p8985_p3 = scmp.lt.s32.totalorder %s8977_s11, %s8977_s11 }
0x1486   : > { %p8986_p11 = por %p8985_p3, %p8984_p6 }
0x1487   : > { %p7783_p5 = scmp.eq.s32.totalorder %s10740_s7, 1 }
0x1489   : > { %p8979_p9 = pnand %p8978_p2, %p7783_p5 }
0x148b   : > { %p8980_p10 = pneg %p8979_p9 }
0x148d   : > { %p8987_p7 = pnand %p8986_p11, %p8980_p10 }
0x148f   : > { %8990 = shalt.err (!%p8987_p7)
}
0x1490   : > { %s10741_s15 = sld [smem:[#allocation56_spill]] }
0x1496   : > { %s8991_s1 = scalar_lea.hbm %s10741_s15, 256 }
0x1497   : > { %p8992_p4 = scmp.ne.s32.totalorder %s10741_s15, %s8991_s1  ;;  %p8997_p13 = scmp.lt.u32.totalorder %s8991_s1, %s10741_s15 }
0x1499   : > { %p8993_p12 = pnand %p8992_p4, %p7783_p5 }
0x149b   : > { %p8994_p0 = pneg %p8993_p12 }
0x149d   : > { %p8999_p1 = pnand %p8997_p13, %p8994_p0 }
0x149f   : > { %9002 = shalt.err (!%p8999_p1)
}
0x14a0   : > { %s9094_s2 = smov 128   ;;  %s9095_s22 = smov 8  }
0x14a1   : > { %7769 = dma.vmem_to_hbm [thread:$0]  (%p7783_p5), %s6504_s10, 256, %s10741_s15, [#allocation5], %s9094_s2, %s9094_s2, %s9095_s22  }
0x14a2   : > { %9032 = dma.done.wait (%p7783_p5), [#allocation5], 256  }
0x14a3   : > { %9034 = vsyncadd (%p7783_p5), [#allocation5], 4294967040 }
0x14a4 PF: > { %s10742_s24 = sld [smem:[#allocation32_spill]]  ;;  %s10743_s1 = sld [smem:[#allocation29_spill]] }
0x14a5   : > { %s10744_s22 = sld [smem:[#allocation30_spill]]  ;;  %s10745_s23 = sld [smem:[#allocation33_spill]] }
0x14aa   : > { %p30_p8 = scmp.ge.s32.totalorder %s10742_s24, 4  }
0x14ac   :  { %32 = sbr.rel (!%p30_p8) target bundleno = 26 (0x1a), region = 323 }
0x14b3   :  { %6519 = vsyncpa [#allocation4], 1 }
0x14b4   :  { %6521 = vsyncpa [#allocation4 + $0x1], 1 }
0x14b5   :  { %6522 = vsyncpa [#allocation7], 1 }
0x14b6   :  { %6523 = vsyncpa [#allocation5], 1 }
0x14b7   :  { %6525 = vsyncpa [#allocation5 + $0x1], 1 }

</bundles_post_ra>
